<compile_context>
chip_gen: v6e
topology: v6e:2x2x1
jax: 0.10.0
libtpu: 0.0.40
codegen_flags: <defaults>
</compile_context>

<pallas_src>
import functools

import jax
import jax.numpy as jnp
import numpy as np
from jax.experimental import pallas as pl
from jax.experimental.pallas import tpu as pltpu

EPS = 1e-5                      # BatchNorm eps
BRANCH_SIZES = (1, 2, 3, 6)     # AdaptiveAvgPool2d output sizes in PyramidPooling
PADL = 8                        # sublane-aligned left halo inside the conv scratch


# ------------------------- operator-matrix builders -------------------------

def _pool_matrix(size, k):
    """(k, size) row-averaging matrix matching AdaptiveAvgPool2d bin rules."""
    P = np.zeros((k, size), np.float32)
    for i in range(k):
        s = (i * size) // k
        e = -((-(i + 1) * size) // k)          # ceil((i+1)*size/k)
        P[i, s:e] = 1.0 / (e - s)
    return P


def _up_matrix(out_size, k):
    """(out_size, k) bilinear interpolation matrix, align_corners=True."""
    U = np.zeros((out_size, k), np.float32)
    if k == 1:
        U[:, 0] = 1.0
        return U
    scale = 0.0 if out_size == 1 else (k - 1) / (out_size - 1)
    for o in range(out_size):
        src = o * scale
        i0 = min(int(np.floor(src)), k - 1)
        i1 = min(i0 + 1, k - 1)
        w = src - i0
        U[o, i0] += 1.0 - w
        U[o, i1] += w
    return U


def build_constants(H, W, Cq):
    """A (R,H*W): all adaptive pools as one matmul.
       B (H*W,R): all bilinear upsamples as one matmul.
       M (R,4*Cq): block mask selecting each branch's channel block."""
    R = sum(k * k for k in BRANCH_SIZES)
    A = np.zeros((R, H * W), np.float32)
    B = np.zeros((H * W, R), np.float32)
    M = np.zeros((R, 4 * Cq), np.float32)
    off = 0
    for b, k in enumerate(BRANCH_SIZES):
        Py, Px = _pool_matrix(H, k), _pool_matrix(W, k)
        Uy, Ux = _up_matrix(H, k), _up_matrix(W, k)
        A[off:off + k * k] = np.einsum('ih,jw->ijhw', Py, Px).reshape(k * k, H * W)
        B[:, off:off + k * k] = np.einsum('hi,wj->hwij', Uy, Ux).reshape(H * W, k * k)
        M[off:off + k * k, b * Cq:(b + 1) * Cq] = 1.0
        off += k * k
    return A, B, M


# ------------------------------ Pallas kernel -------------------------------

def psp_head_kernel(x_ref, A_ref, wsc_ref, bsc_ref, mask_ref, B_ref,
                    w3x_ref, w3f_ref, s2_ref, t2_ref, wf_ref, bf_ref,
                    o_ref, xpad_ref, fpad_ref, *, H, W):
    C = x_ref.shape[-1]
    C4 = fpad_ref.shape[-1]
    Ci = w3x_ref.shape[-1]
    Cout = wf_ref.shape[-1]
    HW = H * W

    x3d = x_ref[0]                                   # (H, W, C)
    x2d = x3d.reshape(HW, C)

    # --- PyramidPooling: all four adaptive average pools in one matmul -----
    pooled = jnp.dot(A_ref[...], x2d, preferred_element_type=jnp.float32)   # (R, C)
    # branch 1x1 convs + folded BN + ReLU, block-masked so each pooled row
    # only keeps its own branch's output channels
    g = jnp.dot(pooled, wsc_ref[...], preferred_element_type=jnp.float32)
    g = jnp.maximum(g + bsc_ref[...], 0.0) * mask_ref[...]                  # (R, 4Cq)

    # --- bilinear (align_corners=True) upsample of all branches: one matmul
    feats = jnp.dot(B_ref[...], g, preferred_element_type=jnp.float32)      # (HW, 4Cq)

    # --- stage zero-padded x / feats for the 3x3 conv (halo lives in VMEM) -
    xpad_ref[...] = jnp.zeros_like(xpad_ref)
    fpad_ref[...] = jnp.zeros_like(fpad_ref)
    xpad_ref[1:H + 1, PADL:PADL + W, :] = x3d                 # aligned store
    fpad_ref[1:H + 1, PADL:PADL + W, :] = feats.reshape(H, W, C4)

    # --- 3x3 conv over concat((x, feats)); taps read straight from the Ref -
    acc = jnp.zeros((HW, Ci), jnp.float32)
    for dy in range(3):
        for dx in range(3):
            c0 = PADL - 1 + dx
            xp = xpad_ref[dy:dy + H, c0:c0 + W, :].reshape(HW, C)
            fp = fpad_ref[dy:dy + H, c0:c0 + W, :].reshape(HW, C4)
            acc += jnp.dot(xp, w3x_ref[dy, dx], preferred_element_type=jnp.float32)
            acc += jnp.dot(fp, w3f_ref[dy, dx], preferred_element_type=jnp.float32)

    # folded BN + ReLU   (Dropout2d(0.1) == identity at inference)
    y = jnp.maximum(acc * s2_ref[...] + t2_ref[...], 0.0)
    # final 1x1 conv (+ bias)
    out = jnp.dot(y, wf_ref[...], preferred_element_type=jnp.float32) + bf_ref[...]
    o_ref[0] = out.reshape(H, W, Cout).astype(o_ref.dtype)


# -------------------------------- wrapper -----------------------------------

def psp_head_forward(x_nchw, params):
    """PSPHead forward. Input/output are NCHW float32 (PyTorch convention)."""
    N, C, H, W = x_nchw.shape
    Cq = C // 4                      # pyramid branch channels
    C4 = 4 * Cq                      # == C
    Ci = params['conv3_w'].shape[-1]
    Cout = params['final_w'].shape[-1]

    A_np, B_np, M_np = build_constants(H, W, Cq)
    A_c, B_c, M_c = jnp.asarray(A_np), jnp.asarray(B_np), jnp.asarray(M_np)
    R = A_np.shape[0]

    # fold branch BN (scale) into the 1x1 conv weights; keep shift separate
    wsc = jnp.concatenate(
        [params['branch_w'][b] * params['branch_scale'][b][None, :]
         for b in range(4)], axis=1)                                  # (C, 4Cq)
    bshift = jnp.concatenate([params['branch_shift'][b] for b in range(4)])[None, :]

    w3x = params['conv3_w'][:, :, :C, :]                              # (3,3,C,Ci)
    w3f = params['conv3_w'][:, :, C:, :]                              # (3,3,C,Ci)
    s2 = params['bn2_scale'][None, :]
    t2 = params['bn2_shift'][None, :]
    wf = params['final_w']
    bf = params['final_b'][None, :]

    x_nhwc = jnp.transpose(x_nchw, (0, 2, 3, 1))                      # NCHW -> NHWC

    HW = H * W
    flops = 2 * N * (R * HW * C + R * C * C4 + HW * R * C4
                     + 9 * HW * (C * Ci + C4 * Ci) + HW * Ci * Cout)
    bytes_accessed = 4 * (N * HW * C + N * HW * Cout + A_np.size + B_np.size
                          + M_np.size + C * C4 + 2 * 9 * C * Ci
                          + Ci * Cout + C4 + 2 * Ci + Cout)

    out_nhwc = pl.pallas_call(
        functools.partial(psp_head_kernel, H=H, W=W),
        out_shape=jax.ShapeDtypeStruct((N, H, W, Cout), jnp.float32),
        grid=(N,),
        in_specs=[
            pl.BlockSpec((1, H, W, C), lambda n: (n, 0, 0, 0)),       # x
            pl.BlockSpec((R, HW), lambda n: (0, 0)),                  # pooling operator
            pl.BlockSpec((C, C4), lambda n: (0, 0)),                  # branch conv (BN-scaled)
            pl.BlockSpec((1, C4), lambda n: (0, 0)),                  # branch BN shift
            pl.BlockSpec((R, C4), lambda n: (0, 0)),                  # branch block mask
            pl.BlockSpec((HW, R), lambda n: (0, 0)),                  # upsample operator
            pl.BlockSpec((3, 3, C, Ci), lambda n: (0, 0, 0, 0)),      # conv3 (x part)
            pl.BlockSpec((3, 3, C4, Ci), lambda n: (0, 0, 0, 0)),     # conv3 (feats part)
            pl.BlockSpec((1, Ci), lambda n: (0, 0)),                  # bn2 scale
            pl.BlockSpec((1, Ci), lambda n: (0, 0)),                  # bn2 shift
            pl.BlockSpec((Ci, Cout), lambda n: (0, 0)),               # final 1x1 weight
            pl.BlockSpec((1, Cout), lambda n: (0, 0)),                # final bias
        ],
        out_specs=pl.BlockSpec((1, H, W, Cout), lambda n: (n, 0, 0, 0)),
        scratch_shapes=[
            pltpu.VMEM((H + 2, W + 2 * PADL, C), jnp.float32),        # padded x
            pltpu.VMEM((H + 2, W + 2 * PADL, C4), jnp.float32),       # padded feats
        ],
        compiler_params=pltpu.CompilerParams(
            dimension_semantics=("parallel",),
            vmem_limit_bytes=64 * 1024 * 1024,
        ),
        cost_estimate=pl.CostEstimate(flops=int(flops), transcendentals=0,
                                      bytes_accessed=int(bytes_accessed)),
    )(x_nhwc, A_c, wsc, bshift, M_c, B_c, w3x, w3f, s2, t2, wf, bf)

    return jnp.transpose(out_nhwc, (0, 3, 1, 2))                      # NHWC -> NCHW


# --------------------------- parameters (random) -----------------------------

def make_params(key, in_channels, out_channels):
    C = in_channels
    Cq = C // 4
    Ci = C // 4
    keys = list(jax.random.split(key, 32))
    it = iter(keys)

    def bn_fold(c):
        gamma = 1.0 + 0.1 * jax.random.normal(next(it), (c,), jnp.float32)
        beta = 0.1 * jax.random.normal(next(it), (c,), jnp.float32)
        mean = 0.1 * jax.random.normal(next(it), (c,), jnp.float32)
        var = jnp.abs(jax.random.normal(next(it), (c,), jnp.float32)) + 0.5
        scale = gamma / jnp.sqrt(var + EPS)
        shift = beta - mean * scale
        return scale, shift

    branch_w, branch_scale, branch_shift = [], [], []
    for _ in range(4):
        branch_w.append(0.3 * jax.random.normal(next(it), (C, Cq), jnp.float32))
        s, t = bn_fold(Cq)
        branch_scale.append(s)
        branch_shift.append(t)

    conv3_w = 0.1 * jax.random.normal(next(it), (3, 3, 2 * C, Ci), jnp.float32)
    bn2_scale, bn2_shift = bn_fold(Ci)
    final_w = 0.3 * jax.random.normal(next(it), (Ci, out_channels), jnp.float32)
    final_b = 0.1 * jax.random.normal(next(it), (out_channels,), jnp.float32)

    return dict(branch_w=branch_w, branch_scale=branch_scale,
                branch_shift=branch_shift, conv3_w=conv3_w,
                bn2_scale=bn2_scale, bn2_shift=bn2_shift,
                final_w=final_w, final_b=final_b)


# ----------------------------- numpy reference -------------------------------

def reference(x_nchw, params):
    x = np.asarray(x_nchw, np.float32)
    N, C, H, W = x.shape

    def adaptive_avg_pool(v, k):
        out = np.zeros((N, C, k, k), np.float32)
        for i in range(k):
            hs, he = (i * H) // k, -((-(i + 1) * H) // k)
            for j in range(k):
                ws, we = (j * W) // k, -((-(j + 1) * W) // k)
                out[:, :, i, j] = v[:, :, hs:he, ws:we].mean(axis=(2, 3))
        return out

    def upsample(v):
        Nn, Cc, k, _ = v.shape
        out = np.zeros((Nn, Cc, H, W), np.float32)
        for oy in range(H):
            sy = 0.0 if k == 1 else oy * (k - 1) / (H - 1)
            y0 = min(int(np.floor(sy)), k - 1)
            y1 = min(y0 + 1, k - 1)
            wy = sy - y0
            for ox in range(W):
                sx = 0.0 if k == 1 else ox * (k - 1) / (W - 1)
                x0 = min(int(np.floor(sx)), k - 1)
                x1 = min(x0 + 1, k - 1)
                wx = sx - x0
                out[:, :, oy, ox] = ((1 - wy) * (1 - wx) * v[:, :, y0, x0]
                                     + (1 - wy) * wx * v[:, :, y0, x1]
                                     + wy * (1 - wx) * v[:, :, y1, x0]
                                     + wy * wx * v[:, :, y1, x1])
        return out

    feats = [x]
    for b, k in enumerate(BRANCH_SIZES):
        p = adaptive_avg_pool(x, k)
        z = np.einsum('ncij,cd->ndij', p, np.asarray(params['branch_w'][b]))
        z = z * np.asarray(params['branch_scale'][b])[None, :, None, None] \
              + np.asarray(params['branch_shift'][b])[None, :, None, None]
        z = np.maximum(z, 0.0)
        feats.append(upsample(z))
    cat = np.concatenate(feats, axis=1)                               # (N, 2C, H, W)

    w3 = np.asarray(params['conv3_w'])                                # (3,3,2C,Ci)
    Ci = w3.shape[-1]
    catp = np.pad(cat, ((0, 0), (0, 0), (1, 1), (1, 1)))
    conv = np.zeros((N, Ci, H, W), np.float32)
    for dy in range(3):
        for dx in range(3):
            patch = catp[:, :, dy:dy + H, dx:dx + W]
            conv += np.einsum('nchw,cd->ndhw', patch, w3[dy, dx])
    y = conv * np.asarray(params['bn2_scale'])[None, :, None, None] \
             + np.asarray(params['bn2_shift'])[None, :, None, None]
    y = np.maximum(y, 0.0)
    out = np.einsum('nchw,cd->ndhw', y, np.asarray(params['final_w'])) \
          + np.asarray(params['final_b'])[None, :, None, None]
    return out


# ---------------------------------- main -------------------------------------

if __name__ == "__main__":
    N, C, H, W = 2, 32, 16, 16          # in_channels must be divisible by 4
    OUT = 8

    key = jax.random.PRNGKey(0)
    kx, kp = jax.random.split(key)
    x = jax.random.normal(kx, (N, C, H, W), jnp.float32)   # NCHW, like PyTorch
    params = make_params(kp, C, OUT)

    out = psp_head_forward(x, params)
    out = jax.block_until_ready(out)
    assert out.shape == (N, OUT, H, W)

    ref = reference(np.asarray(x), params)
    np.testing.assert_allclose(np.asarray(out), ref, rtol=2e-3, atol=2e-3)
    print("KERNEL_OK")
</pallas_src>

<mosaic_0001>
module attributes {stable_mosaic.version = 11 : i64} {
  func.func @psp_head_kernel(%arg0: i32, %arg1: memref<1x16x16x32xf32, #tpu.memory_space<vmem>>, %arg2: memref<50x256xf32, #tpu.memory_space<vmem>>, %arg3: memref<32x32xf32, #tpu.memory_space<vmem>>, %arg4: memref<1x32xf32, #tpu.memory_space<vmem>>, %arg5: memref<50x32xf32, #tpu.memory_space<vmem>>, %arg6: memref<256x50xf32, #tpu.memory_space<vmem>>, %arg7: memref<3x3x32x8xf32, #tpu.memory_space<vmem>>, %arg8: memref<3x3x32x8xf32, #tpu.memory_space<vmem>>, %arg9: memref<1x8xf32, #tpu.memory_space<vmem>>, %arg10: memref<1x8xf32, #tpu.memory_space<vmem>>, %arg11: memref<8x8xf32, #tpu.memory_space<vmem>>, %arg12: memref<1x8xf32, #tpu.memory_space<vmem>>, %arg13: memref<1x16x16x8xf32, #tpu.memory_space<vmem>>, %arg14: memref<18x32x32xf32, #tpu.memory_space<vmem>>, %arg15: memref<18x32x32xf32, #tpu.memory_space<vmem>>) attributes {dimension_semantics = [#tpu.dimension_semantics<parallel>], iteration_bounds = array<i64: 2>, scalar_prefetch = 0 : i64, scratch_operands = 2 : i64, tpu.core_type = #tpu.core_type<tc>, window_params = [{transform_indices = @transform_0, window_bounds = array<i64: 1, 16, 16, 32>}, {pipeline_mode = #tpu.pipeline_mode<synchronous>, transform_indices = @transform_1, window_bounds = array<i64: 50, 256>}, {pipeline_mode = #tpu.pipeline_mode<synchronous>, transform_indices = @transform_2, window_bounds = array<i64: 32, 32>}, {pipeline_mode = #tpu.pipeline_mode<synchronous>, transform_indices = @transform_3, window_bounds = array<i64: 1, 32>}, {pipeline_mode = #tpu.pipeline_mode<synchronous>, transform_indices = @transform_4, window_bounds = array<i64: 50, 32>}, {pipeline_mode = #tpu.pipeline_mode<synchronous>, transform_indices = @transform_5, window_bounds = array<i64: 256, 50>}, {pipeline_mode = #tpu.pipeline_mode<synchronous>, transform_indices = @transform_6, window_bounds = array<i64: 3, 3, 32, 8>}, {pipeline_mode = #tpu.pipeline_mode<synchronous>, transform_indices = @transform_7, window_bounds = array<i64: 3, 3, 32, 8>}, {pipeline_mode = #tpu.pipeline_mode<synchronous>, transform_indices = @transform_8, window_bounds = array<i64: 1, 8>}, {pipeline_mode = #tpu.pipeline_mode<synchronous>, transform_indices = @transform_9, window_bounds = array<i64: 1, 8>}, {pipeline_mode = #tpu.pipeline_mode<synchronous>, transform_indices = @transform_10, window_bounds = array<i64: 8, 8>}, {pipeline_mode = #tpu.pipeline_mode<synchronous>, transform_indices = @transform_11, window_bounds = array<i64: 1, 8>}, {transform_indices = @transform_12, window_bounds = array<i64: 1, 16, 16, 8>}]} {
    %c0 = arith.constant 0 : index
    %c0_0 = arith.constant 0 : index
    %c0_1 = arith.constant 0 : index
    %c0_2 = arith.constant 0 : index
    %0 = vector.load %arg1[%c0, %c0_0, %c0_1, %c0_2] : memref<1x16x16x32xf32, #tpu.memory_space<vmem>>, vector<1x16x16x32xf32>
    %1 = vector.shape_cast %0 : vector<1x16x16x32xf32> to vector<16x16x32xf32>
    %2 = vector.shape_cast %1 : vector<16x16x32xf32> to vector<256x32xf32>
    %c0_3 = arith.constant 0 : index
    %c0_4 = arith.constant 0 : index
    %3 = vector.load %arg2[%c0_3, %c0_4] : memref<50x256xf32, #tpu.memory_space<vmem>>, vector<50x256xf32>
    %cst = arith.constant dense<0.000000e+00> : vector<50x32xf32>
    %4 = tpu.matmul %3, %2, %cst {dimension_numbers = #tpu.dot_dimension_numbers<[1], [0], [0], [1], [0, 0, 1, 1], [], []>} : vector<50x256xf32>, vector<256x32xf32>, vector<50x32xf32> -> vector<50x32xf32>
    %c0_5 = arith.constant 0 : index
    %c0_6 = arith.constant 0 : index
    %5 = vector.load %arg3[%c0_5, %c0_6] : memref<32x32xf32, #tpu.memory_space<vmem>>, vector<32x32xf32>
    %cst_7 = arith.constant dense<0.000000e+00> : vector<50x32xf32>
    %6 = tpu.matmul %4, %5, %cst_7 {dimension_numbers = #tpu.dot_dimension_numbers<[1], [0], [0], [1], [0, 0, 1, 1], [], []>} : vector<50x32xf32>, vector<32x32xf32>, vector<50x32xf32> -> vector<50x32xf32>
    %c0_8 = arith.constant 0 : index
    %c0_9 = arith.constant 0 : index
    %7 = vector.load %arg4[%c0_8, %c0_9] : memref<1x32xf32, #tpu.memory_space<vmem>>, vector<1x32xf32>
    %8 = vector.broadcast %7 : vector<1x32xf32> to vector<50x32xf32>
    %9 = arith.addf %6, %8 : vector<50x32xf32>
    %cst_10 = arith.constant 0.000000e+00 : f32
    %10 = vector.broadcast %cst_10 : f32 to vector<50x32xf32>
    %11 = arith.maximumf %9, %10 : vector<50x32xf32>
    %c0_11 = arith.constant 0 : index
    %c0_12 = arith.constant 0 : index
    %12 = vector.load %arg5[%c0_11, %c0_12] : memref<50x32xf32, #tpu.memory_space<vmem>>, vector<50x32xf32>
    %13 = arith.mulf %11, %12 : vector<50x32xf32>
    %c0_13 = arith.constant 0 : index
    %c0_14 = arith.constant 0 : index
    %14 = vector.load %arg6[%c0_13, %c0_14] : memref<256x50xf32, #tpu.memory_space<vmem>>, vector<256x50xf32>
    %cst_15 = arith.constant dense<0.000000e+00> : vector<256x32xf32>
    %15 = tpu.matmul %14, %13, %cst_15 {dimension_numbers = #tpu.dot_dimension_numbers<[1], [0], [0], [1], [0, 0, 1, 1], [], []>} : vector<256x50xf32>, vector<50x32xf32>, vector<256x32xf32> -> vector<256x32xf32>
    %cst_16 = arith.constant 0.000000e+00 : f32
    %16 = vector.broadcast %cst_16 : f32 to vector<18x32x32xf32>
    %c0_17 = arith.constant 0 : index
    %c0_18 = arith.constant 0 : index
    %c0_19 = arith.constant 0 : index
    %17 = vector.load %arg14[%c0_17, %c0_18, %c0_19] : memref<18x32x32xf32, #tpu.memory_space<vmem>>, vector<18x32x32xf32>
    tpu.vector_store %arg14[%c0_17, %c0_18, %c0_19], %16 {strides = array<i32>} : memref<18x32x32xf32, #tpu.memory_space<vmem>>, vector<18x32x32xf32>,
    %cst_20 = arith.constant 0.000000e+00 : f32
    %18 = vector.broadcast %cst_20 : f32 to vector<18x32x32xf32>
    %c0_21 = arith.constant 0 : index
    %c0_22 = arith.constant 0 : index
    %c0_23 = arith.constant 0 : index
    %19 = vector.load %arg15[%c0_21, %c0_22, %c0_23] : memref<18x32x32xf32, #tpu.memory_space<vmem>>, vector<18x32x32xf32>
    tpu.vector_store %arg15[%c0_21, %c0_22, %c0_23], %18 {strides = array<i32>} : memref<18x32x32xf32, #tpu.memory_space<vmem>>, vector<18x32x32xf32>,
    %c1 = arith.constant 1 : index
    %c8 = arith.constant 8 : index
    %c0_24 = arith.constant 0 : index
    %20 = vector.load %arg14[%c1, %c8, %c0_24] : memref<18x32x32xf32, #tpu.memory_space<vmem>>, vector<16x16x32xf32>
    tpu.vector_store %arg14[%c1, %c8, %c0_24], %1 {strides = array<i32>} : memref<18x32x32xf32, #tpu.memory_space<vmem>>, vector<16x16x32xf32>,
    %21 = vector.shape_cast %15 : vector<256x32xf32> to vector<16x16x32xf32>
    %c1_25 = arith.constant 1 : index
    %c8_26 = arith.constant 8 : index
    %c0_27 = arith.constant 0 : index
    %22 = vector.load %arg15[%c1_25, %c8_26, %c0_27] : memref<18x32x32xf32, #tpu.memory_space<vmem>>, vector<16x16x32xf32>
    tpu.vector_store %arg15[%c1_25, %c8_26, %c0_27], %21 {strides = array<i32>} : memref<18x32x32xf32, #tpu.memory_space<vmem>>, vector<16x16x32xf32>,
    %cst_28 = arith.constant 0.000000e+00 : f32
    %23 = vector.broadcast %cst_28 : f32 to vector<256x8xf32>
    %c0_29 = arith.constant 0 : index
    %c7 = arith.constant 7 : index
    %c0_30 = arith.constant 0 : index
    %24 = vector.load %arg14[%c0_29, %c7, %c0_30] : memref<18x32x32xf32, #tpu.memory_space<vmem>>, vector<16x16x32xf32>
    %25 = vector.shape_cast %24 : vector<16x16x32xf32> to vector<256x32xf32>
    %c0_31 = arith.constant 0 : index
    %c7_32 = arith.constant 7 : index
    %c0_33 = arith.constant 0 : index
    %26 = vector.load %arg15[%c0_31, %c7_32, %c0_33] : memref<18x32x32xf32, #tpu.memory_space<vmem>>, vector<16x16x32xf32>
    %27 = vector.shape_cast %26 : vector<16x16x32xf32> to vector<256x32xf32>
    %c0_34 = arith.constant 0 : index
    %c0_35 = arith.constant 0 : index
    %c0_36 = arith.constant 0 : index
    %c0_37 = arith.constant 0 : index
    %28 = vector.load %arg7[%c0_34, %c0_35, %c0_36, %c0_37] : memref<3x3x32x8xf32, #tpu.memory_space<vmem>>, vector<1x1x32x8xf32>
    %29 = vector.shape_cast %28 : vector<1x1x32x8xf32> to vector<32x8xf32>
    %cst_38 = arith.constant dense<0.000000e+00> : vector<256x8xf32>
    %30 = tpu.matmul %25, %29, %cst_38 {dimension_numbers = #tpu.dot_dimension_numbers<[1], [0], [0], [1], [0, 0, 1, 1], [], []>} : vector<256x32xf32>, vector<32x8xf32>, vector<256x8xf32> -> vector<256x8xf32>
    %31 = arith.addf %23, %30 : vector<256x8xf32>
    %c0_39 = arith.constant 0 : index
    %c0_40 = arith.constant 0 : index
    %c0_41 = arith.constant 0 : index
    %c0_42 = arith.constant 0 : index
    %32 = vector.load %arg8[%c0_39, %c0_40, %c0_41, %c0_42] : memref<3x3x32x8xf32, #tpu.memory_space<vmem>>, vector<1x1x32x8xf32>
    %33 = vector.shape_cast %32 : vector<1x1x32x8xf32> to vector<32x8xf32>
    %cst_43 = arith.constant dense<0.000000e+00> : vector<256x8xf32>
    %34 = tpu.matmul %27, %33, %cst_43 {dimension_numbers = #tpu.dot_dimension_numbers<[1], [0], [0], [1], [0, 0, 1, 1], [], []>} : vector<256x32xf32>, vector<32x8xf32>, vector<256x8xf32> -> vector<256x8xf32>
    %35 = arith.addf %31, %34 : vector<256x8xf32>
    %c0_44 = arith.constant 0 : index
    %c8_45 = arith.constant 8 : index
    %c0_46 = arith.constant 0 : index
    %36 = vector.load %arg14[%c0_44, %c8_45, %c0_46] : memref<18x32x32xf32, #tpu.memory_space<vmem>>, vector<16x16x32xf32>
    %37 = vector.shape_cast %36 : vector<16x16x32xf32> to vector<256x32xf32>
    %c0_47 = arith.constant 0 : index
    %c8_48 = arith.constant 8 : index
    %c0_49 = arith.constant 0 : index
    %38 = vector.load %arg15[%c0_47, %c8_48, %c0_49] : memref<18x32x32xf32, #tpu.memory_space<vmem>>, vector<16x16x32xf32>
    %39 = vector.shape_cast %38 : vector<16x16x32xf32> to vector<256x32xf32>
    %c0_50 = arith.constant 0 : index
    %c1_51 = arith.constant 1 : index
    %c0_52 = arith.constant 0 : index
    %c0_53 = arith.constant 0 : index
    %40 = vector.load %arg7[%c0_50, %c1_51, %c0_52, %c0_53] : memref<3x3x32x8xf32, #tpu.memory_space<vmem>>, vector<1x1x32x8xf32>
    %41 = vector.shape_cast %40 : vector<1x1x32x8xf32> to vector<32x8xf32>
    %cst_54 = arith.constant dense<0.000000e+00> : vector<256x8xf32>
    %42 = tpu.matmul %37, %41, %cst_54 {dimension_numbers = #tpu.dot_dimension_numbers<[1], [0], [0], [1], [0, 0, 1, 1], [], []>} : vector<256x32xf32>, vector<32x8xf32>, vector<256x8xf32> -> vector<256x8xf32>
    %43 = arith.addf %35, %42 : vector<256x8xf32>
    %c0_55 = arith.constant 0 : index
    %c1_56 = arith.constant 1 : index
    %c0_57 = arith.constant 0 : index
    %c0_58 = arith.constant 0 : index
    %44 = vector.load %arg8[%c0_55, %c1_56, %c0_57, %c0_58] : memref<3x3x32x8xf32, #tpu.memory_space<vmem>>, vector<1x1x32x8xf32>
    %45 = vector.shape_cast %44 : vector<1x1x32x8xf32> to vector<32x8xf32>
    %cst_59 = arith.constant dense<0.000000e+00> : vector<256x8xf32>
    %46 = tpu.matmul %39, %45, %cst_59 {dimension_numbers = #tpu.dot_dimension_numbers<[1], [0], [0], [1], [0, 0, 1, 1], [], []>} : vector<256x32xf32>, vector<32x8xf32>, vector<256x8xf32> -> vector<256x8xf32>
    %47 = arith.addf %43, %46 : vector<256x8xf32>
    %c0_60 = arith.constant 0 : index
    %c9 = arith.constant 9 : index
    %c0_61 = arith.constant 0 : index
    %48 = vector.load %arg14[%c0_60, %c9, %c0_61] : memref<18x32x32xf32, #tpu.memory_space<vmem>>, vector<16x16x32xf32>
    %49 = vector.shape_cast %48 : vector<16x16x32xf32> to vector<256x32xf32>
    %c0_62 = arith.constant 0 : index
    %c9_63 = arith.constant 9 : index
    %c0_64 = arith.constant 0 : index
    %50 = vector.load %arg15[%c0_62, %c9_63, %c0_64] : memref<18x32x32xf32, #tpu.memory_space<vmem>>, vector<16x16x32xf32>
    %51 = vector.shape_cast %50 : vector<16x16x32xf32> to vector<256x32xf32>
    %c0_65 = arith.constant 0 : index
    %c2 = arith.constant 2 : index
    %c0_66 = arith.constant 0 : index
    %c0_67 = arith.constant 0 : index
    %52 = vector.load %arg7[%c0_65, %c2, %c0_66, %c0_67] : memref<3x3x32x8xf32, #tpu.memory_space<vmem>>, vector<1x1x32x8xf32>
    %53 = vector.shape_cast %52 : vector<1x1x32x8xf32> to vector<32x8xf32>
    %cst_68 = arith.constant dense<0.000000e+00> : vector<256x8xf32>
    %54 = tpu.matmul %49, %53, %cst_68 {dimension_numbers = #tpu.dot_dimension_numbers<[1], [0], [0], [1], [0, 0, 1, 1], [], []>} : vector<256x32xf32>, vector<32x8xf32>, vector<256x8xf32> -> vector<256x8xf32>
    %55 = arith.addf %47, %54 : vector<256x8xf32>
    %c0_69 = arith.constant 0 : index
    %c2_70 = arith.constant 2 : index
    %c0_71 = arith.constant 0 : index
    %c0_72 = arith.constant 0 : index
    %56 = vector.load %arg8[%c0_69, %c2_70, %c0_71, %c0_72] : memref<3x3x32x8xf32, #tpu.memory_space<vmem>>, vector<1x1x32x8xf32>
    %57 = vector.shape_cast %56 : vector<1x1x32x8xf32> to vector<32x8xf32>
    %cst_73 = arith.constant dense<0.000000e+00> : vector<256x8xf32>
    %58 = tpu.matmul %51, %57, %cst_73 {dimension_numbers = #tpu.dot_dimension_numbers<[1], [0], [0], [1], [0, 0, 1, 1], [], []>} : vector<256x32xf32>, vector<32x8xf32>, vector<256x8xf32> -> vector<256x8xf32>
    %59 = arith.addf %55, %58 : vector<256x8xf32>
    %c1_74 = arith.constant 1 : index
    %c7_75 = arith.constant 7 : index
    %c0_76 = arith.constant 0 : index
    %60 = vector.load %arg14[%c1_74, %c7_75, %c0_76] : memref<18x32x32xf32, #tpu.memory_space<vmem>>, vector<16x16x32xf32>
    %61 = vector.shape_cast %60 : vector<16x16x32xf32> to vector<256x32xf32>
    %c1_77 = arith.constant 1 : index
    %c7_78 = arith.constant 7 : index
    %c0_79 = arith.constant 0 : index
    %62 = vector.load %arg15[%c1_77, %c7_78, %c0_79] : memref<18x32x32xf32, #tpu.memory_space<vmem>>, vector<16x16x32xf32>
    %63 = vector.shape_cast %62 : vector<16x16x32xf32> to vector<256x32xf32>
    %c1_80 = arith.constant 1 : index
    %c0_81 = arith.constant 0 : index
    %c0_82 = arith.constant 0 : index
    %c0_83 = arith.constant 0 : index
    %64 = vector.load %arg7[%c1_80, %c0_81, %c0_82, %c0_83] : memref<3x3x32x8xf32, #tpu.memory_space<vmem>>, vector<1x1x32x8xf32>
    %65 = vector.shape_cast %64 : vector<1x1x32x8xf32> to vector<32x8xf32>
    %cst_84 = arith.constant dense<0.000000e+00> : vector<256x8xf32>
    %66 = tpu.matmul %61, %65, %cst_84 {dimension_numbers = #tpu.dot_dimension_numbers<[1], [0], [0], [1], [0, 0, 1, 1], [], []>} : vector<256x32xf32>, vector<32x8xf32>, vector<256x8xf32> -> vector<256x8xf32>
    %67 = arith.addf %59, %66 : vector<256x8xf32>
    %c1_85 = arith.constant 1 : index
    %c0_86 = arith.constant 0 : index
    %c0_87 = arith.constant 0 : index
    %c0_88 = arith.constant 0 : index
    %68 = vector.load %arg8[%c1_85, %c0_86, %c0_87, %c0_88] : memref<3x3x32x8xf32, #tpu.memory_space<vmem>>, vector<1x1x32x8xf32>
    %69 = vector.shape_cast %68 : vector<1x1x32x8xf32> to vector<32x8xf32>
    %cst_89 = arith.constant dense<0.000000e+00> : vector<256x8xf32>
    %70 = tpu.matmul %63, %69, %cst_89 {dimension_numbers = #tpu.dot_dimension_numbers<[1], [0], [0], [1], [0, 0, 1, 1], [], []>} : vector<256x32xf32>, vector<32x8xf32>, vector<256x8xf32> -> vector<256x8xf32>
    %71 = arith.addf %67, %70 : vector<256x8xf32>
    %c1_90 = arith.constant 1 : index
    %c8_91 = arith.constant 8 : index
    %c0_92 = arith.constant 0 : index
    %72 = vector.load %arg14[%c1_90, %c8_91, %c0_92] : memref<18x32x32xf32, #tpu.memory_space<vmem>>, vector<16x16x32xf32>
    %73 = vector.shape_cast %72 : vector<16x16x32xf32> to vector<256x32xf32>
    %c1_93 = arith.constant 1 : index
    %c8_94 = arith.constant 8 : index
    %c0_95 = arith.constant 0 : index
    %74 = vector.load %arg15[%c1_93, %c8_94, %c0_95] : memref<18x32x32xf32, #tpu.memory_space<vmem>>, vector<16x16x32xf32>
    %75 = vector.shape_cast %74 : vector<16x16x32xf32> to vector<256x32xf32>
    %c1_96 = arith.constant 1 : index
    %c1_97 = arith.constant 1 : index
    %c0_98 = arith.constant 0 : index
    %c0_99 = arith.constant 0 : index
    %76 = vector.load %arg7[%c1_96, %c1_97, %c0_98, %c0_99] : memref<3x3x32x8xf32, #tpu.memory_space<vmem>>, vector<1x1x32x8xf32>
    %77 = vector.shape_cast %76 : vector<1x1x32x8xf32> to vector<32x8xf32>
    %cst_100 = arith.constant dense<0.000000e+00> : vector<256x8xf32>
    %78 = tpu.matmul %73, %77, %cst_100 {dimension_numbers = #tpu.dot_dimension_numbers<[1], [0], [0], [1], [0, 0, 1, 1], [], []>} : vector<256x32xf32>, vector<32x8xf32>, vector<256x8xf32> -> vector<256x8xf32>
    %79 = arith.addf %71, %78 : vector<256x8xf32>
    %c1_101 = arith.constant 1 : index
    %c1_102 = arith.constant 1 : index
    %c0_103 = arith.constant 0 : index
    %c0_104 = arith.constant 0 : index
    %80 = vector.load %arg8[%c1_101, %c1_102, %c0_103, %c0_104] : memref<3x3x32x8xf32, #tpu.memory_space<vmem>>, vector<1x1x32x8xf32>
    %81 = vector.shape_cast %80 : vector<1x1x32x8xf32> to vector<32x8xf32>
    %cst_105 = arith.constant dense<0.000000e+00> : vector<256x8xf32>
    %82 = tpu.matmul %75, %81, %cst_105 {dimension_numbers = #tpu.dot_dimension_numbers<[1], [0], [0], [1], [0, 0, 1, 1], [], []>} : vector<256x32xf32>, vector<32x8xf32>, vector<256x8xf32> -> vector<256x8xf32>
    %83 = arith.addf %79, %82 : vector<256x8xf32>
    %c1_106 = arith.constant 1 : index
    %c9_107 = arith.constant 9 : index
    %c0_108 = arith.constant 0 : index
    %84 = vector.load %arg14[%c1_106, %c9_107, %c0_108] : memref<18x32x32xf32, #tpu.memory_space<vmem>>, vector<16x16x32xf32>
    %85 = vector.shape_cast %84 : vector<16x16x32xf32> to vector<256x32xf32>
    %c1_109 = arith.constant 1 : index
    %c9_110 = arith.constant 9 : index
    %c0_111 = arith.constant 0 : index
    %86 = vector.load %arg15[%c1_109, %c9_110, %c0_111] : memref<18x32x32xf32, #tpu.memory_space<vmem>>, vector<16x16x32xf32>
    %87 = vector.shape_cast %86 : vector<16x16x32xf32> to vector<256x32xf32>
    %c1_112 = arith.constant 1 : index
    %c2_113 = arith.constant 2 : index
    %c0_114 = arith.constant 0 : index
    %c0_115 = arith.constant 0 : index
    %88 = vector.load %arg7[%c1_112, %c2_113, %c0_114, %c0_115] : memref<3x3x32x8xf32, #tpu.memory_space<vmem>>, vector<1x1x32x8xf32>
    %89 = vector.shape_cast %88 : vector<1x1x32x8xf32> to vector<32x8xf32>
    %cst_116 = arith.constant dense<0.000000e+00> : vector<256x8xf32>
    %90 = tpu.matmul %85, %89, %cst_116 {dimension_numbers = #tpu.dot_dimension_numbers<[1], [0], [0], [1], [0, 0, 1, 1], [], []>} : vector<256x32xf32>, vector<32x8xf32>, vector<256x8xf32> -> vector<256x8xf32>
    %91 = arith.addf %83, %90 : vector<256x8xf32>
    %c1_117 = arith.constant 1 : index
    %c2_118 = arith.constant 2 : index
    %c0_119 = arith.constant 0 : index
    %c0_120 = arith.constant 0 : index
    %92 = vector.load %arg8[%c1_117, %c2_118, %c0_119, %c0_120] : memref<3x3x32x8xf32, #tpu.memory_space<vmem>>, vector<1x1x32x8xf32>
    %93 = vector.shape_cast %92 : vector<1x1x32x8xf32> to vector<32x8xf32>
    %cst_121 = arith.constant dense<0.000000e+00> : vector<256x8xf32>
    %94 = tpu.matmul %87, %93, %cst_121 {dimension_numbers = #tpu.dot_dimension_numbers<[1], [0], [0], [1], [0, 0, 1, 1], [], []>} : vector<256x32xf32>, vector<32x8xf32>, vector<256x8xf32> -> vector<256x8xf32>
    %95 = arith.addf %91, %94 : vector<256x8xf32>
    %c2_122 = arith.constant 2 : index
    %c7_123 = arith.constant 7 : index
    %c0_124 = arith.constant 0 : index
    %96 = vector.load %arg14[%c2_122, %c7_123, %c0_124] : memref<18x32x32xf32, #tpu.memory_space<vmem>>, vector<16x16x32xf32>
    %97 = vector.shape_cast %96 : vector<16x16x32xf32> to vector<256x32xf32>
    %c2_125 = arith.constant 2 : index
    %c7_126 = arith.constant 7 : index
    %c0_127 = arith.constant 0 : index
    %98 = vector.load %arg15[%c2_125, %c7_126, %c0_127] : memref<18x32x32xf32, #tpu.memory_space<vmem>>, vector<16x16x32xf32>
    %99 = vector.shape_cast %98 : vector<16x16x32xf32> to vector<256x32xf32>
    %c2_128 = arith.constant 2 : index
    %c0_129 = arith.constant 0 : index
    %c0_130 = arith.constant 0 : index
    %c0_131 = arith.constant 0 : index
    %100 = vector.load %arg7[%c2_128, %c0_129, %c0_130, %c0_131] : memref<3x3x32x8xf32, #tpu.memory_space<vmem>>, vector<1x1x32x8xf32>
    %101 = vector.shape_cast %100 : vector<1x1x32x8xf32> to vector<32x8xf32>
    %cst_132 = arith.constant dense<0.000000e+00> : vector<256x8xf32>
    %102 = tpu.matmul %97, %101, %cst_132 {dimension_numbers = #tpu.dot_dimension_numbers<[1], [0], [0], [1], [0, 0, 1, 1], [], []>} : vector<256x32xf32>, vector<32x8xf32>, vector<256x8xf32> -> vector<256x8xf32>
    %103 = arith.addf %95, %102 : vector<256x8xf32>
    %c2_133 = arith.constant 2 : index
    %c0_134 = arith.constant 0 : index
    %c0_135 = arith.constant 0 : index
    %c0_136 = arith.constant 0 : index
    %104 = vector.load %arg8[%c2_133, %c0_134, %c0_135, %c0_136] : memref<3x3x32x8xf32, #tpu.memory_space<vmem>>, vector<1x1x32x8xf32>
    %105 = vector.shape_cast %104 : vector<1x1x32x8xf32> to vector<32x8xf32>
    %cst_137 = arith.constant dense<0.000000e+00> : vector<256x8xf32>
    %106 = tpu.matmul %99, %105, %cst_137 {dimension_numbers = #tpu.dot_dimension_numbers<[1], [0], [0], [1], [0, 0, 1, 1], [], []>} : vector<256x32xf32>, vector<32x8xf32>, vector<256x8xf32> -> vector<256x8xf32>
    %107 = arith.addf %103, %106 : vector<256x8xf32>
    %c2_138 = arith.constant 2 : index
    %c8_139 = arith.constant 8 : index
    %c0_140 = arith.constant 0 : index
    %108 = vector.load %arg14[%c2_138, %c8_139, %c0_140] : memref<18x32x32xf32, #tpu.memory_space<vmem>>, vector<16x16x32xf32>
    %109 = vector.shape_cast %108 : vector<16x16x32xf32> to vector<256x32xf32>
    %c2_141 = arith.constant 2 : index
    %c8_142 = arith.constant 8 : index
    %c0_143 = arith.constant 0 : index
    %110 = vector.load %arg15[%c2_141, %c8_142, %c0_143] : memref<18x32x32xf32, #tpu.memory_space<vmem>>, vector<16x16x32xf32>
    %111 = vector.shape_cast %110 : vector<16x16x32xf32> to vector<256x32xf32>
    %c2_144 = arith.constant 2 : index
    %c1_145 = arith.constant 1 : index
    %c0_146 = arith.constant 0 : index
    %c0_147 = arith.constant 0 : index
    %112 = vector.load %arg7[%c2_144, %c1_145, %c0_146, %c0_147] : memref<3x3x32x8xf32, #tpu.memory_space<vmem>>, vector<1x1x32x8xf32>
    %113 = vector.shape_cast %112 : vector<1x1x32x8xf32> to vector<32x8xf32>
    %cst_148 = arith.constant dense<0.000000e+00> : vector<256x8xf32>
    %114 = tpu.matmul %109, %113, %cst_148 {dimension_numbers = #tpu.dot_dimension_numbers<[1], [0], [0], [1], [0, 0, 1, 1], [], []>} : vector<256x32xf32>, vector<32x8xf32>, vector<256x8xf32> -> vector<256x8xf32>
    %115 = arith.addf %107, %114 : vector<256x8xf32>
    %c2_149 = arith.constant 2 : index
    %c1_150 = arith.constant 1 : index
    %c0_151 = arith.constant 0 : index
    %c0_152 = arith.constant 0 : index
    %116 = vector.load %arg8[%c2_149, %c1_150, %c0_151, %c0_152] : memref<3x3x32x8xf32, #tpu.memory_space<vmem>>, vector<1x1x32x8xf32>
    %117 = vector.shape_cast %116 : vector<1x1x32x8xf32> to vector<32x8xf32>
    %cst_153 = arith.constant dense<0.000000e+00> : vector<256x8xf32>
    %118 = tpu.matmul %111, %117, %cst_153 {dimension_numbers = #tpu.dot_dimension_numbers<[1], [0], [0], [1], [0, 0, 1, 1], [], []>} : vector<256x32xf32>, vector<32x8xf32>, vector<256x8xf32> -> vector<256x8xf32>
    %119 = arith.addf %115, %118 : vector<256x8xf32>
    %c2_154 = arith.constant 2 : index
    %c9_155 = arith.constant 9 : index
    %c0_156 = arith.constant 0 : index
    %120 = vector.load %arg14[%c2_154, %c9_155, %c0_156] : memref<18x32x32xf32, #tpu.memory_space<vmem>>, vector<16x16x32xf32>
    %121 = vector.shape_cast %120 : vector<16x16x32xf32> to vector<256x32xf32>
    %c2_157 = arith.constant 2 : index
    %c9_158 = arith.constant 9 : index
    %c0_159 = arith.constant 0 : index
    %122 = vector.load %arg15[%c2_157, %c9_158, %c0_159] : memref<18x32x32xf32, #tpu.memory_space<vmem>>, vector<16x16x32xf32>
    %123 = vector.shape_cast %122 : vector<16x16x32xf32> to vector<256x32xf32>
    %c2_160 = arith.constant 2 : index
    %c2_161 = arith.constant 2 : index
    %c0_162 = arith.constant 0 : index
    %c0_163 = arith.constant 0 : index
    %124 = vector.load %arg7[%c2_160, %c2_161, %c0_162, %c0_163] : memref<3x3x32x8xf32, #tpu.memory_space<vmem>>, vector<1x1x32x8xf32>
    %125 = vector.shape_cast %124 : vector<1x1x32x8xf32> to vector<32x8xf32>
    %cst_164 = arith.constant dense<0.000000e+00> : vector<256x8xf32>
    %126 = tpu.matmul %121, %125, %cst_164 {dimension_numbers = #tpu.dot_dimension_numbers<[1], [0], [0], [1], [0, 0, 1, 1], [], []>} : vector<256x32xf32>, vector<32x8xf32>, vector<256x8xf32> -> vector<256x8xf32>
    %127 = arith.addf %119, %126 : vector<256x8xf32>
    %c2_165 = arith.constant 2 : index
    %c2_166 = arith.constant 2 : index
    %c0_167 = arith.constant 0 : index
    %c0_168 = arith.constant 0 : index
    %128 = vector.load %arg8[%c2_165, %c2_166, %c0_167, %c0_168] : memref<3x3x32x8xf32, #tpu.memory_space<vmem>>, vector<1x1x32x8xf32>
    %129 = vector.shape_cast %128 : vector<1x1x32x8xf32> to vector<32x8xf32>
    %cst_169 = arith.constant dense<0.000000e+00> : vector<256x8xf32>
    %130 = tpu.matmul %123, %129, %cst_169 {dimension_numbers = #tpu.dot_dimension_numbers<[1], [0], [0], [1], [0, 0, 1, 1], [], []>} : vector<256x32xf32>, vector<32x8xf32>, vector<256x8xf32> -> vector<256x8xf32>
    %131 = arith.addf %127, %130 : vector<256x8xf32>
    %c0_170 = arith.constant 0 : index
    %c0_171 = arith.constant 0 : index
    %132 = vector.load %arg9[%c0_170, %c0_171] : memref<1x8xf32, #tpu.memory_space<vmem>>, vector<1x8xf32>
    %133 = vector.broadcast %132 : vector<1x8xf32> to vector<256x8xf32>
    %134 = arith.mulf %131, %133 : vector<256x8xf32>
    %c0_172 = arith.constant 0 : index
    %c0_173 = arith.constant 0 : index
    %135 = vector.load %arg10[%c0_172, %c0_173] : memref<1x8xf32, #tpu.memory_space<vmem>>, vector<1x8xf32>
    %136 = vector.broadcast %135 : vector<1x8xf32> to vector<256x8xf32>
    %137 = arith.addf %134, %136 : vector<256x8xf32>
    %cst_174 = arith.constant 0.000000e+00 : f32
    %138 = vector.broadcast %cst_174 : f32 to vector<256x8xf32>
    %139 = arith.maximumf %137, %138 : vector<256x8xf32>
    %c0_175 = arith.constant 0 : index
    %c0_176 = arith.constant 0 : index
    %140 = vector.load %arg11[%c0_175, %c0_176] : memref<8x8xf32, #tpu.memory_space<vmem>>, vector<8x8xf32>
    %cst_177 = arith.constant dense<0.000000e+00> : vector<256x8xf32>
    %141 = tpu.matmul %139, %140, %cst_177 {dimension_numbers = #tpu.dot_dimension_numbers<[1], [0], [0], [1], [0, 0, 1, 1], [], []>} : vector<256x8xf32>, vector<8x8xf32>, vector<256x8xf32> -> vector<256x8xf32>
    %c0_178 = arith.constant 0 : index
    %c0_179 = arith.constant 0 : index
    %142 = vector.load %arg12[%c0_178, %c0_179] : memref<1x8xf32, #tpu.memory_space<vmem>>, vector<1x8xf32>
    %143 = vector.broadcast %142 : vector<1x8xf32> to vector<256x8xf32>
    %144 = arith.addf %141, %143 : vector<256x8xf32>
    %145 = vector.shape_cast %144 : vector<256x8xf32> to vector<16x16x8xf32>
    %c0_180 = arith.constant 0 : index
    %c0_181 = arith.constant 0 : index
    %c0_182 = arith.constant 0 : index
    %c0_183 = arith.constant 0 : index
    %146 = vector.load %arg13[%c0_180, %c0_181, %c0_182, %c0_183] : memref<1x16x16x8xf32, #tpu.memory_space<vmem>>, vector<1x16x16x8xf32>
    %147 = vector.shape_cast %146 : vector<1x16x16x8xf32> to vector<16x16x8xf32>
    %148 = vector.shape_cast %145 : vector<16x16x8xf32> to vector<1x16x16x8xf32>
    tpu.vector_store %arg13[%c0_180, %c0_181, %c0_182, %c0_183], %148 {strides = array<i32>} : memref<1x16x16x8xf32, #tpu.memory_space<vmem>>, vector<1x16x16x8xf32>,
    return
  }
  func.func @transform_0(%arg0: i32) -> (i32, i32, i32, i32) {
    %c0_i32 = arith.constant 0 : i32
    %c0_i32_0 = arith.constant 0 : i32
    %c0_i32_1 = arith.constant 0 : i32
    %c0_i32_2 = arith.constant 0 : i32
    return %arg0, %c0_i32, %c0_i32_0, %c0_i32_1 : i32, i32, i32, i32
  }
  func.func @transform_1(%arg0: i32) -> (i32, i32) {
    %c0_i32 = arith.constant 0 : i32
    %c0_i32_0 = arith.constant 0 : i32
    %c0_i32_1 = arith.constant 0 : i32
    return %c0_i32, %c0_i32_0 : i32, i32
  }
  func.func @transform_2(%arg0: i32) -> (i32, i32) {
    %c0_i32 = arith.constant 0 : i32
    %c0_i32_0 = arith.constant 0 : i32
    %c0_i32_1 = arith.constant 0 : i32
    return %c0_i32, %c0_i32_0 : i32, i32
  }
  func.func @transform_3(%arg0: i32) -> (i32, i32) {
    %c0_i32 = arith.constant 0 : i32
    %c0_i32_0 = arith.constant 0 : i32
    %c0_i32_1 = arith.constant 0 : i32
    return %c0_i32, %c0_i32_0 : i32, i32
  }
  func.func @transform_4(%arg0: i32) -> (i32, i32) {
    %c0_i32 = arith.constant 0 : i32
    %c0_i32_0 = arith.constant 0 : i32
    %c0_i32_1 = arith.constant 0 : i32
    return %c0_i32, %c0_i32_0 : i32, i32
  }
  func.func @transform_5(%arg0: i32) -> (i32, i32) {
    %c0_i32 = arith.constant 0 : i32
    %c0_i32_0 = arith.constant 0 : i32
    %c0_i32_1 = arith.constant 0 : i32
    return %c0_i32, %c0_i32_0 : i32, i32
  }
  func.func @transform_6(%arg0: i32) -> (i32, i32, i32, i32) {
    %c0_i32 = arith.constant 0 : i32
    %c0_i32_0 = arith.constant 0 : i32
    %c0_i32_1 = arith.constant 0 : i32
    %c0_i32_2 = arith.constant 0 : i32
    %c0_i32_3 = arith.constant 0 : i32
    return %c0_i32, %c0_i32_0, %c0_i32_1, %c0_i32_2 : i32, i32, i32, i32
  }
  func.func @transform_7(%arg0: i32) -> (i32, i32, i32, i32) {
    %c0_i32 = arith.constant 0 : i32
    %c0_i32_0 = arith.constant 0 : i32
    %c0_i32_1 = arith.constant 0 : i32
    %c0_i32_2 = arith.constant 0 : i32
    %c0_i32_3 = arith.constant 0 : i32
    return %c0_i32, %c0_i32_0, %c0_i32_1, %c0_i32_2 : i32, i32, i32, i32
  }
  func.func @transform_8(%arg0: i32) -> (i32, i32) {
    %c0_i32 = arith.constant 0 : i32
    %c0_i32_0 = arith.constant 0 : i32
    %c0_i32_1 = arith.constant 0 : i32
    return %c0_i32, %c0_i32_0 : i32, i32
  }
  func.func @transform_9(%arg0: i32) -> (i32, i32) {
    %c0_i32 = arith.constant 0 : i32
    %c0_i32_0 = arith.constant 0 : i32
    %c0_i32_1 = arith.constant 0 : i32
    return %c0_i32, %c0_i32_0 : i32, i32
  }
  func.func @transform_10(%arg0: i32) -> (i32, i32) {
    %c0_i32 = arith.constant 0 : i32
    %c0_i32_0 = arith.constant 0 : i32
    %c0_i32_1 = arith.constant 0 : i32
    return %c0_i32, %c0_i32_0 : i32, i32
  }
  func.func @transform_11(%arg0: i32) -> (i32, i32) {
    %c0_i32 = arith.constant 0 : i32
    %c0_i32_0 = arith.constant 0 : i32
    %c0_i32_1 = arith.constant 0 : i32
    return %c0_i32, %c0_i32_0 : i32, i32
  }
  func.func @transform_12(%arg0: i32) -> (i32, i32, i32, i32) {
    %c0_i32 = arith.constant 0 : i32
    %c0_i32_0 = arith.constant 0 : i32
    %c0_i32_1 = arith.constant 0 : i32
    %c0_i32_2 = arith.constant 0 : i32
    return %arg0, %c0_i32, %c0_i32_0, %c0_i32_1 : i32, i32, i32, i32
  }
}

</mosaic_0001>

<bundles_post_ra>
// kernel: tpu_custom_call.1
= control target key start
LH: loop header
LB: loop body
LE: loop exit
PB: predicated region body
PF: predicated region fallthrough
CT: control target
= control target key end

     0   :  { %s11520_s21 = smov 0   ;;  %s14559_s0 = inlined_call_operand.vmem [shape: f32[2,16,16,32], index: 0, kind: input, shape index: {}]   ;;  %s14560_s1 = inlined_call_operand.vmem [shape: f32[50,256], index: 1, kind: input, shape index: {}]   ;;  %s14561_s2 = inlined_call_operand.vmem [shape: f32[32,32], index: 2, kind: input, shape index: {}]   ;;  %s14562_s3 = inlined_call_operand.vmem [shape: f32[1,32], index: 3, kind: input, shape index: {}]   ;;  %s14563_s4 = inlined_call_operand.vmem [shape: f32[50,32], index: 4, kind: input, shape index: {}]   ;;  %s14564_s5 = inlined_call_operand.vmem [shape: f32[256,50], index: 5, kind: input, shape index: {}]   ;;  %s14565_s6 = inlined_call_operand.vmem [shape: f32[3,3,32,8], index: 6, kind: input, shape index: {}]   ;;  %s14566_s7 = inlined_call_operand.vmem [shape: f32[3,3,32,8], index: 7, kind: input, shape index: {}]   ;;  %s14567_s8 = inlined_call_operand.vmem [shape: f32[1,8], index: 8, kind: input, shape index: {}]   ;;  %s14568_s9 = inlined_call_operand.vmem [shape: f32[1,8], index: 9, kind: input, shape index: {}]   ;;  %s14569_s10 = inlined_call_operand.vmem [shape: f32[8,8], index: 10, kind: input, shape index: {}]   ;;  %s14570_s11 = inlined_call_operand.vmem [shape: f32[1,8], index: 11, kind: input, shape index: {}]   ;;  %s14571_s12 = inlined_call_operand.vmem [shape: f32[2,16,16,8], index: 12, kind: output, shape index: {}]  }
   0x1 LB: > { %s8765_s22 = sadd.s32 4294967295, %s11451_s21   ;;  %p8769_p0 = scmp.ge.s32.totalorder %s11451_s21, 1  ;;  %s11451_s21 = sphi %s11520_s21, %s22_s21  }
   0x2   : > { %p362_p1 = scmp.lt.s32.totalorder %s11451_s21, 3 }
   0x4   : > { %p363_p2 = pnand %p8769_p0, %p362_p1 }
   0x6   : > { %366 = sbr.rel (%p363_p2) target bundleno = 1721 (0x6b9), region = 68 }
   0xb   : > { %p11530_p3 = scmp.lt.s32.totalorder %s8765_s22, 1  ;;  %vm571_vm0 = vcmask 261120   ;;  %v11537_v0 = vld [vmem:[%s14560_s1 + $0x8] sm:$0xff]  ;;  %v11453_v1 = vmov 0.0   ;;  %v563_v2 = vld [vmem:[%s14561_s2 + $0x18] sm:$0xff]  ;;  %v446_v35 = vld [vmem:[%s14560_s1] sm:$0xff] }
   0xc   : > { %1138 = vst.msk [vmem:[#allocation2 + $0x210] sm:$0xff] %vm571_vm0, %v11453_v1  ;;  %1072 = vst.msk [vmem:[#allocation2] sm:$0xff] %vm571_vm0, %v11453_v1  ;;  %524 = vmatprep.mubr.f32.mxu0 %v11537_v0  ;;  %10278 = vmatprep.subr.mxu1 %v11453_v1  ;;  %v449_v36 = vld [vmem:[%s14560_s1 + $0x18] sm:$0xff]  ;;  %v448_v37 = vld [vmem:[%s14560_s1 + $0x10] sm:$0xff]  ;;  %vm11454_vm1 = vmmov 0   ;;  %vm746_vm2 = vcmask 408576  }
   0xd   : > { %1073 = vst.msk [vmem:[#allocation2 + $0x8] sm:$0xff] %vm571_vm0, %v11453_v1  ;;  %1074 = vst.msk [vmem:[#allocation2 + $0x10] sm:$0xff] %vm571_vm0, %v11453_v1  ;;  %s14692_s22 = smov (!%p11530_p3, %s8765_s22), 1  ;;  %10279 = vmatpush3.msra.mxu1 %v563_v2  ;;  %v451_v38 = vld [vmem:[%s14560_s1 + $0x28] sm:$0xff]  ;;  %v450_v39 = vld [vmem:[%s14560_s1 + $0x20] sm:$0xff]  ;;  %10286 = vmatprep.mubr.msk.f32.mxu1 %vm11454_vm1, %v11453_v1  ;;  %vm843_vm3 = vcmask 1041408  }
   0xe   : > { %1075 = vst.msk [vmem:[#allocation2 + $0x18] sm:$0xff] %vm571_vm0, %v11453_v1  ;;  %1076 = vst.msk [vmem:[#allocation2 + $0x20] sm:$0xff] %vm571_vm0, %v11453_v1  ;;  %s9492_s26 = sshll.u32 %s14692_s22, 8  ;;  %10280 = vmatprep.subr.mxu1 %v11453_v1  ;;  %v453_v40 = vld [vmem:[%s14560_s1 + $0x38] sm:$0xff]  ;;  %v452_v41 = vld [vmem:[%s14560_s1 + $0x30] sm:$0xff]  ;;  %vm8356_vm4 = vcmask 64512  }
   0xf   : > { %1077 = vst.msk [vmem:[#allocation2 + $0x28] sm:$0xff] %vm571_vm0, %v11453_v1  ;;  %1078 = vst.msk [vmem:[#allocation2 + $0x30] sm:$0xff] %vm571_vm0, %v11453_v1  ;;  %s11844_s13 = scalar_lea.vmem %s14559_s0, %s9492_s26  ;;  %v455_v42 = vld [vmem:[%s14560_s1 + $0x48] sm:$0xff]  ;;  %v454_v43 = vld [vmem:[%s14560_s1 + $0x40] sm:$0xff]  ;;  %s14458_s28 = scalar_lea.vmem %s14571_s12, %s9492_s26 }
  0x10   : > { %1079 = vst.msk [vmem:[#allocation2 + $0x38] sm:$0xff] %vm571_vm0, %v11453_v1  ;;  %1080 = vst.msk [vmem:[#allocation2 + $0x40] sm:$0xff] %vm571_vm0, %v11453_v1  ;;  %v445_v3 = vld [vmem:[%s11844_s13 + $0xf8] sm:$0xff]  ;;  %v444_v5 = vld [vmem:[%s11844_s13 + $0xf0] sm:$0xff] }
  0x11   : > { %1081 = vst.msk [vmem:[#allocation2 + $0x48] sm:$0xff] %vm571_vm0, %v11453_v1  ;;  %1082 = vst.msk [vmem:[#allocation2 + $0x50] sm:$0xff] %vm571_vm0, %v11453_v1  ;;  %v429_v4 = vld [vmem:[%s11844_s13 + $0x78] sm:$0xff]  ;;  %9494 = vmatprep.subr.mxu0 %v445_v3  ;;  %v428_v6 = vld [vmem:[%s11844_s13 + $0x70] sm:$0xff] }
  0x12   : > { %1083 = vst.msk [vmem:[#allocation2 + $0x58] sm:$0xff] %vm571_vm0, %v11453_v1  ;;  %1084 = vst.msk [vmem:[#allocation2 + $0x60] sm:$0xff] %vm571_vm0, %v11453_v1  ;;  %v443_v7 = vld [vmem:[%s11844_s13 + $0xe8] sm:$0xff]  ;;  %9495 = vmatpush3.msra.mxu0 %v429_v4  ;;  %v442_v9 = vld [vmem:[%s11844_s13 + $0xe0] sm:$0xff] }
  0x13   : > { %1085 = vst.msk [vmem:[#allocation2 + $0x68] sm:$0xff] %vm571_vm0, %v11453_v1  ;;  %1086 = vst.msk [vmem:[#allocation2 + $0x70] sm:$0xff] %vm571_vm0, %v11453_v1  ;;  %v427_v8 = vld [vmem:[%s11844_s13 + $0x68] sm:$0xff]  ;;  %v426_v10 = vld [vmem:[%s11844_s13 + $0x60] sm:$0xff]  ;;  %9496 = vmatprep.subr.mxu0 %v444_v5 }
  0x14   : > { %1087 = vst.msk [vmem:[#allocation2 + $0x78] sm:$0xff] %vm571_vm0, %v11453_v1  ;;  %1088 = vst.msk [vmem:[#allocation2 + $0x80] sm:$0xff] %vm571_vm0, %v11453_v1  ;;  %v441_v11 = vld [vmem:[%s11844_s13 + $0xd8] sm:$0xff]  ;;  %v440_v13 = vld [vmem:[%s11844_s13 + $0xd0] sm:$0xff]  ;;  %9497 = vmatpush3.msra.mxu0 %v428_v6 }
  0x15   : > { %1089 = vst.msk [vmem:[#allocation2 + $0x88] sm:$0xff] %vm571_vm0, %v11453_v1  ;;  %1090 = vst.msk [vmem:[#allocation2 + $0x90] sm:$0xff] %vm571_vm0, %v11453_v1  ;;  %v425_v12 = vld [vmem:[%s11844_s13 + $0x58] sm:$0xff]  ;;  %v424_v14 = vld [vmem:[%s11844_s13 + $0x50] sm:$0xff]  ;;  %9498 = vmatprep.subr.mxu0 %v443_v7 }
  0x16   : > { %1091 = vst.msk [vmem:[#allocation2 + $0x98] sm:$0xff] %vm571_vm0, %v11453_v1  ;;  %1092 = vst.msk [vmem:[#allocation2 + $0xa0] sm:$0xff] %vm571_vm0, %v11453_v1  ;;  %v439_v15 = vld [vmem:[%s11844_s13 + $0xc8] sm:$0xff]  ;;  %v438_v17 = vld [vmem:[%s11844_s13 + $0xc0] sm:$0xff]  ;;  %9499 = vmatpush3.msra.mxu0 %v427_v8 }
  0x17   : > { %1093 = vst.msk [vmem:[#allocation2 + $0xa8] sm:$0xff] %vm571_vm0, %v11453_v1  ;;  %1094 = vst.msk [vmem:[#allocation2 + $0xb0] sm:$0xff] %vm571_vm0, %v11453_v1  ;;  %v423_v16 = vld [vmem:[%s11844_s13 + $0x48] sm:$0xff]  ;;  %v422_v18 = vld [vmem:[%s11844_s13 + $0x40] sm:$0xff]  ;;  %9500 = vmatprep.subr.mxu0 %v442_v9 }
  0x18   : > { %1095 = vst.msk [vmem:[#allocation2 + $0xb8] sm:$0xff] %vm571_vm0, %v11453_v1  ;;  %1096 = vst.msk [vmem:[#allocation2 + $0xc0] sm:$0xff] %vm571_vm0, %v11453_v1  ;;  %v437_v19 = vld [vmem:[%s11844_s13 + $0xb8] sm:$0xff]  ;;  %v436_v21 = vld [vmem:[%s11844_s13 + $0xb0] sm:$0xff]  ;;  %9501 = vmatpush3.msra.mxu0 %v426_v10 }
  0x19   : > { %1097 = vst.msk [vmem:[#allocation2 + $0xc8] sm:$0xff] %vm571_vm0, %v11453_v1  ;;  %1098 = vst.msk [vmem:[#allocation2 + $0xd0] sm:$0xff] %vm571_vm0, %v11453_v1  ;;  %v421_v20 = vld [vmem:[%s11844_s13 + $0x38] sm:$0xff]  ;;  %v420_v22 = vld [vmem:[%s11844_s13 + $0x30] sm:$0xff]  ;;  %9502 = vmatprep.subr.mxu0 %v441_v11 }
  0x1a   : > { %1099 = vst.msk [vmem:[#allocation2 + $0xd8] sm:$0xff] %vm571_vm0, %v11453_v1  ;;  %1100 = vst.msk [vmem:[#allocation2 + $0xe0] sm:$0xff] %vm571_vm0, %v11453_v1  ;;  %v435_v23 = vld [vmem:[%s11844_s13 + $0xa8] sm:$0xff]  ;;  %v434_v25 = vld [vmem:[%s11844_s13 + $0xa0] sm:$0xff]  ;;  %9503 = vmatpush3.msra.mxu0 %v425_v12 }
  0x1b   : > { %1101 = vst.msk [vmem:[#allocation2 + $0xe8] sm:$0xff] %vm571_vm0, %v11453_v1  ;;  %1102 = vst.msk [vmem:[#allocation2 + $0xf0] sm:$0xff] %vm571_vm0, %v11453_v1  ;;  %v419_v24 = vld [vmem:[%s11844_s13 + $0x28] sm:$0xff]  ;;  %v418_v26 = vld [vmem:[%s11844_s13 + $0x20] sm:$0xff]  ;;  %9504 = vmatprep.subr.mxu0 %v440_v13 }
  0x1c   : > { %1103 = vst.msk [vmem:[#allocation2 + $0xf8] sm:$0xff] %vm571_vm0, %v11453_v1  ;;  %1104 = vst.msk [vmem:[#allocation2 + $0x100] sm:$0xff] %vm571_vm0, %v11453_v1  ;;  %v433_v27 = vld [vmem:[%s11844_s13 + $0x98] sm:$0xff]  ;;  %v432_v29 = vld [vmem:[%s11844_s13 + $0x90] sm:$0xff]  ;;  %9505 = vmatpush3.msra.mxu0 %v424_v14 }
  0x1d   : > { %1105 = vst.msk [vmem:[#allocation2 + $0x108] sm:$0xff] %vm571_vm0, %v11453_v1  ;;  %1106 = vst.msk [vmem:[#allocation2 + $0x110] sm:$0xff] %vm571_vm0, %v11453_v1  ;;  %v417_v28 = vld [vmem:[%s11844_s13 + $0x18] sm:$0xff]  ;;  %v416_v30 = vld [vmem:[%s11844_s13 + $0x10] sm:$0xff]  ;;  %9506 = vmatprep.subr.mxu0 %v439_v15 }
  0x1e   : > { %1107 = vst.msk [vmem:[#allocation2 + $0x118] sm:$0xff] %vm571_vm0, %v11453_v1  ;;  %1108 = vst.msk [vmem:[#allocation2 + $0x120] sm:$0xff] %vm571_vm0, %v11453_v1  ;;  %v431_v31 = vld [vmem:[%s11844_s13 + $0x88] sm:$0xff]  ;;  %v430_v33 = vld [vmem:[%s11844_s13 + $0x80] sm:$0xff]  ;;  %9507 = vmatpush3.msra.mxu0 %v423_v16 }
  0x1f   : > { %1109 = vst.msk [vmem:[#allocation2 + $0x128] sm:$0xff] %vm571_vm0, %v11453_v1  ;;  %1110 = vst.msk [vmem:[#allocation2 + $0x130] sm:$0xff] %vm571_vm0, %v11453_v1  ;;  %v415_v32 = vld [vmem:[%s11844_s13 + $0x8] sm:$0xff]  ;;  %v414_v34 = vld [vmem:[%s11844_s13] sm:$0xff]  ;;  %9508 = vmatprep.subr.mxu0 %v438_v17 }
  0x20   : > { %1111 = vst.msk [vmem:[#allocation2 + $0x138] sm:$0xff] %vm571_vm0, %v11453_v1  ;;  %1112 = vst.msk [vmem:[#allocation2 + $0x140] sm:$0xff] %vm571_vm0, %v11453_v1  ;;  %9509 = vmatpush3.msra.mxu0 %v422_v18  ;;  %v457_v44 = vld [vmem:[%s14560_s1 + $0x58] sm:$0xff]  ;;  %v456_v45 = vld [vmem:[%s14560_s1 + $0x50] sm:$0xff] }
  0x21   : > { %1113 = vst.msk [vmem:[#allocation2 + $0x148] sm:$0xff] %vm571_vm0, %v11453_v1  ;;  %1114 = vst.msk [vmem:[#allocation2 + $0x150] sm:$0xff] %vm571_vm0, %v11453_v1  ;;  %9510 = vmatprep.subr.mxu0 %v437_v19  ;;  %v459_v46 = vld [vmem:[%s14560_s1 + $0x68] sm:$0x3]  ;;  %v458_v47 = vld [vmem:[%s14560_s1 + $0x60] sm:$0x3] }
  0x22   : > { %1115 = vst.msk [vmem:[#allocation2 + $0x158] sm:$0xff] %vm571_vm0, %v11453_v1  ;;  %1116 = vst.msk [vmem:[#allocation2 + $0x160] sm:$0xff] %vm571_vm0, %v11453_v1  ;;  %9511 = vmatpush3.msra.mxu0 %v421_v20  ;;  %v562_v48 = vld [vmem:[%s14561_s2 + $0x10] sm:$0xff]  ;;  %v561_v49 = vld [vmem:[%s14561_s2 + $0x8] sm:$0xff] }
  0x23   : > { %1117 = vst.msk [vmem:[#allocation2 + $0x168] sm:$0xff] %vm571_vm0, %v11453_v1  ;;  %1118 = vst.msk [vmem:[#allocation2 + $0x170] sm:$0xff] %vm571_vm0, %v11453_v1  ;;  %9512 = vmatprep.subr.mxu0 %v436_v21  ;;  %10281 = vmatpush3.msra.mxu1 %v562_v48  ;;  %v560_v50 = vld [vmem:[%s14561_s2] sm:$0xff] }
  0x24   : > { %1119 = vst.msk [vmem:[#allocation2 + $0x178] sm:$0xff] %vm571_vm0, %v11453_v1  ;;  %1120 = vst.msk [vmem:[#allocation2 + $0x180] sm:$0xff] %vm571_vm0, %v11453_v1  ;;  %9513 = vmatpush3.msra.mxu0 %v420_v22  ;;  %10282 = vmatprep.subr.mxu1 %v11453_v1 }
  0x25   : > { %1121 = vst.msk [vmem:[#allocation2 + $0x188] sm:$0xff] %vm571_vm0, %v11453_v1  ;;  %1122 = vst.msk [vmem:[#allocation2 + $0x190] sm:$0xff] %vm571_vm0, %v11453_v1  ;;  %9514 = vmatprep.subr.mxu0 %v435_v23  ;;  %10283 = vmatpush3.msra.mxu1 %v561_v49  ;;  %v700_v49 = vld [vmem:[%s14563_s4] sm:$0xff] }
  0x26   : > { %1123 = vst.msk [vmem:[#allocation2 + $0x198] sm:$0xff] %vm571_vm0, %v11453_v1  ;;  %1124 = vst.msk [vmem:[#allocation2 + $0x1a0] sm:$0xff] %vm571_vm0, %v11453_v1  ;;  %9515 = vmatpush3.msra.mxu0 %v419_v24  ;;  %10284 = vmatprep.subr.mxu1 %v11453_v1 }
  0x27   : > { %1125 = vst.msk [vmem:[#allocation2 + $0x1a8] sm:$0xff] %vm571_vm0, %v11453_v1  ;;  %1126 = vst.msk [vmem:[#allocation2 + $0x1b0] sm:$0xff] %vm571_vm0, %v11453_v1  ;;  %9516 = vmatprep.subr.mxu0 %v434_v25  ;;  %10285 = vmatpush3.msra.mxu1 %v560_v50 }
  0x28   : > { %1127 = vst.msk [vmem:[#allocation2 + $0x1b8] sm:$0xff] %vm571_vm0, %v11453_v1  ;;  %1128 = vst.msk [vmem:[#allocation2 + $0x1c0] sm:$0xff] %vm571_vm0, %v11453_v1  ;;  %9517 = vmatpush3.msra.mxu0 %v418_v26 }
  0x29   : > { %1129 = vst.msk [vmem:[#allocation2 + $0x1c8] sm:$0xff] %vm571_vm0, %v11453_v1  ;;  %1130 = vst.msk [vmem:[#allocation2 + $0x1d0] sm:$0xff] %vm571_vm0, %v11453_v1  ;;  %9518 = vmatprep.subr.mxu0 %v433_v27 }
  0x2a   : > { %1131 = vst.msk [vmem:[#allocation2 + $0x1d8] sm:$0xff] %vm571_vm0, %v11453_v1  ;;  %1132 = vst.msk [vmem:[#allocation2 + $0x1e0] sm:$0xff] %vm571_vm0, %v11453_v1  ;;  %9519 = vmatpush3.msra.mxu0 %v417_v28 }
  0x2b   : > { %1133 = vst.msk [vmem:[#allocation2 + $0x1e8] sm:$0xff] %vm571_vm0, %v11453_v1  ;;  %1134 = vst.msk [vmem:[#allocation2 + $0x1f0] sm:$0xff] %vm571_vm0, %v11453_v1  ;;  %9520 = vmatprep.subr.mxu0 %v432_v29 }
  0x2c   : > { %1135 = vst.msk [vmem:[#allocation2 + $0x1f8] sm:$0xff] %vm571_vm0, %v11453_v1  ;;  %1136 = vst.msk [vmem:[#allocation2 + $0x200] sm:$0xff] %vm571_vm0, %v11453_v1  ;;  %9521 = vmatpush3.msra.mxu0 %v416_v30 }
  0x2d   : > { %1137 = vst.msk [vmem:[#allocation2 + $0x208] sm:$0xff] %vm571_vm0, %v11453_v1  ;;  %1139 = vst.msk [vmem:[#allocation2 + $0x218] sm:$0xff] %vm571_vm0, %v11453_v1  ;;  %9522 = vmatprep.subr.mxu0 %v431_v31 }
  0x2e   : > { %1140 = vst.msk [vmem:[#allocation2 + $0x220] sm:$0xff] %vm571_vm0, %v11453_v1  ;;  %1141 = vst.msk [vmem:[#allocation2 + $0x228] sm:$0xff] %vm571_vm0, %v11453_v1  ;;  %9523 = vmatpush3.msra.mxu0 %v415_v32 }
  0x2f   : > { %1142 = vst.msk [vmem:[#allocation2 + $0x230] sm:$0xff] %vm571_vm0, %v11453_v1  ;;  %1143 = vst.msk [vmem:[#allocation2 + $0x238] sm:$0xff] %vm571_vm0, %v11453_v1  ;;  %9524 = vmatprep.subr.mxu0 %v430_v33 }
  0x30   : > { %1144 = vst.msk [vmem:[#allocation3] sm:$0xff] %vm571_vm0, %v11453_v1  ;;  %1145 = vst.msk [vmem:[#allocation3 + $0x8] sm:$0xff] %vm571_vm0, %v11453_v1  ;;  %9525 = vmatpush3.msra.mxu0 %v414_v34 }
  0x31   : > { %1146 = vst.msk [vmem:[#allocation3 + $0x10] sm:$0xff] %vm571_vm0, %v11453_v1  ;;  %1147 = vst.msk [vmem:[#allocation3 + $0x18] sm:$0xff] %vm571_vm0, %v11453_v1  ;;  %525 = vmatmul.mubr.f32.vlgmr.msra.gmra.mxu0 %v446_v35  ;;  %v704_v35 = vld [vmem:[%s14563_s4 + $0x20] sm:$0xff] }
  0x32   : > { %1148 = vst.msk [vmem:[#allocation3 + $0x20] sm:$0xff] %vm571_vm0, %v11453_v1  ;;  %1149 = vst.msk [vmem:[#allocation3 + $0x28] sm:$0xff] %vm571_vm0, %v11453_v1  ;;  %529 = vmatprep.mubr.f32.mxu0 %v449_v36 }
  0x33   : > { %1150 = vst.msk [vmem:[#allocation3 + $0x30] sm:$0xff] %vm571_vm0, %v11453_v1  ;;  %1151 = vst.msk [vmem:[#allocation3 + $0x38] sm:$0xff] %vm571_vm0, %v11453_v1 }
  0x34   : > { %1152 = vst.msk [vmem:[#allocation3 + $0x40] sm:$0xff] %vm571_vm0, %v11453_v1  ;;  %1153 = vst.msk [vmem:[#allocation3 + $0x48] sm:$0xff] %vm571_vm0, %v11453_v1 }
  0x35   : > { %1154 = vst.msk [vmem:[#allocation3 + $0x50] sm:$0xff] %vm571_vm0, %v11453_v1  ;;  %1155 = vst.msk [vmem:[#allocation3 + $0x58] sm:$0xff] %vm571_vm0, %v11453_v1  ;;  %530 = vmatmul.mubr.f32.gmra.mxu0 %v448_v37 }
  0x36   : > { %1156 = vst.msk [vmem:[#allocation3 + $0x60] sm:$0xff] %vm571_vm0, %v11453_v1  ;;  %1157 = vst.msk [vmem:[#allocation3 + $0x68] sm:$0xff] %vm571_vm0, %v11453_v1  ;;  %534 = vmatprep.mubr.f32.mxu0 %v451_v38 }
  0x37   : > { %1158 = vst.msk [vmem:[#allocation3 + $0x70] sm:$0xff] %vm571_vm0, %v11453_v1  ;;  %1159 = vst.msk [vmem:[#allocation3 + $0x78] sm:$0xff] %vm571_vm0, %v11453_v1 }
  0x38   : > { %1160 = vst.msk [vmem:[#allocation3 + $0x80] sm:$0xff] %vm571_vm0, %v11453_v1  ;;  %1161 = vst.msk [vmem:[#allocation3 + $0x88] sm:$0xff] %vm571_vm0, %v11453_v1 }
  0x39   : > { %1162 = vst.msk [vmem:[#allocation3 + $0x90] sm:$0xff] %vm571_vm0, %v11453_v1  ;;  %1163 = vst.msk [vmem:[#allocation3 + $0x98] sm:$0xff] %vm571_vm0, %v11453_v1  ;;  %535 = vmatmul.mubr.f32.gmra.mxu0 %v450_v39  ;;  %v703_v39 = vld [vmem:[%s14563_s4 + $0x18] sm:$0xff] }
  0x3a   : > { %1164 = vst.msk [vmem:[#allocation3 + $0xa0] sm:$0xff] %vm571_vm0, %v11453_v1  ;;  %1165 = vst.msk [vmem:[#allocation3 + $0xa8] sm:$0xff] %vm571_vm0, %v11453_v1  ;;  %539 = vmatprep.mubr.f32.mxu0 %v453_v40 }
  0x3b   : > { %1166 = vst.msk [vmem:[#allocation3 + $0xb0] sm:$0xff] %vm571_vm0, %v11453_v1  ;;  %1167 = vst.msk [vmem:[#allocation3 + $0xb8] sm:$0xff] %vm571_vm0, %v11453_v1 }
  0x3c   : > { %1168 = vst.msk [vmem:[#allocation3 + $0xc0] sm:$0xff] %vm571_vm0, %v11453_v1  ;;  %1169 = vst.msk [vmem:[#allocation3 + $0xc8] sm:$0xff] %vm571_vm0, %v11453_v1 }
  0x3d   : > { %1170 = vst.msk [vmem:[#allocation3 + $0xd0] sm:$0xff] %vm571_vm0, %v11453_v1  ;;  %1171 = vst.msk [vmem:[#allocation3 + $0xd8] sm:$0xff] %vm571_vm0, %v11453_v1  ;;  %540 = vmatmul.mubr.f32.gmra.mxu0 %v452_v41 }
  0x3e   : > { %1172 = vst.msk [vmem:[#allocation3 + $0xe0] sm:$0xff] %vm571_vm0, %v11453_v1  ;;  %1173 = vst.msk [vmem:[#allocation3 + $0xe8] sm:$0xff] %vm571_vm0, %v11453_v1  ;;  %544 = vmatprep.mubr.f32.mxu0 %v455_v42 }
  0x3f   : > { %1174 = vst.msk [vmem:[#allocation3 + $0xf0] sm:$0xff] %vm571_vm0, %v11453_v1  ;;  %1175 = vst.msk [vmem:[#allocation3 + $0xf8] sm:$0xff] %vm571_vm0, %v11453_v1 }
  0x40   : > { %1176 = vst.msk [vmem:[#allocation3 + $0x100] sm:$0xff] %vm571_vm0, %v11453_v1  ;;  %1177 = vst.msk [vmem:[#allocation3 + $0x108] sm:$0xff] %vm571_vm0, %v11453_v1 }
  0x41   : > { %1178 = vst.msk [vmem:[#allocation3 + $0x110] sm:$0xff] %vm571_vm0, %v11453_v1  ;;  %1179 = vst.msk [vmem:[#allocation3 + $0x118] sm:$0xff] %vm571_vm0, %v11453_v1  ;;  %545 = vmatmul.mubr.f32.gmra.mxu0 %v454_v43  ;;  %v702_v43 = vld [vmem:[%s14563_s4 + $0x10] sm:$0xff] }
  0x42   : > { %1180 = vst.msk [vmem:[#allocation3 + $0x120] sm:$0xff] %vm571_vm0, %v11453_v1  ;;  %1181 = vst.msk [vmem:[#allocation3 + $0x128] sm:$0xff] %vm571_vm0, %v11453_v1  ;;  %549 = vmatprep.mubr.f32.mxu0 %v457_v44 }
  0x43   : > { %1182 = vst.msk [vmem:[#allocation3 + $0x130] sm:$0xff] %vm571_vm0, %v11453_v1  ;;  %1183 = vst.msk [vmem:[#allocation3 + $0x138] sm:$0xff] %vm571_vm0, %v11453_v1 }
  0x44   : > { %1184 = vst.msk [vmem:[#allocation3 + $0x140] sm:$0xff] %vm571_vm0, %v11453_v1  ;;  %1185 = vst.msk [vmem:[#allocation3 + $0x148] sm:$0xff] %vm571_vm0, %v11453_v1 }
  0x45   : > { %1186 = vst.msk [vmem:[#allocation3 + $0x150] sm:$0xff] %vm571_vm0, %v11453_v1  ;;  %1187 = vst.msk [vmem:[#allocation3 + $0x158] sm:$0xff] %vm571_vm0, %v11453_v1  ;;  %550 = vmatmul.mubr.f32.gmra.mxu0 %v456_v45 }
  0x46   : > { %1188 = vst.msk [vmem:[#allocation3 + $0x160] sm:$0xff] %vm571_vm0, %v11453_v1  ;;  %1189 = vst.msk [vmem:[#allocation3 + $0x168] sm:$0xff] %vm571_vm0, %v11453_v1  ;;  %554 = vmatprep.mubr.f32.mxu0 %v459_v46  ;;  %v701_v46 = vld [vmem:[%s14563_s4 + $0x8] sm:$0xff] }
  0x47   : > { %1190 = vst.msk [vmem:[#allocation3 + $0x170] sm:$0xff] %vm571_vm0, %v11453_v1  ;;  %1191 = vst.msk [vmem:[#allocation3 + $0x178] sm:$0xff] %vm571_vm0, %v11453_v1 }
  0x48   : > { %1192 = vst.msk [vmem:[#allocation3 + $0x180] sm:$0xff] %vm571_vm0, %v11453_v1  ;;  %1193 = vst.msk [vmem:[#allocation3 + $0x188] sm:$0xff] %vm571_vm0, %v11453_v1 }
  0x49   : > { %1194 = vst.msk [vmem:[#allocation3 + $0x190] sm:$0xff] %vm571_vm0, %v11453_v1  ;;  %1195 = vst.msk [vmem:[#allocation3 + $0x198] sm:$0xff] %vm571_vm0, %v11453_v1  ;;  %555 = vmatmul.mubr.f32.gmra.mxu0 %v458_v47 }
  0x4a   : > { %1196 = vst.msk [vmem:[#allocation3 + $0x1a0] sm:$0xff] %vm571_vm0, %v11453_v1  ;;  %1197 = vst.msk [vmem:[#allocation3 + $0x1a8] sm:$0xff] %vm571_vm0, %v11453_v1 }
  0x4b   : > { %1198 = vst.msk [vmem:[#allocation3 + $0x1b0] sm:$0xff] %vm571_vm0, %v11453_v1  ;;  %1199 = vst.msk [vmem:[#allocation3 + $0x1b8] sm:$0xff] %vm571_vm0, %v11453_v1 }
  0x4c   : > { %1200 = vst.msk [vmem:[#allocation3 + $0x1c0] sm:$0xff] %vm571_vm0, %v11453_v1  ;;  %1201 = vst.msk [vmem:[#allocation3 + $0x1c8] sm:$0xff] %vm571_vm0, %v11453_v1 }
  0x4d   : > { %1202 = vst.msk [vmem:[#allocation3 + $0x1d0] sm:$0xff] %vm571_vm0, %v11453_v1  ;;  %1203 = vst.msk [vmem:[#allocation3 + $0x1d8] sm:$0xff] %vm571_vm0, %v11453_v1 }
  0x4e   : > { %1204 = vst.msk [vmem:[#allocation3 + $0x1e0] sm:$0xff] %vm571_vm0, %v11453_v1  ;;  %1205 = vst.msk [vmem:[#allocation3 + $0x1e8] sm:$0xff] %vm571_vm0, %v11453_v1 }
  0x4f   : > { %1206 = vst.msk [vmem:[#allocation3 + $0x1f0] sm:$0xff] %vm571_vm0, %v11453_v1  ;;  %1207 = vst.msk [vmem:[#allocation3 + $0x1f8] sm:$0xff] %vm571_vm0, %v11453_v1 }
  0x50   : > { %1208 = vst.msk [vmem:[#allocation3 + $0x200] sm:$0xff] %vm571_vm0, %v11453_v1  ;;  %1209 = vst.msk [vmem:[#allocation3 + $0x208] sm:$0xff] %vm571_vm0, %v11453_v1 }
  0x51   : > { %1210 = vst.msk [vmem:[#allocation3 + $0x210] sm:$0xff] %vm571_vm0, %v11453_v1  ;;  %1211 = vst.msk [vmem:[#allocation3 + $0x218] sm:$0xff] %vm571_vm0, %v11453_v1 }
  0x52   : > { %1212 = vst.msk [vmem:[#allocation3 + $0x220] sm:$0xff] %vm571_vm0, %v11453_v1  ;;  %1213 = vst.msk [vmem:[#allocation3 + $0x228] sm:$0xff] %vm571_vm0, %v11453_v1 }
  0x53   : > { %1214 = vst.msk [vmem:[#allocation3 + $0x230] sm:$0xff] %vm571_vm0, %v11453_v1  ;;  %1215 = vst.msk [vmem:[#allocation3 + $0x238] sm:$0xff] %vm571_vm0, %v11453_v1 }
  0x54   : > { %1248 = vst.msk [vmem:[#allocation2 + $0x210] sm:$0xff] %vm571_vm0, %v445_v3  ;;  %1232 = vst.msk [vmem:[#allocation2 + $0x110] sm:$0xff] %vm571_vm0, %v429_v4 }
  0x55   : > { %1247 = vst.msk [vmem:[#allocation2 + $0x208] sm:$0xff] %vm571_vm0, %v444_v5  ;;  %1231 = vst.msk [vmem:[#allocation2 + $0x108] sm:$0xff] %vm571_vm0, %v428_v6 }
  0x56   : > { %1246 = vst.msk [vmem:[#allocation2 + $0x1f0] sm:$0xff] %vm571_vm0, %v443_v7  ;;  %1230 = vst.msk [vmem:[#allocation2 + $0xf0] sm:$0xff] %vm571_vm0, %v427_v8 }
  0x57   : > { %1245 = vst.msk [vmem:[#allocation2 + $0x1e8] sm:$0xff] %vm571_vm0, %v442_v9  ;;  %1229 = vst.msk [vmem:[#allocation2 + $0xe8] sm:$0xff] %vm571_vm0, %v426_v10  ;;  %v714_v9 = vld [vmem:[%s14564_s5] sm:$0xff] }
  0x58   : > { %1244 = vst.msk [vmem:[#allocation2 + $0x1d0] sm:$0xff] %vm571_vm0, %v441_v11  ;;  %1228 = vst.msk [vmem:[#allocation2 + $0xd0] sm:$0xff] %vm571_vm0, %v425_v12 }
  0x59   : > { %1243 = vst.msk [vmem:[#allocation2 + $0x1c8] sm:$0xff] %vm571_vm0, %v440_v13  ;;  %1227 = vst.msk [vmem:[#allocation2 + $0xc8] sm:$0xff] %vm571_vm0, %v424_v14 }
  0x5a   : > { %1242 = vst.msk [vmem:[#allocation2 + $0x1b0] sm:$0xff] %vm571_vm0, %v439_v15  ;;  %1226 = vst.msk [vmem:[#allocation2 + $0xb0] sm:$0xff] %vm571_vm0, %v423_v16 }
  0x5b   : > { %1241 = vst.msk [vmem:[#allocation2 + $0x1a8] sm:$0xff] %vm571_vm0, %v438_v17  ;;  %1225 = vst.msk [vmem:[#allocation2 + $0xa8] sm:$0xff] %vm571_vm0, %v422_v18 }
  0x5c   : > { %1240 = vst.msk [vmem:[#allocation2 + $0x190] sm:$0xff] %vm571_vm0, %v437_v19  ;;  %1224 = vst.msk [vmem:[#allocation2 + $0x90] sm:$0xff] %vm571_vm0, %v421_v20  ;;  %v8774_v20 = vld [vmem:[%s14562_s3] ss:$0 sm:$0xff] }
  0x5d   : > { %1239 = vst.msk [vmem:[#allocation2 + $0x188] sm:$0xff] %vm571_vm0, %v436_v21  ;;  %1223 = vst.msk [vmem:[#allocation2 + $0x88] sm:$0xff] %vm571_vm0, %v420_v22 }
  0x5e   : > { %1238 = vst.msk [vmem:[#allocation2 + $0x170] sm:$0xff] %vm571_vm0, %v435_v23  ;;  %1222 = vst.msk [vmem:[#allocation2 + $0x70] sm:$0xff] %vm571_vm0, %v419_v24 }
  0x5f   : > { %1237 = vst.msk [vmem:[#allocation2 + $0x168] sm:$0xff] %vm571_vm0, %v434_v25  ;;  %1221 = vst.msk [vmem:[#allocation2 + $0x68] sm:$0xff] %vm571_vm0, %v418_v26  ;;  %v706_v26 = vld [vmem:[%s14563_s4 + $0x30] sm:$0x3] }
  0x60   : > { %1236 = vst.msk [vmem:[#allocation2 + $0x150] sm:$0xff] %vm571_vm0, %v433_v27  ;;  %1220 = vst.msk [vmem:[#allocation2 + $0x50] sm:$0xff] %vm571_vm0, %v417_v28 }
  0x61   : > { %1235 = vst.msk [vmem:[#allocation2 + $0x148] sm:$0xff] %vm571_vm0, %v432_v29  ;;  %1219 = vst.msk [vmem:[#allocation2 + $0x48] sm:$0xff] %vm571_vm0, %v416_v30 }
  0x62   : > { %1234 = vst.msk [vmem:[#allocation2 + $0x130] sm:$0xff] %vm571_vm0, %v431_v31  ;;  %1218 = vst.msk [vmem:[#allocation2 + $0x30] sm:$0xff] %vm571_vm0, %v415_v32  ;;  %v705_v31 = vld [vmem:[%s14563_s4 + $0x28] sm:$0xff] }
  0x63   : > { %1233 = vst.msk [vmem:[#allocation2 + $0x128] sm:$0xff] %vm571_vm0, %v430_v33  ;;  %1217 = vst.msk [vmem:[#allocation2 + $0x28] sm:$0xff] %vm571_vm0, %v414_v34 }
  0xf1   : > { %v9526_v51 = vpop.f32.mrf.mxu0 }
  0xf3   : > { %v9527_v52 = vpop.f32.mrf.mxu0 }
  0xf4   : > { %v9528_v53 = vadd.f32 %v9527_v52, %v9526_v51  ;;  %v715_v52 = vld [vmem:[%s14564_s5 + $0x8] sm:$0xff] }
  0xf5   : > { %v9529_v54 = vpop.f32.mrf.mxu0 }
  0xf6   : > { %10287 = vmatmul.mubr.msk.f32.vlgmr.msra.gmra.mxu1 %vm571_vm0, %v9528_v53  ;;  %v716_v53 = vld [vmem:[%s14564_s5 + $0x10] sm:$0xff] }
  0xf7   : > { %v9530_v55 = vpop.f32.mrf.mxu0  ;;  %10289 = vmatprep.mubr.msk.f32.mxu1 %vm11454_vm1, %v11453_v1 }
  0xf8   : > { %v9531_v56 = vadd.f32 %v9530_v55, %v9529_v54  ;;  %v717_v54 = vld [vmem:[%s14564_s5 + $0x18] sm:$0xff]  ;;  %v718_v55 = vld [vmem:[%s14564_s5 + $0x20] sm:$0xff] }
  0xf9   : > { %v9532_v57 = vpop.f32.mrf.mxu0 }
  0xfa   : > { %10290 = vmatmul.mubr.msk.f32.gmra.mxu1 %vm571_vm0, %v9531_v56  ;;  %v719_v56 = vld [vmem:[%s14564_s5 + $0x28] sm:$0xff] }
  0xfb   : > { %v9533_v58 = vpop.f32.mrf.mxu0  ;;  %10292 = vmatprep.mubr.msk.f32.mxu1 %vm11454_vm1, %v11453_v1 }
  0xfc   : > { %v9534_v59 = vadd.f32 %v9533_v58, %v9532_v57  ;;  %v720_v57 = vld [vmem:[%s14564_s5 + $0x30] sm:$0xff]  ;;  %v721_v58 = vld [vmem:[%s14564_s5 + $0x38] sm:$0xff] }
  0xfd   : > { %v9535_v60 = vpop.f32.mrf.mxu0 }
  0xfe   : > { %10293 = vmatmul.mubr.msk.f32.gmra.mxu1 %vm571_vm0, %v9534_v59  ;;  %v722_v59 = vld [vmem:[%s14564_s5 + $0x40] sm:$0xff] }
  0xff   : > { %v9536_v61 = vpop.f32.mrf.mxu0  ;;  %10295 = vmatprep.mubr.msk.f32.mxu1 %vm11454_vm1, %v11453_v1 }
 0x100   : > { %v9537_v62 = vadd.f32 %v9536_v61, %v9535_v60  ;;  %v723_v60 = vld [vmem:[%s14564_s5 + $0x48] sm:$0xff]  ;;  %v724_v61 = vld [vmem:[%s14564_s5 + $0x50] sm:$0xff] }
 0x101   : > { %v9538_v63 = vpop.f32.mrf.mxu0 }
 0x102   : > { %10296 = vmatmul.mubr.msk.f32.gmra.mxu1 %vm571_vm0, %v9537_v62  ;;  %v725_v62 = vld [vmem:[%s14564_s5 + $0x58] sm:$0xff] }
 0x103   : > { %v9539_v0 = vpop.f32.mrf.mxu0  ;;  %10298 = vmatprep.mubr.msk.f32.mxu1 %vm11454_vm1, %v11453_v1 }
 0x104   : > { %v9540_v2 = vadd.f32 %v9539_v0, %v9538_v63  ;;  %v726_v63 = vld [vmem:[%s14564_s5 + $0x60] sm:$0xff]  ;;  %v727_v0 = vld [vmem:[%s14564_s5 + $0x68] sm:$0xff] }
 0x105   : > { %v9541_v3 = vpop.f32.mrf.mxu0 }
 0x106   : > { %10299 = vmatmul.mubr.msk.f32.gmra.mxu1 %vm571_vm0, %v9540_v2  ;;  %v728_v2 = vld [vmem:[%s14564_s5 + $0x70] sm:$0xff] }
 0x107   : > { %v9542_v4 = vpop.f32.mrf.mxu0  ;;  %10301 = vmatprep.mubr.msk.f32.mxu1 %vm11454_vm1, %v11453_v1 }
 0x108   : > { %v9543_v5 = vadd.f32 %v9542_v4, %v9541_v3  ;;  %v729_v3 = vld [vmem:[%s14564_s5 + $0x78] sm:$0xff]  ;;  %v730_v4 = vld [vmem:[%s14564_s5 + $0x80] sm:$0xff] }
 0x109   : > { %v9544_v6 = vpop.f32.mrf.mxu0 }
 0x10a   : > { %10302 = vmatmul.mubr.msk.f32.gmra.mxu1 %vm571_vm0, %v9543_v5  ;;  %v731_v5 = vld [vmem:[%s14564_s5 + $0x88] sm:$0xff] }
 0x10b   : > { %v9545_v7 = vpop.f32.mrf.mxu0  ;;  %10304 = vmatprep.mubr.msk.f32.mxu1 %vm11454_vm1, %v11453_v1 }
 0x10c   : > { %v9546_v8 = vadd.f32 %v9545_v7, %v9544_v6  ;;  %v732_v6 = vld [vmem:[%s14564_s5 + $0x90] sm:$0xff]  ;;  %v733_v7 = vld [vmem:[%s14564_s5 + $0x98] sm:$0xff] }
 0x10e   : > { %10305 = vmatmul.mubr.msk.f32.gmra.mxu1 %vm571_vm0, %v9546_v8  ;;  %v734_v8 = vld [vmem:[%s14564_s5 + $0xa0] sm:$0xff] }
 0x10f   : > { %10321 = vmatprep.mubr.msk.f32.mxu1 %vm746_vm2, %v714_v9  ;;  %v735_v9 = vld [vmem:[%s14564_s5 + $0xa8] sm:$0xff] }
 0x1b6   : > { %v659_v10 = vpop.f32.mrf.mxu1 }
 0x1b7   : > { %v660_v40 = vadd.f32 %v8774_v20, %v659_v10  ;;  %v736_v10 = vld [vmem:[%s14564_s5 + $0xb0] sm:$0xff] }
 0x1b8   : > { %v10288_v11 = vpop.f32.mrf.mxu1 }
 0x1b9   : > { %v693_v47 = vmax.f32 %v660_v40, 0.0  ;;  %v737_v11 = vld [vmem:[%s14564_s5 + $0xb8] sm:$0xff] }
 0x1ba   : > { %v664_v12 = vpop.f32.mrf.mxu1 }
 0x1bb   : > { %v665_v36 = vadd.f32 %v8774_v20, %v664_v12  ;;  %v707_v51 = vmul.f32 %v700_v49, %v693_v47  ;;  %v738_v12 = vld [vmem:[%s14564_s5 + $0xc0] sm:$0xff] }
 0x1bc   : > { %v10291_v13 = vpop.f32.mrf.mxu1 }
 0x1bd   : > { %v694_v44 = vmax.f32 %v665_v36, 0.0  ;;  %v739_v13 = vld [vmem:[%s14564_s5 + $0xc8] sm:$0xff] }
 0x1be   : > { %v669_v14 = vpop.f32.mrf.mxu1 }
 0x1bf   : > { %v670_v32 = vadd.f32 %v8774_v20, %v669_v14  ;;  %v708_v50 = vmul.f32 %v701_v46, %v694_v44  ;;  %v740_v14 = vld [vmem:[%s14564_s5 + $0xd0] sm:$0xff] }
 0x1c0   : > { %v10294_v15 = vpop.f32.mrf.mxu1 }
 0x1c1   : > { %v695_v41 = vmax.f32 %v670_v32, 0.0  ;;  %v741_v15 = vld [vmem:[%s14564_s5 + $0xd8] sm:$0xff] }
 0x1c2   : > { %v674_v16 = vpop.f32.mrf.mxu1 }
 0x1c3   : > { %v675_v28 = vadd.f32 %v8774_v20, %v674_v16  ;;  %v709_v48 = vmul.f32 %v702_v43, %v695_v41  ;;  %v742_v16 = vld [vmem:[%s14564_s5 + $0xe0] sm:$0xff] }
 0x1c4   : > { %v10297_v17 = vpop.f32.mrf.mxu1 }
 0x1c5   : > { %v696_v37 = vmax.f32 %v675_v28, 0.0  ;;  %v743_v17 = vld [vmem:[%s14564_s5 + $0xe8] sm:$0xff] }
 0x1c6   : > { %v679_v18 = vpop.f32.mrf.mxu1  ;;  %v8880_v28 = vld [vmem:[%s14565_s6 + $0x28] sm:$0xff] }
 0x1c7   : > { %v680_v24 = vadd.f32 %v8774_v20, %v679_v18  ;;  %v710_v45 = vmul.f32 %v703_v39, %v696_v37  ;;  %v1353_v18 = vld [vmem:[%s14566_s7 + $0x18] sm:$0xff] }
 0x1c8   : > { %v10300_v1 = vpop.f32.mrf.mxu1  ;;  %10369 = vmatprep.subr.mxu0 %v1353_v18 }
 0x1c9   : > { %v697_v33 = vmax.f32 %v680_v24, 0.0  ;;  %10370 = vmatpush3.msra.mxu0 %v1353_v18  ;;  %v1352_v1 = vld [vmem:[%s14566_s7 + $0x10] sm:$0xff]  ;;  %v745_v24 = vld [vmem:[%s14564_s5 + $0xf8] sm:$0xff] }
 0x1ca   : > { %v684_v19 = vpop.f32.mrf.mxu1  ;;  %10371 = vmatprep.subr.mxu0 %v1352_v1 }
 0x1cb   : > { %v685_v22 = vadd.f32 %v8774_v20, %v684_v19  ;;  %v711_v42 = vmul.f32 %v704_v35, %v697_v33  ;;  %10372 = vmatpush3.msra.mxu0 %v1352_v1  ;;  %v1351_v19 = vld [vmem:[%s14566_s7 + $0x8] sm:$0xff] }
 0x1cc   : > { %v10303_v21 = vpop.f32.mrf.mxu1  ;;  %10373 = vmatprep.subr.mxu0 %v1351_v19 }
 0x1cd   : > { %v698_v29 = vmax.f32 %v685_v22, 0.0  ;;  %10374 = vmatpush3.msra.mxu0 %v1351_v19  ;;  %v1314_v21 = vld [vmem:[#allocation3 + $0x7] sm:$0xff]  ;;  %v1315_v22 = vld [vmem:[#allocation3 + $0xf] sm:$0xff] }
 0x1ce   : > { %v689_v23 = vpop.f32.mrf.mxu1  ;;  %10377 = vmatprep.mubr.msk.f32.mxu0 %vm571_vm0, %v1314_v21  ;;  %v1997_v21 = vld [vmem:[#allocation2 + $0x10] sm:$0xff] }
 0x1cf   : > { %v690_v25 = vadd.f32 %v8774_v20, %v689_v23  ;;  %v712_v38 = vmul.f32 %v705_v31, %v698_v29  ;;  %v1350_v20 = vld [vmem:[%s14566_s7] sm:$0xff]  ;;  %v744_v23 = vld [vmem:[%s14564_s5 + $0xf0] sm:$0xff]  ;;  %v12169_v31 = vld [vmem:[%s14565_s6 + $0x58] sm:$0xff] }
 0x1d0   : > { %v10306_v27 = vpop.f32.mrf.mxu1  ;;  %10375 = vmatprep.subr.mxu0 %v1350_v20  ;;  %v8879_v29 = vld [vmem:[%s14565_s6 + $0x20] sm:$0xff] }
 0x1d1   : > { %v699_v30 = vmax.f32 %v690_v25, 0.0  ;;  %10376 = vmatpush3.msra.mxu0 %v1350_v20  ;;  %v12151_v25 = vld [vmem:[%s14565_s6 + $0x18] sm:$0xff]  ;;  %v8881_v27 = vld [vmem:[%s14565_s6 + $0x30] sm:$0xff] }
 0x1d2   : > { %10378 = vmatmul.mubr.msk.f32.vlgmr.msra.gmra.mxu0 %vm571_vm0, %v1315_v22 }
 0x1d3   : > { %v713_v34 = vmul.f32 %v706_v26, %v699_v30  ;;  %v8882_v26 = vld [vmem:[%s14565_s6 + $0x38] sm:$0xff] }
 0x1d4   : > { %10481 = vmatprep.subr.mxu0 %v8882_v26 }
 0x1d5   : > { %10307 = vmatprep.subr.msk.mxu1 %vm843_vm3, %v713_v34  ;;  %10482 = vmatpush3.msra.mxu0 %v8882_v26  ;;  %v12226_v26 = vld [vmem:[#allocation2 + $0x28] sm:$0xff] }
 0x1d6   : > { %10308 = vmatpush3.msk.msra.mxu1 %vm843_vm3, %v713_v34  ;;  %10483 = vmatprep.subr.mxu0 %v8881_v27 }
 0x1d7   : > { %10309 = vmatprep.subr.mxu1 %v712_v38  ;;  %10484 = vmatpush3.msra.mxu0 %v8881_v27  ;;  %v1348_v27 = vld [vmem:[%s14565_s6 + $0x10] sm:$0xff] }
 0x1d8   : > { %10310 = vmatpush3.msra.mxu1 %v712_v38  ;;  %10485 = vmatprep.subr.mxu0 %v8880_v28 }
 0x1d9   : > { %10311 = vmatprep.subr.mxu1 %v711_v42  ;;  %10486 = vmatpush3.msra.mxu0 %v8880_v28  ;;  %v1347_v28 = vld [vmem:[%s14565_s6 + $0x8] sm:$0xff] }
 0x1da   : > { %10312 = vmatpush3.msra.mxu1 %v711_v42  ;;  %10487 = vmatprep.subr.mxu0 %v8879_v29 }
 0x1db   : > { %10313 = vmatprep.subr.mxu1 %v710_v45  ;;  %10488 = vmatpush3.msra.mxu0 %v8879_v29 }
 0x1dc   : > { %10314 = vmatpush3.msra.mxu1 %v710_v45  ;;  %10593 = vmatprep.subr.mxu0 %v12169_v31 }
 0x1dd   : > { %10315 = vmatprep.subr.mxu1 %v709_v48 }
 0x1de   : > { %10316 = vmatpush3.msra.mxu1 %v709_v48 }
 0x1df   : > { %10317 = vmatprep.subr.mxu1 %v708_v50 }
 0x1e0   : > { %10318 = vmatpush3.msra.mxu1 %v708_v50 }
 0x1e1   : > { %10319 = vmatprep.subr.mxu1 %v707_v51 }
 0x1e2   : > { %10320 = vmatpush3.msra.mxu1 %v707_v51 }
 0x1e3   : > { %10322 = vmatmul.mubr.msk.f32.vlgmr.msra.gmra.mxu1 %vm746_vm2, %v715_v52  ;;  %11427 = vmatprep.subr.mxu1 %v1353_v18 }
 0x1e4   : > { %10324 = vmatprep.mubr.msk.f32.mxu1 %vm746_vm2, %v716_v53  ;;  %11431 = vmatpush3.msra.mxu1 %v1353_v18 }
 0x1e5   : > { %11428 = vmatprep.subr.mxu1 %v1352_v1 }
 0x1e6   : > { %11432 = vmatpush3.msra.mxu1 %v1352_v1 }
 0x1e7   : > { %10325 = vmatmul.mubr.msk.f32.gmra.mxu1 %vm746_vm2, %v717_v54  ;;  %11429 = vmatprep.subr.mxu1 %v1351_v19 }
 0x1e8   : > { %10327 = vmatprep.mubr.msk.f32.mxu1 %vm746_vm2, %v718_v55  ;;  %11433 = vmatpush3.msra.mxu1 %v1351_v19  ;;  %v1996_v19 = vld [vmem:[#allocation2 + $0x8] sm:$0xff] }
 0x1e9   : > { %11430 = vmatprep.subr.mxu1 %v1350_v20 }
 0x1ea   : > { %11434 = vmatpush3.msra.mxu1 %v1350_v20 }
 0x1eb   : > { %10328 = vmatmul.mubr.msk.f32.gmra.mxu1 %vm746_vm2, %v719_v56  ;;  %10425 = vmatprep.subr.mxu1 %v12151_v25 }
 0x1ec   : > { %10330 = vmatprep.mubr.msk.f32.mxu1 %vm746_vm2, %v720_v57 }
 0x1ef   : > { %10331 = vmatmul.mubr.msk.f32.gmra.mxu1 %vm746_vm2, %v721_v58 }
 0x1f0   : > { %10333 = vmatprep.mubr.msk.f32.mxu1 %vm746_vm2, %v722_v59 }
 0x1f3   : > { %10334 = vmatmul.mubr.msk.f32.gmra.mxu1 %vm746_vm2, %v723_v60 }
 0x1f4   : > { %10336 = vmatprep.mubr.msk.f32.mxu1 %vm746_vm2, %v724_v61 }
 0x1f7   : > { %10337 = vmatmul.mubr.msk.f32.gmra.mxu1 %vm746_vm2, %v725_v62 }
 0x1f8   : > { %10339 = vmatprep.mubr.msk.f32.mxu1 %vm746_vm2, %v726_v63 }
 0x1fb   : > { %10340 = vmatmul.mubr.msk.f32.gmra.mxu1 %vm746_vm2, %v727_v0 }
 0x1fc   : > { %10342 = vmatprep.mubr.msk.f32.mxu1 %vm746_vm2, %v728_v2 }
 0x1ff   : > { %10343 = vmatmul.mubr.msk.f32.gmra.mxu1 %vm746_vm2, %v729_v3 }
 0x200   : > { %10345 = vmatprep.mubr.msk.f32.mxu1 %vm746_vm2, %v730_v4 }
 0x203   : > { %10346 = vmatmul.mubr.msk.f32.gmra.mxu1 %vm746_vm2, %v731_v5 }
 0x204   : > { %10348 = vmatprep.mubr.msk.f32.mxu1 %vm746_vm2, %v732_v6 }
 0x207   : > { %10349 = vmatmul.mubr.msk.f32.gmra.mxu1 %vm746_vm2, %v733_v7 }
 0x208   : > { %10351 = vmatprep.mubr.msk.f32.mxu1 %vm746_vm2, %v734_v8 }
 0x20b   : > { %10352 = vmatmul.mubr.msk.f32.gmra.mxu1 %vm746_vm2, %v735_v9 }
 0x20c   : > { %10354 = vmatprep.mubr.msk.f32.mxu1 %vm746_vm2, %v736_v10 }
 0x20f   : > { %10355 = vmatmul.mubr.msk.f32.gmra.mxu1 %vm746_vm2, %v737_v11 }
 0x210   : > { %10357 = vmatprep.mubr.msk.f32.mxu1 %vm746_vm2, %v738_v12 }
 0x213   : > { %10358 = vmatmul.mubr.msk.f32.gmra.mxu1 %vm746_vm2, %v739_v13 }
 0x214   : > { %10360 = vmatprep.mubr.msk.f32.mxu1 %vm746_vm2, %v740_v14 }
 0x217   : > { %10361 = vmatmul.mubr.msk.f32.gmra.mxu1 %vm746_vm2, %v741_v15 }
 0x218   : > { %10363 = vmatprep.mubr.msk.f32.mxu1 %vm746_vm2, %v742_v16 }
 0x21b   : > { %10364 = vmatmul.mubr.msk.f32.gmra.mxu1 %vm746_vm2, %v743_v17 }
 0x21c   : > { %10366 = vmatprep.mubr.msk.f32.mxu1 %vm746_vm2, %v744_v23 }
 0x21f   : > { %10367 = vmatmul.mubr.msk.f32.gmra.mxu1 %vm746_vm2, %v745_v24 }
 0x2a3   : > { %v10323_v30 = vpop.f32.mrf.mxu1 }
 0x2a4   : > { %1251 = vst.msk [vmem:[#allocation3 + $0x30] sm:$0xff] %vm571_vm0, %v10323_v30 }
 0x2a5   : > { %v913_v32 = vpop.f32.mrf.mxu1 }
 0x2a6   : > { %1250 = vst.msk [vmem:[#allocation3 + $0x28] sm:$0xff] %vm571_vm0, %v913_v32  ;;  %v12241_v32 = vld [vmem:[#allocation2 + $0x30] sm:$0xff] }
 0x2a7   : > { %v10326_v33 = vpop.f32.mrf.mxu1 }
 0x2a8   : > { %1253 = vst.msk [vmem:[#allocation3 + $0x50] sm:$0xff] %vm571_vm0, %v10326_v33  ;;  %v12248_v33 = vld [vmem:[#allocation2 + $0x48] sm:$0xff] }
 0x2a9   : > { %v923_v34 = vpop.f32.mrf.mxu1 }
 0x2aa   : > { %1252 = vst.msk [vmem:[#allocation3 + $0x48] sm:$0xff] %vm571_vm0, %v923_v34  ;;  %v1282_v34 = vld [vmem:[#allocation2 + $0x7] sm:$0xff] }
 0x2ab   : > { %v10329_v35 = vpop.f32.mrf.mxu1 }
 0x2ac   : > { %1255 = vst.msk [vmem:[#allocation3 + $0x70] sm:$0xff] %vm571_vm0, %v10329_v35 }
 0x2ad   : > { %v933_v36 = vpop.f32.mrf.mxu1  ;;  %v1316_v37 = vld [vmem:[#allocation3 + $0x27] sm:$0xff]  ;;  %v1317_v38 = vld [vmem:[#allocation3 + $0x2f] sm:$0xff] }
 0x2ae   : > { %1254 = vst.msk [vmem:[#allocation3 + $0x68] sm:$0xff] %vm571_vm0, %v933_v36  ;;  %10380 = vmatprep.mubr.msk.f32.mxu0 %vm571_vm0, %v1316_v37  ;;  %v12258_v37 = vld [vmem:[#allocation2 + $0x50] sm:$0xff] }
 0x2af   : > { %v10332_v39 = vpop.f32.mrf.mxu1  ;;  %10381 = vmatmul.mubr.msk.f32.gmra.mxu0 %vm571_vm0, %v1317_v38  ;;  %v12261_v38 = vld [vmem:[#allocation2 + $0x68] sm:$0xff] }
 0x2b0   : > { %1257 = vst.msk [vmem:[#allocation3 + $0x90] sm:$0xff] %vm571_vm0, %v10332_v39  ;;  %v8953_v39 = vld [vmem:[%s14565_s6 + $0x50] sm:$0xff] }
 0x2b1   : > { %v943_v40 = vpop.f32.mrf.mxu1  ;;  %v1318_v41 = vld [vmem:[#allocation3 + $0x47] sm:$0xff]  ;;  %v1319_v42 = vld [vmem:[#allocation3 + $0x4f] sm:$0xff] }
 0x2b2   : > { %1256 = vst.msk [vmem:[#allocation3 + $0x88] sm:$0xff] %vm571_vm0, %v943_v40  ;;  %10383 = vmatprep.mubr.msk.f32.mxu0 %vm571_vm0, %v1318_v41  ;;  %v1283_v40 = vld [vmem:[#allocation2 + $0xf] sm:$0xff] }
 0x2b3   : > { %v10335_v43 = vpop.f32.mrf.mxu1  ;;  %10384 = vmatmul.mubr.msk.f32.gmra.mxu0 %vm571_vm0, %v1319_v42  ;;  %v8952_v41 = vld [vmem:[%s14565_s6 + $0x48] sm:$0xff] }
 0x2b4   : > { %1259 = vst.msk [vmem:[#allocation3 + $0xb0] sm:$0xff] %vm571_vm0, %v10335_v43  ;;  %v12273_v42 = vld [vmem:[#allocation2 + $0x27] sm:$0xff]  ;;  %v12277_v43 = vld [vmem:[#allocation2 + $0x70] sm:$0xff] }
 0x2b5   : > { %v953_v44 = vpop.f32.mrf.mxu1  ;;  %v1320_v45 = vld [vmem:[#allocation3 + $0x67] sm:$0xff]  ;;  %v1321_v46 = vld [vmem:[#allocation3 + $0x6f] sm:$0xff] }
 0x2b6   : > { %1258 = vst.msk [vmem:[#allocation3 + $0xa8] sm:$0xff] %vm571_vm0, %v953_v44  ;;  %10386 = vmatprep.mubr.msk.f32.mxu0 %vm571_vm0, %v1320_v45  ;;  %v12279_v44 = vld [vmem:[#allocation2 + $0x88] sm:$0xff]  ;;  %v8917_v45 = vld [vmem:[%s14566_s7 + $0x30] sm:$0xff] }
 0x2b7   : > { %v10338_v47 = vpop.f32.mrf.mxu1  ;;  %10387 = vmatmul.mubr.msk.f32.gmra.mxu0 %vm571_vm0, %v1321_v46  ;;  %v12287_v46 = vld [vmem:[#allocation2 + $0x2f] sm:$0xff] }
 0x2b8   : > { %1261 = vst.msk [vmem:[#allocation3 + $0xd0] sm:$0xff] %vm571_vm0, %v10338_v47  ;;  %v8951_v47 = vld [vmem:[%s14565_s6 + $0x40] sm:$0xff] }
 0x2b9   : > { %v963_v48 = vpop.f32.mrf.mxu1  ;;  %v1322_v49 = vld [vmem:[#allocation3 + $0x87] sm:$0xff]  ;;  %v1323_v50 = vld [vmem:[#allocation3 + $0x8f] sm:$0xff] }
 0x2ba   : > { %1260 = vst.msk [vmem:[#allocation3 + $0xc8] sm:$0xff] %vm571_vm0, %v963_v48  ;;  %10389 = vmatprep.mubr.msk.f32.mxu0 %vm571_vm0, %v1322_v49  ;;  %v12294_v48 = vld [vmem:[#allocation2 + $0x47] sm:$0xff]  ;;  %v2005_v49 = vld [vmem:[#allocation2 + $0x90] sm:$0xff] }
 0x2bb   : > { %v10341_v51 = vpop.f32.mrf.mxu1  ;;  %10390 = vmatmul.mubr.msk.f32.gmra.mxu0 %vm571_vm0, %v1323_v50  ;;  %v2006_v50 = vld [vmem:[#allocation2 + $0xa8] sm:$0xff] }
 0x2bc   : > { %1263 = vst.msk [vmem:[#allocation3 + $0xf0] sm:$0xff] %vm571_vm0, %v10341_v51  ;;  %v8916_v51 = vld [vmem:[%s14566_s7 + $0x28] sm:$0xff] }
 0x2bd   : > { %v973_v52 = vpop.f32.mrf.mxu1  ;;  %v1324_v53 = vld [vmem:[#allocation3 + $0xa7] sm:$0xff]  ;;  %v1325_v54 = vld [vmem:[#allocation3 + $0xaf] sm:$0xff] }
 0x2be   : > { %1262 = vst.msk [vmem:[#allocation3 + $0xe8] sm:$0xff] %vm571_vm0, %v973_v52  ;;  %10392 = vmatprep.mubr.msk.f32.mxu0 %vm571_vm0, %v1324_v53  ;;  %v12305_v52 = vld [vmem:[#allocation2 + $0x4f] sm:$0xff]  ;;  %v12311_v53 = vld [vmem:[%s14565_s6 + $0x78] sm:$0xff] }
 0x2bf   : > { %v10344_v55 = vpop.f32.mrf.mxu1  ;;  %10393 = vmatmul.mubr.msk.f32.gmra.mxu0 %vm571_vm0, %v1325_v54  ;;  %v12313_v54 = vld [vmem:[#allocation2 + $0x67] sm:$0xff] }
 0x2c0   : > { %1265 = vst.msk [vmem:[#allocation3 + $0x110] sm:$0xff] %vm571_vm0, %v10344_v55  ;;  %v2007_v55 = vld [vmem:[#allocation2 + $0xb0] sm:$0xff] }
 0x2c1   : > { %v983_v56 = vpop.f32.mrf.mxu1  ;;  %v1326_v57 = vld [vmem:[#allocation3 + $0xc7] sm:$0xff]  ;;  %v1327_v58 = vld [vmem:[#allocation3 + $0xcf] sm:$0xff] }
 0x2c2   : > { %1264 = vst.msk [vmem:[#allocation3 + $0x108] sm:$0xff] %vm571_vm0, %v983_v56  ;;  %10395 = vmatprep.mubr.msk.f32.mxu0 %vm571_vm0, %v1326_v57  ;;  %v2008_v56 = vld [vmem:[#allocation2 + $0xc8] sm:$0xff]  ;;  %v8915_v57 = vld [vmem:[%s14566_s7 + $0x20] sm:$0xff] }
 0x2c3   : > { %v10347_v59 = vpop.f32.mrf.mxu1  ;;  %10396 = vmatmul.mubr.msk.f32.gmra.mxu0 %vm571_vm0, %v1327_v58  ;;  %v12324_v58 = vld [vmem:[#allocation2 + $0x6f] sm:$0xff] }
 0x2c4   : > { %1267 = vst.msk [vmem:[#allocation3 + $0x130] sm:$0xff] %vm571_vm0, %v10347_v59  ;;  %v12327_v59 = vld [vmem:[#allocation2 + $0x87] sm:$0xff] }
 0x2c5   : > { %v993_v60 = vpop.f32.mrf.mxu1  ;;  %v1328_v61 = vld [vmem:[#allocation3 + $0xe7] sm:$0xff]  ;;  %v1329_v62 = vld [vmem:[#allocation3 + $0xef] sm:$0xff] }
 0x2c6   : > { %1266 = vst.msk [vmem:[#allocation3 + $0x128] sm:$0xff] %vm571_vm0, %v993_v60  ;;  %10398 = vmatprep.mubr.msk.f32.mxu0 %vm571_vm0, %v1328_v61  ;;  %v2009_v60 = vld [vmem:[#allocation2 + $0xd0] sm:$0xff]  ;;  %v2010_v61 = vld [vmem:[#allocation2 + $0xe8] sm:$0xff] }
 0x2c7   : > { %v10350_v63 = vpop.f32.mrf.mxu1  ;;  %10399 = vmatmul.mubr.msk.f32.gmra.mxu0 %vm571_vm0, %v1329_v62  ;;  %v12335_v62 = vld [vmem:[%s14566_s7 + $0x58] sm:$0xff] }
 0x2c8   : > { %1269 = vst.msk [vmem:[#allocation3 + $0x150] sm:$0xff] %vm571_vm0, %v10350_v63  ;;  %v12339_v63 = vld [vmem:[#allocation2 + $0x8f] sm:$0xff] }
 0x2c9   : > { %v1003_v0 = vpop.f32.mrf.mxu1  ;;  %v1330_v2 = vld [vmem:[#allocation3 + $0x107] sm:$0xff]  ;;  %v1331_v3 = vld [vmem:[#allocation3 + $0x10f] sm:$0xff] }
 0x2ca   : > { %1268 = vst.msk [vmem:[#allocation3 + $0x148] sm:$0xff] %vm571_vm0, %v1003_v0  ;;  %10401 = vmatprep.mubr.msk.f32.mxu0 %vm571_vm0, %v1330_v2  ;;  %v12342_v0 = vld [vmem:[#allocation2 + $0xa7] sm:$0xff]  ;;  %v2011_v2 = vld [vmem:[#allocation2 + $0xf0] sm:$0xff] }
 0x2cb   : > { %v10353_v4 = vpop.f32.mrf.mxu1  ;;  %10402 = vmatmul.mubr.msk.f32.gmra.mxu0 %vm571_vm0, %v1331_v3  ;;  %v2012_v3 = vld [vmem:[#allocation2 + $0x108] sm:$0xff] }
 0x2cc   : > { %1271 = vst.msk [vmem:[#allocation3 + $0x170] sm:$0xff] %vm571_vm0, %v10353_v4  ;;  %v12350_v4 = vld [vmem:[#allocation2 + $0xaf] sm:$0xff] }
 0x2cd   : > { %v1013_v5 = vpop.f32.mrf.mxu1  ;;  %v1332_v6 = vld [vmem:[#allocation3 + $0x127] sm:$0xff]  ;;  %v1333_v7 = vld [vmem:[#allocation3 + $0x12f] sm:$0xff] }
 0x2ce   : > { %1270 = vst.msk [vmem:[#allocation3 + $0x168] sm:$0xff] %vm571_vm0, %v1013_v5  ;;  %10404 = vmatprep.mubr.msk.f32.mxu0 %vm571_vm0, %v1332_v6  ;;  %v12353_v5 = vld [vmem:[#allocation2 + $0xc7] sm:$0xff]  ;;  %v2013_v6 = vld [vmem:[#allocation2 + $0x110] sm:$0xff] }
 0x2cf   : > { %v10356_v8 = vpop.f32.mrf.mxu1  ;;  %10405 = vmatmul.mubr.msk.f32.gmra.mxu0 %vm571_vm0, %v1333_v7  ;;  %v2014_v7 = vld [vmem:[#allocation2 + $0x128] sm:$0xff] }
 0x2d0   : > { %1273 = vst.msk [vmem:[#allocation3 + $0x190] sm:$0xff] %vm571_vm0, %v10356_v8  ;;  %v12360_v8 = vld [vmem:[#allocation2 + $0xcf] sm:$0xff] }
 0x2d1   : > { %v1023_v9 = vpop.f32.mrf.mxu1  ;;  %v1334_v10 = vld [vmem:[#allocation3 + $0x147] sm:$0xff]  ;;  %v1335_v11 = vld [vmem:[#allocation3 + $0x14f] sm:$0xff] }
 0x2d2   : > { %1272 = vst.msk [vmem:[#allocation3 + $0x188] sm:$0xff] %vm571_vm0, %v1023_v9  ;;  %10407 = vmatprep.mubr.msk.f32.mxu0 %vm571_vm0, %v1334_v10  ;;  %v12363_v9 = vld [vmem:[#allocation2 + $0xe7] sm:$0xff]  ;;  %v2015_v10 = vld [vmem:[#allocation2 + $0x130] sm:$0xff] }
 0x2d3   : > { %v10359_v12 = vpop.f32.mrf.mxu1  ;;  %10408 = vmatmul.mubr.msk.f32.gmra.mxu0 %vm571_vm0, %v1335_v11  ;;  %v2016_v11 = vld [vmem:[#allocation2 + $0x148] sm:$0xff] }
 0x2d4   : > { %1275 = vst.msk [vmem:[#allocation3 + $0x1b0] sm:$0xff] %vm571_vm0, %v10359_v12  ;;  %v12370_v12 = vld [vmem:[#allocation2 + $0xef] sm:$0xff] }
 0x2d5   : > { %v1033_v13 = vpop.f32.mrf.mxu1  ;;  %v1336_v14 = vld [vmem:[#allocation3 + $0x167] sm:$0xff]  ;;  %v1337_v15 = vld [vmem:[#allocation3 + $0x16f] sm:$0xff] }
 0x2d6   : > { %1274 = vst.msk [vmem:[#allocation3 + $0x1a8] sm:$0xff] %vm571_vm0, %v1033_v13  ;;  %10410 = vmatprep.mubr.msk.f32.mxu0 %vm571_vm0, %v1336_v14  ;;  %v12373_v13 = vld [vmem:[#allocation2 + $0x107] sm:$0xff]  ;;  %v2017_v14 = vld [vmem:[#allocation2 + $0x150] sm:$0xff] }
 0x2d7   : > { %v10362_v16 = vpop.f32.mrf.mxu1  ;;  %10411 = vmatmul.mubr.msk.f32.gmra.mxu0 %vm571_vm0, %v1337_v15  ;;  %v2018_v15 = vld [vmem:[#allocation2 + $0x168] sm:$0xff] }
 0x2d8   : > { %1277 = vst.msk [vmem:[#allocation3 + $0x1d0] sm:$0xff] %vm571_vm0, %v10362_v16  ;;  %v12380_v16 = vld [vmem:[#allocation2 + $0x10f] sm:$0xff] }
 0x2d9   : > { %v1043_v17 = vpop.f32.mrf.mxu1  ;;  %v1338_v18 = vld [vmem:[#allocation3 + $0x187] sm:$0xff]  ;;  %v1339_v1 = vld [vmem:[#allocation3 + $0x18f] sm:$0xff] }
 0x2da   : > { %1276 = vst.msk [vmem:[#allocation3 + $0x1c8] sm:$0xff] %vm571_vm0, %v1043_v17  ;;  %10413 = vmatprep.mubr.msk.f32.mxu0 %vm571_vm0, %v1338_v18  ;;  %v12383_v17 = vld [vmem:[#allocation2 + $0x127] sm:$0xff]  ;;  %v2019_v18 = vld [vmem:[#allocation2 + $0x170] sm:$0xff] }
 0x2db   : > { %v10365_v20 = vpop.f32.mrf.mxu1  ;;  %10414 = vmatmul.mubr.msk.f32.gmra.mxu0 %vm571_vm0, %v1339_v1  ;;  %v2020_v1 = vld [vmem:[#allocation2 + $0x188] sm:$0xff] }
 0x2dc   : > { %1279 = vst.msk [vmem:[#allocation3 + $0x1f0] sm:$0xff] %vm571_vm0, %v10365_v20  ;;  %10489 = vmatprep.mubr.msk.f32.mxu0 %vm571_vm0, %v1996_v19  ;;  %v12390_v19 = vld [vmem:[#allocation2 + $0x12f] sm:$0xff]  ;;  %v12393_v20 = vld [vmem:[#allocation2 + $0x147] sm:$0xff] }
 0x2dd   : > { %v1053_v22 = vpop.f32.mrf.mxu1  ;;  %v1340_v23 = vld [vmem:[#allocation3 + $0x1a7] sm:$0xff]  ;;  %v1341_v24 = vld [vmem:[#allocation3 + $0x1af] sm:$0xff] }
 0x2de   : > { %1278 = vst.msk [vmem:[#allocation3 + $0x1e8] sm:$0xff] %vm571_vm0, %v1053_v22  ;;  %10416 = vmatprep.mubr.msk.f32.mxu1 %vm571_vm0, %v1340_v23  ;;  %v2022_v22 = vld [vmem:[#allocation2 + $0x1a8] sm:$0xff] }
 0x2df   : > { %10417 = vmatmul.mubr.msk.f32.vlgmr.msra.gmra.mxu1 %vm571_vm0, %v1341_v24  ;;  %10490 = vmatmul.mubr.msk.f32.vlgmr.msra.gmra.mxu0 %vm571_vm0, %v1997_v21  ;;  %v2021_v21 = vld [vmem:[#allocation2 + $0x190] sm:$0xff]  ;;  %v12403_v24 = vld [vmem:[#allocation2 + $0x167] sm:$0xff] }
 0x2e0   : > { %10426 = vmatpush3.msra.mxu1 %v12151_v25  ;;  %10492 = vmatprep.mubr.msk.f32.mxu0 %vm571_vm0, %v12226_v26  ;;  %v1346_v25 = vld [vmem:[%s14565_s6] sm:$0xff]  ;;  %v12400_v23 = vld [vmem:[#allocation2 + $0x14f] sm:$0xff] }
 0x2e1   : > { %v1342_v29 = vld [vmem:[#allocation3 + $0x1c7] sm:$0xff]  ;;  %v1343_v30 = vld [vmem:[#allocation3 + $0x1cf] sm:$0xff]  ;;  %10427 = vmatprep.subr.mxu1 %v1348_v27  ;;  %10594 = vmatpush3.msra.mxu0 %v12169_v31  ;;  %v8918_v31 = vld [vmem:[%s14566_s7 + $0x38] sm:$0xff] }
 0x2e2   : > { %10419 = vmatprep.mubr.msk.f32.mxu1 %vm571_vm0, %v1342_v29  ;;  %10428 = vmatpush3.msra.mxu1 %v1348_v27  ;;  %v2023_v27 = vld [vmem:[#allocation2 + $0x1b0] sm:$0xff] }
 0x2e3   : > { %10420 = vmatmul.mubr.msk.f32.gmra.mxu1 %vm571_vm0, %v1343_v30  ;;  %10429 = vmatprep.subr.mxu1 %v1347_v28  ;;  %v12410_v29 = vld [vmem:[#allocation2 + $0x16f] sm:$0xff]  ;;  %v12413_v30 = vld [vmem:[#allocation2 + $0x187] sm:$0xff] }
 0x2e4   : > { %10430 = vmatpush3.msra.mxu1 %v1347_v28  ;;  %10493 = vmatmul.mubr.msk.f32.gmra.mxu0 %vm571_vm0, %v12241_v32  ;;  %v2024_v28 = vld [vmem:[#allocation2 + $0x1c8] sm:$0xff] }
 0x2e5   : > { %v1344_v35 = vld [vmem:[#allocation3 + $0x1e7] sm:$0xff]  ;;  %v1345_v36 = vld [vmem:[#allocation3 + $0x1ef] sm:$0xff]  ;;  %10431 = vmatprep.subr.mxu1 %v1346_v25  ;;  %10495 = vmatprep.mubr.msk.f32.mxu0 %vm571_vm0, %v12248_v33 }
 0x2e6   : > { %10422 = vmatprep.mubr.msk.f32.mxu1 %vm571_vm0, %v1344_v35  ;;  %10432 = vmatpush3.msra.mxu1 %v1346_v25  ;;  %v2025_v25 = vld [vmem:[#allocation2 + $0x1d0] sm:$0xff]  ;;  %v12423_v35 = vld [vmem:[#allocation2 + $0x1a7] sm:$0xff] }
 0x2e7   : > { %10423 = vmatmul.mubr.msk.f32.gmra.mxu1 %vm571_vm0, %v1345_v36  ;;  %10537 = vmatprep.subr.mxu1 %v8918_v31  ;;  %v2027_v36 = vld [vmem:[#allocation2 + $0x1f0] sm:$0xff] }
 0x2e8   : > { %10433 = vmatprep.mubr.msk.f32.mxu1 %vm571_vm0, %v1282_v34  ;;  %10496 = vmatmul.mubr.msk.f32.gmra.mxu0 %vm571_vm0, %v12258_v37  ;;  %v2026_v34 = vld [vmem:[#allocation2 + $0x1e8] sm:$0xff] }
 0x2e9   : > { %10498 = vmatprep.mubr.msk.f32.mxu0 %vm571_vm0, %v12261_v38  ;;  %10595 = vmatprep.subr.mxu0 %v8953_v39 }
 0x2ea   : > { %10596 = vmatpush3.msra.mxu0 %v8953_v39  ;;  %v10368_v39 = vpop.f32.mrf.mxu1 }
 0x2eb   : > { %10434 = vmatmul.mubr.msk.f32.vlgmr.msra.gmra.mxu1 %vm571_vm0, %v1283_v40  ;;  %10597 = vmatprep.subr.mxu0 %v8952_v41  ;;  %v2776_v40 = vld [vmem:[#allocation2 + $0x9] sm:$0xff]  ;;  %1281 = vst.msk [vmem:[#allocation3 + $0x210] sm:$0xff] %vm571_vm0, %v10368_v39 }
 0x2ec   : > { %10436 = vmatprep.mubr.msk.f32.mxu1 %vm571_vm0, %v12273_v42  ;;  %10499 = vmatmul.mubr.msk.f32.gmra.mxu0 %vm571_vm0, %v12277_v43  ;;  %v2034_v39 = vld [vmem:[#allocation3 + $0x68] sm:$0xff] }
 0x2ed   : > { %10538 = vmatpush3.msra.mxu1 %v8918_v31  ;;  %10501 = vmatprep.mubr.msk.f32.mxu0 %vm571_vm0, %v12279_v44  ;;  %v12420_v31 = vld [vmem:[#allocation2 + $0x18f] sm:$0xff] }
 0x2ee   : > { %10539 = vmatprep.subr.mxu1 %v8917_v45  ;;  %10598 = vmatpush3.msra.mxu0 %v8952_v41  ;;  %v12431_v41 = vld [vmem:[#allocation2 + $0x1af] sm:$0xff] }
 0x2ef   : > { %10437 = vmatmul.mubr.msk.f32.gmra.mxu1 %vm571_vm0, %v12287_v46  ;;  %10599 = vmatprep.subr.mxu0 %v8951_v47 }
 0x2f0   : > { %10439 = vmatprep.mubr.msk.f32.mxu1 %vm571_vm0, %v12294_v48  ;;  %10502 = vmatmul.mubr.msk.f32.gmra.mxu0 %vm571_vm0, %v2005_v49  ;;  %v2777_v49 = vld [vmem:[#allocation2 + $0x11] sm:$0xff] }
 0x2f1   : > { %10504 = vmatprep.mubr.msk.f32.mxu0 %vm571_vm0, %v2006_v50  ;;  %10540 = vmatpush3.msra.mxu1 %v8917_v45  ;;  %v1063_v45 = vpop.f32.mrf.mxu1  ;;  %v2778_v50 = vld [vmem:[#allocation2 + $0x29] sm:$0xff] }
 0x2f2   : > { %10541 = vmatprep.subr.mxu1 %v8916_v51  ;;  %10600 = vmatpush3.msra.mxu0 %v8951_v47  ;;  %v12434_v47 = vld [vmem:[#allocation2 + $0x1c7] sm:$0xff]  ;;  %1280 = vst.msk [vmem:[#allocation3 + $0x208] sm:$0xff] %vm571_vm0, %v1063_v45  ;;  %v2789_v45 = vld [vmem:[#allocation2 + $0xd1] sm:$0xff] }
 0x2f3   : > { %10440 = vmatmul.mubr.msk.f32.gmra.mxu1 %vm571_vm0, %v12305_v52  ;;  %10705 = vmatprep.subr.mxu0 %v12311_v53 }
 0x2f4   : > { %10442 = vmatprep.mubr.msk.f32.mxu1 %vm571_vm0, %v12313_v54  ;;  %10505 = vmatmul.mubr.msk.f32.gmra.mxu0 %vm571_vm0, %v2007_v55  ;;  %v12445_v55 = vld [vmem:[#allocation2 + $0x1cf] sm:$0xff] }
 0x2f5   : > { %10507 = vmatprep.mubr.msk.f32.mxu0 %vm571_vm0, %v2008_v56  ;;  %10542 = vmatpush3.msra.mxu1 %v8916_v51  ;;  %v9025_v51 = vld [vmem:[%s14565_s6 + $0x70] sm:$0xff]  ;;  %v12448_v56 = vld [vmem:[#allocation2 + $0x1e7] sm:$0xff] }
 0x2f6   : > { %10543 = vmatprep.subr.mxu1 %v8915_v57 }
 0x2f7   : > { %10443 = vmatmul.mubr.msk.f32.gmra.mxu1 %vm571_vm0, %v12324_v58 }
 0x2f8   : > { %10445 = vmatprep.mubr.msk.f32.mxu1 %vm571_vm0, %v12327_v59  ;;  %10508 = vmatmul.mubr.msk.f32.gmra.mxu0 %vm571_vm0, %v2009_v60  ;;  %v2780_v60 = vld [vmem:[#allocation2 + $0x49] sm:$0xff] }
 0x2f9   : > { %10510 = vmatprep.mubr.msk.f32.mxu0 %vm571_vm0, %v2010_v61  ;;  %10544 = vmatpush3.msra.mxu1 %v8915_v57  ;;  %v2779_v57 = vld [vmem:[#allocation2 + $0x31] sm:$0xff]  ;;  %v9024_v61 = vld [vmem:[%s14565_s6 + $0x68] sm:$0xff] }
 0x2fa   : > { %10649 = vmatprep.subr.mxu1 %v12335_v62 }
 0x2fb   : > { %10446 = vmatmul.mubr.msk.f32.gmra.mxu1 %vm571_vm0, %v12339_v63 }
 0x2fc   : > { %10448 = vmatprep.mubr.msk.f32.mxu1 %vm571_vm0, %v12342_v0  ;;  %10511 = vmatmul.mubr.msk.f32.gmra.mxu0 %vm571_vm0, %v2011_v2  ;;  %v12459_v2 = vld [vmem:[#allocation2 + $0x1ef] sm:$0xff] }
 0x2fd   : > { %10513 = vmatprep.mubr.msk.f32.mxu0 %vm571_vm0, %v2012_v3  ;;  %v2028_v3 = vld [vmem:[#allocation3 + $0x8] sm:$0xff] }
 0x2ff   : > { %10449 = vmatmul.mubr.msk.f32.gmra.mxu1 %vm571_vm0, %v12350_v4 }
 0x300   : > { %10451 = vmatprep.mubr.msk.f32.mxu1 %vm571_vm0, %v12353_v5  ;;  %10514 = vmatmul.mubr.msk.f32.gmra.mxu0 %vm571_vm0, %v2013_v6  ;;  %v2781_v6 = vld [vmem:[#allocation2 + $0x51] sm:$0xff] }
 0x301   : > { %10516 = vmatprep.mubr.msk.f32.mxu0 %vm571_vm0, %v2014_v7  ;;  %v2782_v7 = vld [vmem:[#allocation2 + $0x69] sm:$0xff] }
 0x303   : > { %10452 = vmatmul.mubr.msk.f32.gmra.mxu1 %vm571_vm0, %v12360_v8 }
 0x304   : > { %10454 = vmatprep.mubr.msk.f32.mxu1 %vm571_vm0, %v12363_v9  ;;  %10517 = vmatmul.mubr.msk.f32.gmra.mxu0 %vm571_vm0, %v2015_v10  ;;  %v12471_v10 = vld [vmem:[%s14565_s6 + $0x98] sm:$0xff] }
 0x305   : > { %10519 = vmatprep.mubr.msk.f32.mxu0 %vm571_vm0, %v2016_v11  ;;  %v2029_v11 = vld [vmem:[#allocation3 + $0x10] sm:$0xff] }
 0x307   : > { %10455 = vmatmul.mubr.msk.f32.gmra.mxu1 %vm571_vm0, %v12370_v12 }
 0x308   : > { %10457 = vmatprep.mubr.msk.f32.mxu1 %vm571_vm0, %v12373_v13  ;;  %10520 = vmatmul.mubr.msk.f32.gmra.mxu0 %vm571_vm0, %v2017_v14  ;;  %v2783_v14 = vld [vmem:[#allocation2 + $0x71] sm:$0xff] }
 0x309   : > { %10522 = vmatprep.mubr.msk.f32.mxu0 %vm571_vm0, %v2018_v15  ;;  %v2784_v15 = vld [vmem:[#allocation2 + $0x89] sm:$0xff] }
 0x30b   : > { %10458 = vmatmul.mubr.msk.f32.gmra.mxu1 %vm571_vm0, %v12380_v16 }
 0x30c   : > { %10460 = vmatprep.mubr.msk.f32.mxu1 %vm571_vm0, %v12383_v17  ;;  %10523 = vmatmul.mubr.msk.f32.gmra.mxu0 %vm571_vm0, %v2019_v18  ;;  %v2030_v18 = vld [vmem:[#allocation3 + $0x28] sm:$0xff] }
 0x30d   : > { %10525 = vmatprep.mubr.msk.f32.mxu0 %vm571_vm0, %v2020_v1  ;;  %v8989_v1 = vld [vmem:[%s14566_s7 + $0x50] sm:$0xff] }
 0x30f   : > { %10461 = vmatmul.mubr.msk.f32.gmra.mxu1 %vm571_vm0, %v12390_v19 }
 0x310   : > { %10463 = vmatprep.mubr.msk.f32.mxu1 %vm571_vm0, %v12393_v20  ;;  %10526 = vmatmul.mubr.msk.f32.gmra.mxu0 %vm571_vm0, %v2021_v21  ;;  %v2785_v21 = vld [vmem:[#allocation2 + $0x91] sm:$0xff] }
 0x311   : > { %10528 = vmatprep.mubr.msk.f32.mxu0 %vm571_vm0, %v2022_v22  ;;  %v2031_v22 = vld [vmem:[#allocation3 + $0x30] sm:$0xff] }
 0x313   : > { %10464 = vmatmul.mubr.msk.f32.gmra.mxu1 %vm571_vm0, %v12400_v23 }
 0x314   : > { %10466 = vmatprep.mubr.msk.f32.mxu1 %vm571_vm0, %v12403_v24  ;;  %10529 = vmatmul.mubr.msk.f32.gmra.mxu0 %vm571_vm0, %v2023_v27  ;;  %v2786_v27 = vld [vmem:[#allocation2 + $0xa9] sm:$0xff] }
 0x315   : > { %10531 = vmatprep.mubr.msk.f32.mxu0 %vm571_vm0, %v2024_v28  ;;  %v2032_v28 = vld [vmem:[#allocation3 + $0x48] sm:$0xff] }
 0x317   : > { %10467 = vmatmul.mubr.msk.f32.gmra.mxu1 %vm571_vm0, %v12410_v29 }
 0x318   : > { %10469 = vmatprep.mubr.msk.f32.mxu1 %vm571_vm0, %v12413_v30  ;;  %10532 = vmatmul.mubr.msk.f32.gmra.mxu0 %vm571_vm0, %v2025_v25  ;;  %v8988_v25 = vld [vmem:[%s14566_s7 + $0x48] sm:$0xff] }
 0x319   : > { %10534 = vmatprep.mubr.msk.f32.mxu0 %vm571_vm0, %v2026_v34  ;;  %v2033_v34 = vld [vmem:[#allocation3 + $0x50] sm:$0xff] }
 0x31b   : > { %10470 = vmatmul.mubr.msk.f32.gmra.mxu1 %vm571_vm0, %v12420_v31 }
 0x31c   : > { %10472 = vmatprep.mubr.msk.f32.mxu1 %vm571_vm0, %v12423_v35  ;;  %10535 = vmatmul.mubr.msk.f32.gmra.mxu0 %vm571_vm0, %v2027_v36  ;;  %v2788_v36 = vld [vmem:[#allocation2 + $0xc9] sm:$0xff] }
 0x31d   : > { %10601 = vmatprep.mubr.msk.f32.mxu0 %vm571_vm0, %v2776_v40  ;;  %v8987_v40 = vld [vmem:[%s14566_s7 + $0x40] sm:$0xff] }
 0x31f   : > { %10473 = vmatmul.mubr.msk.f32.gmra.mxu1 %vm571_vm0, %v12431_v41 }
 0x320   : > { %10475 = vmatprep.mubr.msk.f32.mxu1 %vm571_vm0, %v12434_v47  ;;  %10602 = vmatmul.mubr.msk.f32.vlgmr.msra.gmra.mxu0 %vm571_vm0, %v2777_v49  ;;  %v2035_v49 = vld [vmem:[#allocation3 + $0x70] sm:$0xff] }
 0x321   : > { %10604 = vmatprep.mubr.msk.f32.mxu0 %vm571_vm0, %v2778_v50  ;;  %10706 = vmatpush3.msra.mxu0 %v12311_v53  ;;  %v9023_v53 = vld [vmem:[%s14565_s6 + $0x60] sm:$0xff]  ;;  %v2790_v50 = vld [vmem:[#allocation2 + $0xe9] sm:$0xff] }
 0x322   : > { %10707 = vmatprep.subr.mxu0 %v9025_v51 }
 0x323   : > { %10476 = vmatmul.mubr.msk.f32.gmra.mxu1 %vm571_vm0, %v12445_v55  ;;  %10708 = vmatpush3.msra.mxu0 %v9025_v51  ;;  %v2036_v51 = vld [vmem:[#allocation3 + $0x88] sm:$0xff] }
 0x324   : > { %10478 = vmatprep.mubr.msk.f32.mxu1 %vm571_vm0, %v12448_v56  ;;  %10605 = vmatmul.mubr.msk.f32.gmra.mxu0 %vm571_vm0, %v2779_v57  ;;  %v12503_v57 = vld [vmem:[%s14566_s7 + $0x78] sm:$0xff] }
 0x325   : > { %10607 = vmatprep.mubr.msk.f32.mxu0 %vm571_vm0, %v2780_v60  ;;  %10709 = vmatprep.subr.mxu0 %v9024_v61  ;;  %v2791_v60 = vld [vmem:[#allocation2 + $0xf1] sm:$0xff] }
 0x326   : > { %10710 = vmatpush3.msra.mxu0 %v9024_v61  ;;  %v2037_v61 = vld [vmem:[#allocation3 + $0x90] sm:$0xff] }
 0x327   : > { %10479 = vmatmul.mubr.msk.f32.gmra.mxu1 %vm571_vm0, %v12459_v2  ;;  %10711 = vmatprep.subr.mxu0 %v9023_v53 }
 0x328   : > { %10545 = vmatprep.mubr.msk.f32.mxu1 %vm571_vm0, %v2028_v3  ;;  %10608 = vmatmul.mubr.msk.f32.gmra.mxu0 %vm571_vm0, %v2781_v6  ;;  %v2038_v3 = vld [vmem:[#allocation3 + $0xa8] sm:$0xff]  ;;  %v2793_v6 = vld [vmem:[#allocation2 + $0x111] sm:$0xff] }
 0x329   : > { %10610 = vmatprep.mubr.msk.f32.mxu0 %vm571_vm0, %v2782_v7  ;;  %10712 = vmatpush3.msra.mxu0 %v9023_v53  ;;  %v2792_v53 = vld [vmem:[#allocation2 + $0x109] sm:$0xff] }
 0x32a   : > { %10817 = vmatprep.subr.mxu0 %v12471_v10  ;;  %v2039_v7 = vld [vmem:[#allocation3 + $0xb0] sm:$0xff] }
 0x32b   : > { %10546 = vmatmul.mubr.msk.f32.vlgmr.msra.gmra.mxu1 %vm571_vm0, %v2029_v11  ;;  %v2794_v11 = vld [vmem:[#allocation2 + $0x129] sm:$0xff] }
 0x32c   : > { %10548 = vmatprep.mubr.msk.f32.mxu1 %vm571_vm0, %v2030_v18  ;;  %10611 = vmatmul.mubr.msk.f32.gmra.mxu0 %vm571_vm0, %v2783_v14  ;;  %v2040_v14 = vld [vmem:[#allocation3 + $0xc8] sm:$0xff]  ;;  %v2041_v18 = vld [vmem:[#allocation3 + $0xd0] sm:$0xff] }
 0x32d   : > { %10650 = vmatpush3.msra.mxu1 %v12335_v62  ;;  %10613 = vmatprep.mubr.msk.f32.mxu0 %vm571_vm0, %v2784_v15  ;;  %v2787_v62 = vld [vmem:[#allocation2 + $0xb1] sm:$0xff] }
 0x32e   : > { %10651 = vmatprep.subr.mxu1 %v8989_v1  ;;  %v2795_v15 = vld [vmem:[#allocation2 + $0x131] sm:$0xff] }
 0x32f   : > { %10549 = vmatmul.mubr.msk.f32.gmra.mxu1 %vm571_vm0, %v2031_v22  ;;  %v2797_v22 = vld [vmem:[#allocation2 + $0x151] sm:$0xff] }
 0x330   : > { %10551 = vmatprep.mubr.msk.f32.mxu1 %vm571_vm0, %v2032_v28  ;;  %10614 = vmatmul.mubr.msk.f32.gmra.mxu0 %vm571_vm0, %v2785_v21  ;;  %v2042_v21 = vld [vmem:[#allocation3 + $0xe8] sm:$0xff] }
 0x331   : > { %10616 = vmatprep.mubr.msk.f32.mxu0 %vm571_vm0, %v2786_v27  ;;  %10652 = vmatpush3.msra.mxu1 %v8989_v1  ;;  %v2796_v1 = vld [vmem:[#allocation2 + $0x149] sm:$0xff] }
 0x332   : > { %10653 = vmatprep.subr.mxu1 %v8988_v25  ;;  %v2043_v27 = vld [vmem:[#allocation3 + $0xf0] sm:$0xff] }
 0x333   : > { %10552 = vmatmul.mubr.msk.f32.gmra.mxu1 %vm571_vm0, %v2033_v34  ;;  %v2798_v28 = vld [vmem:[#allocation2 + $0x169] sm:$0xff] }
 0x334   : > { %10554 = vmatprep.mubr.msk.f32.mxu1 %vm571_vm0, %v2034_v39  ;;  %10617 = vmatmul.mubr.msk.f32.gmra.mxu0 %vm571_vm0, %v2787_v62  ;;  %v2799_v62 = vld [vmem:[#allocation2 + $0x171] sm:$0xff]  ;;  %v2046_v39 = vld [vmem:[#allocation3 + $0x128] sm:$0xff] }
 0x335   : > { %10619 = vmatprep.mubr.msk.f32.mxu0 %vm571_vm0, %v2788_v36  ;;  %10654 = vmatpush3.msra.mxu1 %v8988_v25  ;;  %v2044_v25 = vld [vmem:[#allocation3 + $0x108] sm:$0xff]  ;;  %v2045_v34 = vld [vmem:[#allocation3 + $0x110] sm:$0xff] }
 0x336   : > { %10655 = vmatprep.subr.mxu1 %v8987_v40  ;;  %v2800_v36 = vld [vmem:[#allocation2 + $0x189] sm:$0xff] }
 0x337   : > { %10555 = vmatmul.mubr.msk.f32.gmra.mxu1 %vm571_vm0, %v2035_v49  ;;  %v2802_v49 = vld [vmem:[#allocation2 + $0x1a9] sm:$0xff] }
 0x338   : > { %10557 = vmatprep.mubr.msk.f32.mxu1 %vm571_vm0, %v2036_v51  ;;  %10620 = vmatmul.mubr.msk.f32.gmra.mxu0 %vm571_vm0, %v2789_v45  ;;  %v2047_v45 = vld [vmem:[#allocation3 + $0x130] sm:$0xff] }
 0x339   : > { %10622 = vmatprep.mubr.msk.f32.mxu0 %vm571_vm0, %v2790_v50  ;;  %10656 = vmatpush3.msra.mxu1 %v8987_v40  ;;  %v2801_v40 = vld [vmem:[#allocation2 + $0x191] sm:$0xff]  ;;  %v2048_v50 = vld [vmem:[#allocation3 + $0x148] sm:$0xff] }
 0x33a   : > { %10761 = vmatprep.subr.mxu1 %v12503_v57  ;;  %v2803_v51 = vld [vmem:[#allocation2 + $0x1b1] sm:$0xff] }
 0x33b   : > { %10558 = vmatmul.mubr.msk.f32.gmra.mxu1 %vm571_vm0, %v2037_v61  ;;  %v2804_v61 = vld [vmem:[#allocation2 + $0x1c9] sm:$0xff] }
 0x33c   : > { %10560 = vmatprep.mubr.msk.f32.mxu1 %vm571_vm0, %v2038_v3  ;;  %10623 = vmatmul.mubr.msk.f32.gmra.mxu0 %vm571_vm0, %v2791_v60  ;;  %v2049_v60 = vld [vmem:[#allocation3 + $0x150] sm:$0xff] }
 0x33d   : > { %10625 = vmatprep.mubr.msk.f32.mxu0 %vm571_vm0, %v2792_v53  ;;  %v2050_v53 = vld [vmem:[#allocation3 + $0x168] sm:$0xff]  ;;  %v2805_v3 = vld [vmem:[#allocation2 + $0x1d1] sm:$0xff] }
 0x33f   : > { %10561 = vmatmul.mubr.msk.f32.gmra.mxu1 %vm571_vm0, %v2039_v7  ;;  %v2806_v7 = vld [vmem:[#allocation2 + $0x1e9] sm:$0xff] }
 0x340   : > { %10563 = vmatprep.mubr.msk.f32.mxu1 %vm571_vm0, %v2040_v14  ;;  %10626 = vmatmul.mubr.msk.f32.gmra.mxu0 %vm571_vm0, %v2793_v6  ;;  %v2051_v6 = vld [vmem:[#allocation3 + $0x170] sm:$0xff] }
 0x341   : > { %10628 = vmatprep.mubr.msk.f32.mxu0 %vm571_vm0, %v2794_v11  ;;  %v2052_v11 = vld [vmem:[#allocation3 + $0x188] sm:$0xff]  ;;  %v2807_v14 = vld [vmem:[#allocation2 + $0x1f1] sm:$0xff] }
 0x343   : > { %10564 = vmatmul.mubr.msk.f32.gmra.mxu1 %vm571_vm0, %v2041_v18  ;;  %v2054_v18 = vld [vmem:[#allocation3 + $0x1a8] sm:$0xff] }
 0x344   : > { %10566 = vmatprep.mubr.msk.f32.mxu1 %vm571_vm0, %v2042_v21  ;;  %10629 = vmatmul.mubr.msk.f32.gmra.mxu0 %vm571_vm0, %v2795_v15  ;;  %v2053_v15 = vld [vmem:[#allocation3 + $0x190] sm:$0xff]  ;;  %v2056_v21 = vld [vmem:[#allocation3 + $0x1c8] sm:$0xff] }
 0x345   : > { %10631 = vmatprep.mubr.msk.f32.mxu0 %vm571_vm0, %v2796_v1  ;;  %v2055_v1 = vld [vmem:[#allocation3 + $0x1b0] sm:$0xff] }
 0x347   : > { %10567 = vmatmul.mubr.msk.f32.gmra.mxu1 %vm571_vm0, %v2043_v27  ;;  %v2057_v27 = vld [vmem:[#allocation3 + $0x1d0] sm:$0xff] }
 0x348   : > { %10569 = vmatprep.mubr.msk.f32.mxu1 %vm571_vm0, %v2044_v25  ;;  %10632 = vmatmul.mubr.msk.f32.gmra.mxu0 %vm571_vm0, %v2797_v22  ;;  %v9097_v22 = vld [vmem:[%s14565_s6 + $0x90] sm:$0xff]  ;;  %v12569_v25 = vpop.f32.mrf.mxu0 }
 0x349   : > { %10634 = vmatprep.mubr.msk.f32.mxu0 %vm571_vm0, %v2798_v28  ;;  %v2058_v28 = vld [vmem:[#allocation3 + $0x1e8] sm:$0xff] }
 0x34b   : > { %10570 = vmatmul.mubr.msk.f32.gmra.mxu1 %vm571_vm0, %v2045_v34  ;;  %v12583_v34 = vpop.f32.mrf.mxu0 }
 0x34c   : > { %10572 = vmatprep.mubr.msk.f32.mxu1 %vm571_vm0, %v2046_v39  ;;  %10635 = vmatmul.mubr.msk.f32.gmra.mxu0 %vm571_vm0, %v2799_v62  ;;  %v2809_v62 = vld [vmem:[#allocation3 + $0x11] sm:$0xff] }
 0x34d   : > { %10637 = vmatprep.mubr.msk.f32.mxu0 %vm571_vm0, %v2800_v36  ;;  %v9061_v36 = vld [vmem:[%s14566_s7 + $0x70] sm:$0xff] }
 0x34f   : > { %10573 = vmatmul.mubr.msk.f32.gmra.mxu1 %vm571_vm0, %v2047_v45 }
 0x350   : > { %10575 = vmatprep.mubr.msk.f32.mxu1 %vm571_vm0, %v2048_v50  ;;  %10638 = vmatmul.mubr.msk.f32.gmra.mxu0 %vm571_vm0, %v2801_v40  ;;  %v9060_v40 = vld [vmem:[%s14566_s7 + $0x68] sm:$0xff] }
 0x351   : > { %10640 = vmatprep.mubr.msk.f32.mxu0 %vm571_vm0, %v2802_v49  ;;  %v9059_v49 = vld [vmem:[%s14566_s7 + $0x60] sm:$0xff]  ;;  %v2816_v50 = vld [vmem:[#allocation3 + $0x89] sm:$0xff] }
 0x353   : > { %10576 = vmatmul.mubr.msk.f32.gmra.mxu1 %vm571_vm0, %v2049_v60  ;;  %v12626_v60 = vld [vmem:[%s14566_s7 + $0x98] sm:$0xff] }
 0x354   : > { %10578 = vmatprep.mubr.msk.f32.mxu1 %vm571_vm0, %v2050_v53  ;;  %10641 = vmatmul.mubr.msk.f32.gmra.mxu0 %vm571_vm0, %v2803_v51 }
 0x355   : > { %10643 = vmatprep.mubr.msk.f32.mxu0 %vm571_vm0, %v2804_v61  ;;  %v2818_v61 = vld [vmem:[#allocation3 + $0xa9] sm:$0xff] }
 0x357   : > { %10579 = vmatmul.mubr.msk.f32.gmra.mxu1 %vm571_vm0, %v2051_v6 }
 0x358   : > { %10581 = vmatprep.mubr.msk.f32.mxu1 %vm571_vm0, %v2052_v11  ;;  %10644 = vmatmul.mubr.msk.f32.gmra.mxu0 %vm571_vm0, %v2805_v3  ;;  %v2820_v3 = vld [vmem:[#allocation3 + $0xc9] sm:$0xff] }
 0x359   : > { %10646 = vmatprep.mubr.msk.f32.mxu0 %vm571_vm0, %v2806_v7 }
 0x35b   : > { %10582 = vmatmul.mubr.msk.f32.gmra.mxu1 %vm571_vm0, %v2053_v15 }
 0x35c   : > { %10584 = vmatprep.mubr.msk.f32.mxu1 %vm571_vm0, %v2054_v18  ;;  %10647 = vmatmul.mubr.msk.f32.gmra.mxu0 %vm571_vm0, %v2807_v14 }
 0x35d   : > { %10713 = vmatprep.mubr.msk.f32.mxu0 %vm571_vm0, %v12273_v42  ;;  %v9096_v42 = vld [vmem:[%s14565_s6 + $0x88] sm:$0xff] }
 0x35f   : > { %10585 = vmatmul.mubr.msk.f32.gmra.mxu1 %vm571_vm0, %v2055_v1 }
 0x360   : > { %10587 = vmatprep.mubr.msk.f32.mxu1 %vm571_vm0, %v2056_v21  ;;  %10714 = vmatmul.mubr.msk.f32.vlgmr.msra.gmra.mxu0 %vm571_vm0, %v12287_v46  ;;  %v9095_v46 = vld [vmem:[%s14565_s6 + $0x80] sm:$0xff] }
 0x361   : > { %10716 = vmatprep.mubr.msk.f32.mxu0 %vm571_vm0, %v12294_v48  ;;  %10818 = vmatpush3.msra.mxu0 %v12471_v10  ;;  %v2808_v48 = vld [vmem:[#allocation3 + $0x9] sm:$0xff] }
 0x362   : > { %10819 = vmatprep.subr.mxu0 %v9097_v22  ;;  %v2059_v10 = vld [vmem:[#allocation3 + $0x1f0] sm:$0xff] }
 0x363   : > { %10588 = vmatmul.mubr.msk.f32.gmra.mxu1 %vm571_vm0, %v2057_v27  ;;  %10820 = vmatpush3.msra.mxu0 %v9097_v22 }
 0x364   : > { %10590 = vmatprep.mubr.msk.f32.mxu1 %vm571_vm0, %v2058_v28  ;;  %10717 = vmatmul.mubr.msk.f32.gmra.mxu0 %vm571_vm0, %v12305_v52  ;;  %v12574_v52 = vld [vmem:[%s14565_s6 + $0xb8] sm:$0xff] }
 0x365   : > { %10719 = vmatprep.mubr.msk.f32.mxu0 %vm571_vm0, %v12313_v54  ;;  %10821 = vmatprep.subr.mxu0 %v9096_v42  ;;  %v2810_v54 = vld [vmem:[#allocation3 + $0x29] sm:$0xff] }
 0x366   : > { %10822 = vmatpush3.msra.mxu0 %v9096_v42 }
 0x367   : > { %10591 = vmatmul.mubr.msk.f32.gmra.mxu1 %vm571_vm0, %v2059_v10  ;;  %10823 = vmatprep.subr.mxu0 %v9095_v46 }
 0x368   : > { %10657 = vmatprep.mubr.msk.f32.mxu1 %vm571_vm0, %v2808_v48  ;;  %10720 = vmatmul.mubr.msk.f32.gmra.mxu0 %vm571_vm0, %v12324_v58  ;;  %v2811_v58 = vld [vmem:[#allocation3 + $0x31] sm:$0xff] }
 0x369   : > { %10722 = vmatprep.mubr.msk.f32.mxu0 %vm571_vm0, %v12327_v59  ;;  %10824 = vmatpush3.msra.mxu0 %v9095_v46  ;;  %v2812_v59 = vld [vmem:[#allocation3 + $0x49] sm:$0xff] }
 0x36a   : > { %10929 = vmatprep.subr.mxu0 %v12574_v52  ;;  %v3586_v46 = vld [vmem:[#allocation2 + $0x207] sm:$0xff] }
 0x36b   : > { %10658 = vmatmul.mubr.msk.f32.vlgmr.msra.gmra.mxu1 %vm571_vm0, %v2809_v62  ;;  %v2833_v62 = vld [vmem:[#allocation3 + $0x191] sm:$0xff] }
 0x36c   : > { %10660 = vmatprep.mubr.msk.f32.mxu1 %vm571_vm0, %v2810_v54  ;;  %10723 = vmatmul.mubr.msk.f32.gmra.mxu0 %vm571_vm0, %v12339_v63 }
 0x36d   : > { %10762 = vmatpush3.msra.mxu1 %v12503_v57  ;;  %10725 = vmatprep.mubr.msk.f32.mxu0 %vm571_vm0, %v12342_v0  ;;  %v2813_v0 = vld [vmem:[#allocation3 + $0x51] sm:$0xff]  ;;  %v2814_v57 = vld [vmem:[#allocation3 + $0x69] sm:$0xff] }
 0x36e   : > { %10763 = vmatprep.subr.mxu1 %v9061_v36 }
 0x36f   : > { %10661 = vmatmul.mubr.msk.f32.gmra.mxu1 %vm571_vm0, %v2811_v58  ;;  %v12595_v39 = vpop.f32.mrf.mxu0 }
 0x370   : > { %10663 = vmatprep.mubr.msk.f32.mxu1 %vm571_vm0, %v2812_v59  ;;  %10726 = vmatmul.mubr.msk.f32.gmra.mxu0 %vm571_vm0, %v12350_v4  ;;  %v2836_v59 = vld [vmem:[#allocation3 + $0x1c9] sm:$0xff] }
 0x371   : > { %v12603_v63 = vpop.f32.mrf.mxu0  ;;  %10728 = vmatprep.mubr.msk.f32.mxu0 %vm571_vm0, %v12353_v5  ;;  %10764 = vmatpush3.msra.mxu1 %v9061_v36  ;;  %v2815_v5 = vld [vmem:[#allocation3 + $0x71] sm:$0xff] }
 0x372   : > { %10765 = vmatprep.subr.mxu1 %v9060_v40 }
 0x373   : > { %10664 = vmatmul.mubr.msk.f32.gmra.mxu1 %vm571_vm0, %v2813_v0  ;;  %v12608_v45 = vpop.f32.mrf.mxu0  ;;  %v9169_v0 = vld [vmem:[%s14565_s6 + $0xb0] sm:$0xff] }
 0x374   : > { %10666 = vmatprep.mubr.msk.f32.mxu1 %vm571_vm0, %v2814_v57  ;;  %10729 = vmatmul.mubr.msk.f32.gmra.mxu0 %vm571_vm0, %v12360_v8 }
 0x375   : > { %v12616_v4 = vpop.f32.mrf.mxu0  ;;  %10731 = vmatprep.mubr.msk.f32.mxu0 %vm571_vm0, %v12363_v9  ;;  %10766 = vmatpush3.msra.mxu1 %v9060_v40  ;;  %v2817_v9 = vld [vmem:[#allocation3 + $0x91] sm:$0xff] }
 0x376   : > { %10767 = vmatprep.subr.mxu1 %v9059_v49 }
 0x377   : > { %10667 = vmatmul.mubr.msk.f32.gmra.mxu1 %vm571_vm0, %v2815_v5  ;;  %v12621_v51 = vpop.f32.mrf.mxu0  ;;  %v9168_v5 = vld [vmem:[%s14565_s6 + $0xa8] sm:$0xff] }
 0x378   : > { %10669 = vmatprep.mubr.msk.f32.mxu1 %vm571_vm0, %v2816_v50  ;;  %10732 = vmatmul.mubr.msk.f32.gmra.mxu0 %vm571_vm0, %v12370_v12 }
 0x379   : > { %v12631_v8 = vpop.f32.mrf.mxu0  ;;  %10734 = vmatprep.mubr.msk.f32.mxu0 %vm571_vm0, %v12373_v13  ;;  %10768 = vmatpush3.msra.mxu1 %v9059_v49  ;;  %v2819_v13 = vld [vmem:[#allocation3 + $0xb1] sm:$0xff] }
 0x37a   : > { %10873 = vmatprep.subr.mxu1 %v12626_v60 }
 0x37b   : > { %10670 = vmatmul.mubr.msk.f32.gmra.mxu1 %vm571_vm0, %v2817_v9  ;;  %v12637_v53 = vpop.f32.mrf.mxu0  ;;  %v2838_v9 = vld [vmem:[#allocation3 + $0x1e9] sm:$0xff] }
 0x37c   : > { %10672 = vmatprep.mubr.msk.f32.mxu1 %vm571_vm0, %v2818_v61  ;;  %10735 = vmatmul.mubr.msk.f32.gmra.mxu0 %vm571_vm0, %v12380_v16  ;;  %v2821_v16 = vld [vmem:[#allocation3 + $0xd1] sm:$0xff] }
 0x37d   : > { %v12642_v12 = vpop.f32.mrf.mxu0  ;;  %10737 = vmatprep.mubr.msk.f32.mxu0 %vm571_vm0, %v12383_v17  ;;  %v2822_v17 = vld [vmem:[#allocation3 + $0xe9] sm:$0xff]  ;;  %v2839_v61 = vld [vmem:[#allocation3 + $0x1f1] sm:$0xff] }
 0x37f   : > { %10673 = vmatmul.mubr.msk.f32.gmra.mxu1 %vm571_vm0, %v2819_v13  ;;  %v12647_v6 = vpop.f32.mrf.mxu0 }
 0x380   : > { %10675 = vmatprep.mubr.msk.f32.mxu1 %vm571_vm0, %v2820_v3  ;;  %10738 = vmatmul.mubr.msk.f32.gmra.mxu0 %vm571_vm0, %v12390_v19  ;;  %v2823_v19 = vld [vmem:[#allocation3 + $0xf1] sm:$0xff] }
 0x381   : > { %v12652_v7 = vpop.f32.mrf.mxu0  ;;  %10740 = vmatprep.mubr.msk.f32.mxu0 %vm571_vm0, %v12393_v20  ;;  %v2824_v20 = vld [vmem:[#allocation3 + $0x109] sm:$0xff] }
 0x383   : > { %10676 = vmatmul.mubr.msk.f32.gmra.mxu1 %vm571_vm0, %v2821_v16  ;;  %v12657_v11 = vpop.f32.mrf.mxu0  ;;  %v3588_v16 = vld [vmem:[#allocation3 + $0x27] sm:$0xff] }
 0x384   : > { %10678 = vmatprep.mubr.msk.f32.mxu1 %vm571_vm0, %v2822_v17  ;;  %10741 = vmatmul.mubr.msk.f32.gmra.mxu0 %vm571_vm0, %v12400_v23  ;;  %v2825_v23 = vld [vmem:[#allocation3 + $0x111] sm:$0xff] }
 0x385   : > { %v12662_v14 = vpop.f32.mrf.mxu0  ;;  %10743 = vmatprep.mubr.msk.f32.mxu0 %vm571_vm0, %v12403_v24  ;;  %v2826_v24 = vld [vmem:[#allocation3 + $0x129] sm:$0xff] }
 0x387   : > { %10679 = vmatmul.mubr.msk.f32.gmra.mxu1 %vm571_vm0, %v2823_v19  ;;  %v12667_v15 = vpop.f32.mrf.mxu0  ;;  %v4343_v19 = vld [vmem:[#allocation2 + $0x90] sm:$0xff] }
 0x388   : > { %10681 = vmatprep.mubr.msk.f32.mxu1 %vm571_vm0, %v2824_v20  ;;  %10744 = vmatmul.mubr.msk.f32.gmra.mxu0 %vm571_vm0, %v12410_v29  ;;  %v2827_v29 = vld [vmem:[#allocation3 + $0x131] sm:$0xff] }
 0x389   : > { %v12672_v18 = vpop.f32.mrf.mxu0  ;;  %10746 = vmatprep.mubr.msk.f32.mxu0 %vm571_vm0, %v12413_v30  ;;  %v2828_v30 = vld [vmem:[#allocation3 + $0x149] sm:$0xff] }
 0x38a   : > { %v3589_v20 = vld [vmem:[#allocation3 + $0x2f] sm:$0xff] }
 0x38b   : > { %10682 = vmatmul.mubr.msk.f32.gmra.mxu1 %vm571_vm0, %v2825_v23  ;;  %v12677_v1 = vpop.f32.mrf.mxu0 }
 0x38c   : > { %10684 = vmatprep.mubr.msk.f32.mxu1 %vm571_vm0, %v2826_v24  ;;  %10747 = vmatmul.mubr.msk.f32.gmra.mxu0 %vm571_vm0, %v12420_v31  ;;  %v2829_v31 = vld [vmem:[#allocation3 + $0x151] sm:$0xff]  ;;  %v4344_v24 = vld [vmem:[#allocation2 + $0xa8] sm:$0xff] }
 0x38d   : > { %v12682_v21 = vpop.f32.mrf.mxu0  ;;  %10749 = vmatprep.mubr.msk.f32.mxu0 %vm571_vm0, %v12423_v35  ;;  %v2830_v35 = vld [vmem:[#allocation3 + $0x169] sm:$0xff] }
 0x38f   : > { %10685 = vmatmul.mubr.msk.f32.gmra.mxu1 %vm571_vm0, %v2827_v29  ;;  %v12687_v22 = vpop.f32.mrf.mxu0 }
 0x390   : > { %10687 = vmatprep.mubr.msk.f32.mxu1 %vm571_vm0, %v2828_v30  ;;  %10750 = vmatmul.mubr.msk.f32.gmra.mxu0 %vm571_vm0, %v12431_v41  ;;  %v2831_v41 = vld [vmem:[#allocation3 + $0x171] sm:$0xff]  ;;  %v3590_v30 = vld [vmem:[#allocation3 + $0x47] sm:$0xff] }
 0x391   : > { %v12692_v27 = vpop.f32.mrf.mxu0  ;;  %10752 = vmatprep.mubr.msk.f32.mxu0 %vm571_vm0, %v12434_v47  ;;  %v2832_v47 = vld [vmem:[#allocation3 + $0x189] sm:$0xff] }
 0x393   : > { %10688 = vmatmul.mubr.msk.f32.gmra.mxu1 %vm571_vm0, %v2829_v31  ;;  %v12697_v42 = vpop.f32.mrf.mxu0 }
 0x394   : > { %10690 = vmatprep.mubr.msk.f32.mxu1 %vm571_vm0, %v2830_v35  ;;  %10753 = vmatmul.mubr.msk.f32.gmra.mxu0 %vm571_vm0, %v12445_v55  ;;  %v3587_v55 = vld [vmem:[#allocation2 + $0x20f] sm:$0xff] }
 0x395   : > { %v12702_v28 = vpop.f32.mrf.mxu0  ;;  %10755 = vmatprep.mubr.msk.f32.mxu0 %vm571_vm0, %v12448_v56  ;;  %v2834_v56 = vld [vmem:[#allocation3 + $0x1a9] sm:$0xff] }
 0x397   : > { %10691 = vmatmul.mubr.msk.f32.gmra.mxu1 %vm571_vm0, %v2831_v41  ;;  %v12707_v48 = vpop.f32.mrf.mxu0  ;;  %v4345_v41 = vld [vmem:[#allocation2 + $0xb0] sm:$0xff] }
 0x398   : > { %10693 = vmatprep.mubr.msk.f32.mxu1 %vm571_vm0, %v2832_v47  ;;  %10756 = vmatmul.mubr.msk.f32.gmra.mxu0 %vm571_vm0, %v12459_v2  ;;  %v2835_v2 = vld [vmem:[#allocation3 + $0x1b1] sm:$0xff] }
 0x399   : > { %v12712_v10 = vpop.f32.mrf.mxu0  ;;  %10758 = vmatprep.mubr.msk.f32.mxu0 %vm571_vm0, %v3586_v46 }
 0x39b   : > { %10694 = vmatmul.mubr.msk.f32.gmra.mxu1 %vm571_vm0, %v2833_v62  ;;  %v12716_v54 = vpop.f32.mrf.mxu0 }
 0x39c   : > { %10696 = vmatprep.mubr.msk.f32.mxu1 %vm571_vm0, %v2834_v56  ;;  %10759 = vmatmul.mubr.msk.f32.gmra.mxu0 %vm571_vm0, %v3587_v55  ;;  %v3591_v55 = vld [vmem:[#allocation3 + $0x4f] sm:$0xff] }
 0x39d   : > { %v12720_v36 = vpop.f32.mrf.mxu0  ;;  %10825 = vmatprep.mubr.msk.f32.mxu0 %vm571_vm0, %v12226_v26  ;;  %v2837_v26 = vld [vmem:[#allocation3 + $0x1d1] sm:$0xff] }
 0x39f   : > { %v12724_v58 = vpop.f32.mrf.mxu1  ;;  %10697 = vmatmul.mubr.msk.f32.gmra.mxu1 %vm571_vm0, %v2835_v2  ;;  %v10491_v40 = vpop.f32.mrf.mxu0  ;;  %v3592_v2 = vld [vmem:[#allocation3 + $0x67] sm:$0xff] }
 0x3a0   : > { %10699 = vmatprep.mubr.msk.f32.mxu1 %vm571_vm0, %v2836_v59  ;;  %10826 = vmatmul.mubr.msk.f32.vlgmr.msra.gmra.mxu0 %vm571_vm0, %v12241_v32 }
 0x3a1   : > { %v12733_v57 = vpop.f32.mrf.mxu1  ;;  %v2227_v49 = vpop.f32.mrf.mxu0  ;;  %10828 = vmatprep.mubr.msk.f32.mxu0 %vm571_vm0, %v12248_v33  ;;  %10930 = vmatpush3.msra.mxu0 %v12574_v52  ;;  %v9167_v33 = vld [vmem:[%s14565_s6 + $0xa0] sm:$0xff] }
 0x3a2   : > { %10931 = vmatprep.subr.mxu0 %v9169_v0 }
 0x3a3   : > { %v12741_v50 = vpop.f32.mrf.mxu1  ;;  %10700 = vmatmul.mubr.msk.f32.gmra.mxu1 %vm571_vm0, %v2837_v26  ;;  %10932 = vmatpush3.msra.mxu0 %v9169_v0  ;;  %v4347_v26 = vld [vmem:[#allocation2 + $0xd0] sm:$0xff] }
 0x3a4   : > { %10702 = vmatprep.mubr.msk.f32.mxu1 %vm571_vm0, %v2838_v9  ;;  %v10494_v32 = vpop.f32.mrf.mxu0  ;;  %10829 = vmatmul.mubr.msk.f32.gmra.mxu0 %vm571_vm0, %v12258_v37  ;;  %v12760_v37 = vld [vmem:[%s14565_s6 + $0xd8] sm:$0xff] }
 0x3a5   : > { %v12750_v52 = vpop.f32.mrf.mxu1  ;;  %10831 = vmatprep.mubr.msk.f32.mxu0 %vm571_vm0, %v12261_v38  ;;  %10933 = vmatprep.subr.mxu0 %v9168_v5 }
 0x3a6   : > { %v2237_v13 = vpop.f32.mrf.mxu0  ;;  %10934 = vmatpush3.msra.mxu0 %v9168_v5 }
 0x3a7   : > { %v12754_v3 = vpop.f32.mrf.mxu1  ;;  %10703 = vmatmul.mubr.msk.f32.gmra.mxu1 %vm571_vm0, %v2839_v61  ;;  %10935 = vmatprep.subr.mxu0 %v9167_v33 }
 0x3a8   : > { %10769 = vmatprep.mubr.msk.f32.mxu1 %vm571_vm0, %v3588_v16  ;;  %v10497_v17 = vpop.f32.mrf.mxu0  ;;  %10832 = vmatmul.mubr.msk.f32.gmra.mxu0 %vm571_vm0, %v12277_v43  ;;  %v9133_v43 = vld [vmem:[%s14566_s7 + $0x90] sm:$0xff]  ;;  %v4348_v16 = vld [vmem:[#allocation2 + $0xe8] sm:$0xff] }
 0x3a9   : > { %v12765_v38 = vpop.f32.mrf.mxu1  ;;  %10834 = vmatprep.mubr.msk.f32.mxu0 %vm571_vm0, %v12279_v44  ;;  %10936 = vmatpush3.msra.mxu0 %v9167_v33  ;;  %v3593_v33 = vld [vmem:[#allocation3 + $0x6f] sm:$0xff] }
 0x3aa   : > { %v12769_v23 = vpop.f32.mrf.mxu0  ;;  %11041 = vmatprep.subr.mxu0 %v12760_v37 }
 0x3ab   : > { %v10435_v29 = vpop.f32.mrf.mxu1  ;;  %10770 = vmatmul.mubr.msk.f32.vlgmr.msra.gmra.mxu1 %vm571_vm0, %v3589_v20 }
 0x3ac   : > { %v1843_v31 = vadd.f32 %v10435_v29, %v12569_v25  ;;  %10772 = vmatprep.mubr.msk.f32.mxu1 %vm571_vm0, %v3590_v30  ;;  %v12778_v44 = vpop.f32.mrf.mxu0  ;;  %10835 = vmatmul.mubr.msk.f32.gmra.mxu0 %vm571_vm0, %v4343_v19  ;;  %v4346_v25 = vld [vmem:[#allocation2 + $0xc8] sm:$0xff]  ;;  %v9131_v19 = vld [vmem:[%s14566_s7 + $0x80] sm:$0xff]  ;;  %v4349_v29 = vld [vmem:[#allocation2 + $0xf0] sm:$0xff] }
 0x3ad   : > { %v1837_v35 = vpop.f32.mrf.mxu1  ;;  %10874 = vmatpush3.msra.mxu1 %v12626_v60  ;;  %10837 = vmatprep.mubr.msk.f32.mxu0 %vm571_vm0, %v4344_v24  ;;  %v9132_v60 = vld [vmem:[%s14566_s7 + $0x88] sm:$0xff] }
 0x3ae   : > { %v1838_v46 = vadd.f32 %v1837_v35, %v12583_v34  ;;  %v12784_v47 = vadd.f32 %v10491_v40, %v1843_v31  ;;  %v12786_v62 = vpop.f32.mrf.mxu0  ;;  %10875 = vmatprep.subr.mxu1 %v9133_v43  ;;  %v3595_v31 = vld [vmem:[#allocation3 + $0x8f] sm:$0xff] }
 0x3af   : > { %v10438_v56 = vpop.f32.mrf.mxu1  ;;  %10773 = vmatmul.mubr.msk.f32.gmra.mxu1 %vm571_vm0, %v3591_v55 }
 0x3b0   : > { %v1853_v59 = vadd.f32 %v10438_v56, %v12595_v39  ;;  %v12793_v0 = vadd.f32 %v2227_v49, %v1838_v46  ;;  %10775 = vmatprep.mubr.msk.f32.mxu1 %vm571_vm0, %v3592_v2  ;;  %v10503_v34 = vpop.f32.mrf.mxu0  ;;  %10838 = vmatmul.mubr.msk.f32.gmra.mxu0 %vm571_vm0, %v4345_v41  ;;  %v3594_v49 = vld [vmem:[#allocation3 + $0x87] sm:$0xff]  ;;  %v12818_v46 = vld [vmem:[%s14566_s7 + $0xb8] sm:$0xff]  ;;  %v4351_v56 = vld [vmem:[#allocation2 + $0x110] sm:$0xff] }
 0x3b1   : > { %v1847_v40 = vpop.f32.mrf.mxu1  ;;  %10840 = vmatprep.mubr.msk.f32.mxu0 %vm571_vm0, %v4346_v25  ;;  %10876 = vmatpush3.msra.mxu1 %v9133_v43  ;;  %v4350_v41 = vld [vmem:[#allocation2 + $0x108] sm:$0xff] }
 0x3b2   : > { %v1848_v5 = vadd.f32 %v1847_v40, %v12603_v63  ;;  %v12799_v9 = vadd.f32 %v10494_v32, %v1853_v59  ;;  %v2267_v61 = vpop.f32.mrf.mxu0  ;;  %10877 = vmatprep.subr.mxu1 %v9132_v60  ;;  %v3597_v59 = vld [vmem:[#allocation3 + $0xaf] sm:$0xff] }
 0x3b3   : > { %v10441_v39 = vpop.f32.mrf.mxu1  ;;  %10776 = vmatmul.mubr.msk.f32.gmra.mxu1 %vm571_vm0, %v3593_v33  ;;  %v4352_v40 = vld [vmem:[#allocation2 + $0x128] sm:$0xff] }
 0x3b4   : > { %v1863_v20 = vadd.f32 %v10441_v39, %v12608_v45  ;;  %v12806_v24 = vadd.f32 %v2237_v13, %v1848_v5  ;;  %10778 = vmatprep.mubr.msk.f32.mxu1 %vm571_vm0, %v3594_v49  ;;  %v10506_v63 = vpop.f32.mrf.mxu0  ;;  %10841 = vmatmul.mubr.msk.f32.gmra.mxu0 %vm571_vm0, %v4347_v26  ;;  %v3596_v13 = vld [vmem:[#allocation3 + $0xa7] sm:$0xff] }
 0x3b5   : > { %v1857_v32 = vpop.f32.mrf.mxu1  ;;  %10843 = vmatprep.mubr.msk.f32.mxu0 %vm571_vm0, %v4348_v16  ;;  %10878 = vmatpush3.msra.mxu1 %v9132_v60  ;;  %v3598_v26 = vld [vmem:[#allocation3 + $0xc7] sm:$0xff]  ;;  %v4353_v16 = vld [vmem:[#allocation2 + $0x130] sm:$0xff] }
 0x3b6   : > { %v1858_v30 = vadd.f32 %v1857_v32, %v12616_v4  ;;  %v12812_v43 = vadd.f32 %v10497_v17, %v1863_v20  ;;  %v2277_v35 = vpop.f32.mrf.mxu0  ;;  %10879 = vmatprep.subr.mxu1 %v9131_v19  ;;  %v4354_v32 = vld [vmem:[#allocation2 + $0x148] sm:$0xff] }
 0x3b7   : > { %v10444_v45 = vpop.f32.mrf.mxu1  ;;  %10779 = vmatmul.mubr.msk.f32.gmra.mxu1 %vm571_vm0, %v3595_v31 }
 0x3b8   : > { %v1873_v55 = vadd.f32 %v10444_v45, %v12621_v51  ;;  %v12822_v25 = vadd.f32 %v12769_v23, %v1858_v30  ;;  %10781 = vmatprep.mubr.msk.f32.mxu1 %vm571_vm0, %v3596_v13  ;;  %v10509_v4 = vpop.f32.mrf.mxu0  ;;  %10844 = vmatmul.mubr.msk.f32.gmra.mxu0 %vm571_vm0, %v4349_v29  ;;  %v3601_v13 = vld [vmem:[#allocation3 + $0xef] sm:$0xff] }
 0x3b9   : > { %v1867_v17 = vpop.f32.mrf.mxu1  ;;  %10846 = vmatprep.mubr.msk.f32.mxu0 %vm571_vm0, %v4350_v41  ;;  %10880 = vmatpush3.msra.mxu1 %v9131_v19  ;;  %v3599_v19 = vld [vmem:[#allocation3 + $0xcf] sm:$0xff] }
 0x3ba   : > { %v1868_v2 = vadd.f32 %v1867_v17, %v12631_v8  ;;  %v12829_v60 = vadd.f32 %v12778_v44, %v1873_v55  ;;  %v2287_v51 = vpop.f32.mrf.mxu0  ;;  %10985 = vmatprep.subr.mxu1 %v12818_v46  ;;  %v4356_v17 = vld [vmem:[#allocation2 + $0x168] sm:$0xff] }
 0x3bb   : > { %v10447_v23 = vpop.f32.mrf.mxu1  ;;  %10782 = vmatmul.mubr.msk.f32.gmra.mxu1 %vm571_vm0, %v3597_v59 }
 0x3bc   : > { %v1883_v5 = vadd.f32 %v10447_v23, %v12637_v53  ;;  %v12835_v33 = vadd.f32 %v12786_v62, %v1868_v2  ;;  %10784 = vmatprep.mubr.msk.f32.mxu1 %vm571_vm0, %v3598_v26  ;;  %v10512_v8 = vpop.f32.mrf.mxu0  ;;  %10847 = vmatmul.mubr.msk.f32.gmra.mxu0 %vm571_vm0, %v4351_v56  ;;  %v3600_v62 = vld [vmem:[#allocation3 + $0xe7] sm:$0xff]  ;;  %v3603_v26 = vld [vmem:[#allocation3 + $0x10f] sm:$0xff] }
 0x3bd   : > { %v1877_v44 = vpop.f32.mrf.mxu1  ;;  %10849 = vmatprep.mubr.msk.f32.mxu0 %vm571_vm0, %v4352_v40 }
 0x3be   : > { %v1878_v39 = vadd.f32 %v1877_v44, %v12642_v12  ;;  %v12841_v49 = vadd.f32 %v10503_v34, %v1883_v5  ;;  %v2297_v20 = vpop.f32.mrf.mxu0  ;;  %v4355_v12 = vld [vmem:[#allocation2 + $0x150] sm:$0xff]  ;;  %v4358_v44 = vld [vmem:[#allocation2 + $0x188] sm:$0xff] }
 0x3bf   : > { %v10450_v53 = vpop.f32.mrf.mxu1  ;;  %10785 = vmatmul.mubr.msk.f32.gmra.mxu1 %vm571_vm0, %v3599_v19 }
 0x3c0   : > { %v1893_v29 = vadd.f32 %v10450_v53, %v12647_v6  ;;  %v12845_v30 = vadd.f32 %v2267_v61, %v1878_v39  ;;  %10787 = vmatprep.mubr.msk.f32.mxu1 %vm571_vm0, %v3600_v62  ;;  %v10515_v31 = vpop.f32.mrf.mxu0  ;;  %10850 = vmatmul.mubr.msk.f32.gmra.mxu0 %vm571_vm0, %v4353_v16  ;;  %v3602_v6 = vld [vmem:[#allocation3 + $0x107] sm:$0xff]  ;;  %v3605_v62 = vld [vmem:[#allocation3 + $0x12f] sm:$0xff] }
 0x3c1   : > { %v1887_v41 = vpop.f32.mrf.mxu1  ;;  %10852 = vmatprep.mubr.msk.f32.mxu0 %vm571_vm0, %v4354_v32 }
 0x3c2   : > { %v1888_v34 = vadd.f32 %v1887_v41, %v12652_v7  ;;  %v12851_v45 = vadd.f32 %v10506_v63, %v1893_v29  ;;  %v2307_v55 = vpop.f32.mrf.mxu0  ;;  %v4357_v7 = vld [vmem:[#allocation2 + $0x170] sm:$0xff]  ;;  %v4360_v41 = vld [vmem:[#allocation2 + $0x1a8] sm:$0xff] }
 0x3c3   : > { %v10453_v56 = vpop.f32.mrf.mxu1  ;;  %10788 = vmatmul.mubr.msk.f32.gmra.mxu1 %vm571_vm0, %v3601_v13 }
 0x3c4   : > { %v1903_v61 = vadd.f32 %v10453_v56, %v12657_v11  ;;  %v12855_v2 = vadd.f32 %v2277_v35, %v1888_v34  ;;  %10790 = vmatprep.mubr.msk.f32.mxu1 %vm571_vm0, %v3602_v6  ;;  %v10518_v59 = vpop.f32.mrf.mxu0  ;;  %10853 = vmatmul.mubr.msk.f32.gmra.mxu0 %vm571_vm0, %v4355_v12  ;;  %v3604_v11 = vld [vmem:[#allocation3 + $0x127] sm:$0xff]  ;;  %v3607_v6 = vld [vmem:[#allocation3 + $0x14f] sm:$0xff] }
 0x3c5   : > { %v1897_v40 = vpop.f32.mrf.mxu1  ;;  %10855 = vmatprep.mubr.msk.f32.mxu0 %vm571_vm0, %v4356_v17 }
 0x3c6   : > { %v1898_v63 = vadd.f32 %v1897_v40, %v12662_v14  ;;  %v12861_v23 = vadd.f32 %v10509_v4, %v1903_v61  ;;  %v2317_v5 = vpop.f32.mrf.mxu0  ;;  %v4359_v14 = vld [vmem:[#allocation2 + $0x190] sm:$0xff]  ;;  %v4362_v40 = vld [vmem:[#allocation2 + $0x1c8] sm:$0xff] }
 0x3c7   : > { %v10456_v16 = vpop.f32.mrf.mxu1  ;;  %10791 = vmatmul.mubr.msk.f32.gmra.mxu1 %vm571_vm0, %v3603_v26 }
 0x3c8   : > { %v1913_v35 = vadd.f32 %v10456_v16, %v12667_v15  ;;  %v12865_v39 = vadd.f32 %v2287_v51, %v1898_v63  ;;  %10793 = vmatprep.mubr.msk.f32.mxu1 %vm571_vm0, %v3604_v11  ;;  %v10521_v19 = vpop.f32.mrf.mxu0  ;;  %10856 = vmatmul.mubr.msk.f32.gmra.mxu0 %vm571_vm0, %v4357_v7  ;;  %v3606_v15 = vld [vmem:[#allocation3 + $0x147] sm:$0xff]  ;;  %v3609_v11 = vld [vmem:[#allocation3 + $0x16f] sm:$0xff] }
 0x3c9   : > { %v1907_v32 = vpop.f32.mrf.mxu1  ;;  %10858 = vmatprep.mubr.msk.f32.mxu0 %vm571_vm0, %v4358_v44 }
 0x3ca   : > { %v1908_v4 = vadd.f32 %v1907_v32, %v12672_v18  ;;  %v12871_v53 = vadd.f32 %v10512_v8, %v1913_v35  ;;  %v2327_v29 = vpop.f32.mrf.mxu0  ;;  %v4361_v18 = vld [vmem:[#allocation2 + $0x1b0] sm:$0xff]  ;;  %v4364_v32 = vld [vmem:[#allocation2 + $0x1e8] sm:$0xff] }
 0x3cb   : > { %v10459_v12 = vpop.f32.mrf.mxu1  ;;  %10794 = vmatmul.mubr.msk.f32.gmra.mxu1 %vm571_vm0, %v3605_v62 }
 0x3cc   : > { %v1923_v51 = vadd.f32 %v10459_v12, %v12677_v1  ;;  %v12875_v34 = vadd.f32 %v2297_v20, %v1908_v4  ;;  %10796 = vmatprep.mubr.msk.f32.mxu1 %vm571_vm0, %v3606_v15  ;;  %v10524_v13 = vpop.f32.mrf.mxu0  ;;  %10859 = vmatmul.mubr.msk.f32.gmra.mxu0 %vm571_vm0, %v4359_v14  ;;  %v3608_v1 = vld [vmem:[#allocation3 + $0x167] sm:$0xff]  ;;  %v3611_v15 = vld [vmem:[#allocation3 + $0x18f] sm:$0xff] }
 0x3cd   : > { %v1917_v17 = vpop.f32.mrf.mxu1  ;;  %10861 = vmatprep.mubr.msk.f32.mxu0 %vm571_vm0, %v4360_v41 }
 0x3ce   : > { %v1918_v8 = vadd.f32 %v1917_v17, %v12682_v21  ;;  %v12881_v56 = vadd.f32 %v10515_v31, %v1923_v51  ;;  %v2337_v61 = vpop.f32.mrf.mxu0  ;;  %v4363_v21 = vld [vmem:[#allocation2 + $0x1d0] sm:$0xff]  ;;  %v4366_v17 = vld [vmem:[#allocation2 + $0x208] sm:$0xff] }
 0x3cf   : > { %v10462_v7 = vpop.f32.mrf.mxu1  ;;  %10797 = vmatmul.mubr.msk.f32.gmra.mxu1 %vm571_vm0, %v3607_v6 }
 0x3d0   : > { %v1933_v20 = vadd.f32 %v10462_v7, %v12687_v22  ;;  %v12885_v63 = vadd.f32 %v2307_v55, %v1918_v8  ;;  %10799 = vmatprep.mubr.msk.f32.mxu1 %vm571_vm0, %v3608_v1  ;;  %v10527_v26 = vpop.f32.mrf.mxu0  ;;  %10862 = vmatmul.mubr.msk.f32.gmra.mxu0 %vm571_vm0, %v4361_v18  ;;  %v3610_v22 = vld [vmem:[#allocation3 + $0x187] sm:$0xff]  ;;  %v3613_v1 = vld [vmem:[#allocation3 + $0x1af] sm:$0xff] }
 0x3d1   : > { %v1927_v44 = vpop.f32.mrf.mxu1  ;;  %10864 = vmatprep.mubr.msk.f32.mxu0 %vm571_vm0, %v4362_v40 }
 0x3d2   : > { %v1928_v31 = vadd.f32 %v1927_v44, %v12692_v27  ;;  %v12891_v16 = vadd.f32 %v10518_v59, %v1933_v20  ;;  %v2347_v35 = vpop.f32.mrf.mxu0  ;;  %v4365_v27 = vld [vmem:[#allocation2 + $0x1f0] sm:$0xff] }
 0x3d3   : > { %v10465_v14 = vpop.f32.mrf.mxu1  ;;  %10800 = vmatmul.mubr.msk.f32.gmra.mxu1 %vm571_vm0, %v3609_v11  ;;  %v5116_v44 = vld [vmem:[#allocation2 + $0x29] sm:$0xff] }
 0x3d4   : > { %v1943_v55 = vadd.f32 %v10465_v14, %v12697_v42  ;;  %v12895_v4 = vadd.f32 %v2317_v5, %v1928_v31  ;;  %10802 = vmatprep.mubr.msk.f32.mxu1 %vm571_vm0, %v3610_v22  ;;  %v10530_v62 = vpop.f32.mrf.mxu0  ;;  %10865 = vmatmul.mubr.msk.f32.gmra.mxu0 %vm571_vm0, %v4363_v21  ;;  %v3612_v42 = vld [vmem:[#allocation3 + $0x1a7] sm:$0xff]  ;;  %v3615_v22 = vld [vmem:[#allocation3 + $0x1cf] sm:$0xff] }
 0x3d5   : > { %v1937_v41 = vpop.f32.mrf.mxu1  ;;  %10867 = vmatprep.mubr.msk.f32.mxu0 %vm571_vm0, %v4364_v32 }
 0x3d6   : > { %v1938_v59 = vadd.f32 %v1937_v41, %v12702_v28  ;;  %v12901_v12 = vadd.f32 %v10521_v19, %v1943_v55  ;;  %v2357_v51 = vpop.f32.mrf.mxu0  ;;  %v4367_v28 = vld [vmem:[#allocation2 + $0x210] sm:$0xff]  ;;  %v3616_v41 = vld [vmem:[#allocation3 + $0x1e7] sm:$0xff] }
 0x3d7   : > { %v10468_v18 = vpop.f32.mrf.mxu1  ;;  %10803 = vmatmul.mubr.msk.f32.gmra.mxu1 %vm571_vm0, %v3611_v15 }
 0x3d8   : > { %v1953_v5 = vadd.f32 %v10468_v18, %v12707_v48  ;;  %v12905_v8 = vadd.f32 %v2327_v29, %v1938_v59  ;;  %10805 = vmatprep.mubr.msk.f32.mxu1 %vm571_vm0, %v3612_v42  ;;  %v10533_v6 = vpop.f32.mrf.mxu0  ;;  %10868 = vmatmul.mubr.msk.f32.gmra.mxu0 %vm571_vm0, %v4365_v27  ;;  %v3614_v29 = vld [vmem:[#allocation3 + $0x1c7] sm:$0xff]  ;;  %v9241_v27 = vld [vmem:[%s14565_s6 + $0xd0] sm:$0xff] }
 0x3d9   : > { %v1947_v40 = vpop.f32.mrf.mxu1  ;;  %10870 = vmatprep.mubr.msk.f32.mxu0 %vm571_vm0, %v4366_v17  ;;  %v5119_v17 = vld [vmem:[#allocation2 + $0x51] sm:$0xff] }
 0x3da   : > { %v1948_v19 = vadd.f32 %v1947_v40, %v12712_v10  ;;  %v12911_v7 = vadd.f32 %v10524_v13, %v1953_v5  ;;  %v12913_v20 = vpop.f32.mrf.mxu0  ;;  %v5117_v13 = vld [vmem:[#allocation2 + $0x31] sm:$0xff]  ;;  %v9240_v40 = vld [vmem:[%s14565_s6 + $0xc8] sm:$0xff] }
 0x3db   : > { %v10471_v48 = vpop.f32.mrf.mxu1  ;;  %10806 = vmatmul.mubr.msk.f32.gmra.mxu1 %vm571_vm0, %v3613_v1  ;;  %v3617_v5 = vld [vmem:[#allocation3 + $0x1ef] sm:$0xff] }
 0x3dc   : > { %v1963_v21 = vadd.f32 %v10471_v48, %v12716_v54  ;;  %v12917_v31 = vadd.f32 %v2337_v61, %v1948_v19  ;;  %10808 = vmatprep.mubr.msk.f32.mxu1 %vm571_vm0, %v3614_v29  ;;  %v12920_v11 = vpop.f32.mrf.mxu0  ;;  %10871 = vmatmul.mubr.msk.f32.gmra.mxu0 %vm571_vm0, %v4367_v28  ;;  %v5118_v54 = vld [vmem:[#allocation2 + $0x49] sm:$0xff]  ;;  %v5121_v48 = vld [vmem:[#allocation2 + $0x71] sm:$0xff] }
 0x3dd   : > { %v1957_v10 = vpop.f32.mrf.mxu1  ;;  %10937 = vmatprep.mubr.msk.f32.mxu0 %vm571_vm0, %v5116_v44  ;;  %v3618_v19 = vld [vmem:[#allocation3 + $0x207] sm:$0xff] }
 0x3de   : > { %v1958_v32 = vadd.f32 %v1957_v10, %v12720_v36  ;;  %v12925_v14 = vadd.f32 %v10527_v26, %v1963_v21  ;;  %v12927_v55 = vpop.f32.mrf.mxu0  ;;  %v5122_v10 = vld [vmem:[#allocation2 + $0x89] sm:$0xff] }
 0x3df   : > { %v10474_v61 = vpop.f32.mrf.mxu1  ;;  %10809 = vmatmul.mubr.msk.f32.gmra.mxu1 %vm571_vm0, %v3615_v22  ;;  %v12971_v22 = vld [vmem:[%s14565_s6 + $0xf8] sm:$0xff] }
 0x3e0   : > { %v1973_v59 = vadd.f32 %v10474_v61, %v12724_v58  ;;  %v12934_v15 = vadd.f32 %v2347_v35, %v1958_v32  ;;  %10811 = vmatprep.mubr.msk.f32.mxu1 %vm571_vm0, %v3616_v41  ;;  %v12937_v36 = vpop.f32.mrf.mxu0  ;;  %10938 = vmatmul.mubr.msk.f32.vlgmr.msra.gmra.mxu0 %vm571_vm0, %v5117_v13  ;;  %v5120_v35 = vld [vmem:[#allocation2 + $0x69] sm:$0xff]  ;;  %v5123_v41 = vld [vmem:[#allocation2 + $0x91] sm:$0xff] }
 0x3e1   : > { %v1967_v26 = vpop.f32.mrf.mxu1  ;;  %10940 = vmatprep.mubr.msk.f32.mxu0 %vm571_vm0, %v5118_v54  ;;  %11042 = vmatpush3.msra.mxu0 %v12760_v37  ;;  %v4368_v32 = vld [vmem:[#allocation3 + $0x28] sm:$0xff] }
 0x3e2   : > { %v1968_v18 = vadd.f32 %v1967_v26, %v12733_v57  ;;  %v12943_v42 = vadd.f32 %v10530_v62, %v1973_v59  ;;  %v12945_v58 = vpop.f32.mrf.mxu0  ;;  %11043 = vmatprep.subr.mxu0 %v9241_v27  ;;  %v9239_v62 = vld [vmem:[%s14565_s6 + $0xc0] sm:$0xff] }
 0x3e3   : > { %v10477_v28 = vpop.f32.mrf.mxu1  ;;  %10812 = vmatmul.mubr.msk.f32.gmra.mxu1 %vm571_vm0, %v3617_v5  ;;  %11044 = vmatpush3.msra.mxu0 %v9241_v27  ;;  %v9205_v5 = vld [vmem:[%s14566_s7 + $0xb0] sm:$0xff] }
 0x3e4   : > { %v1983_v37 = vadd.f32 %v10477_v28, %v12741_v50  ;;  %v12952_v1 = vadd.f32 %v2357_v51, %v1968_v18  ;;  %10814 = vmatprep.mubr.msk.f32.mxu1 %vm571_vm0, %v3618_v19  ;;  %v12955_v57 = vpop.f32.mrf.mxu0  ;;  %10941 = vmatmul.mubr.msk.f32.gmra.mxu0 %vm571_vm0, %v5119_v17  ;;  %v3619_v51 = vld [vmem:[#allocation3 + $0x20f] sm:$0xff] }
 0x3e5   : > { %v1977_v44 = vpop.f32.mrf.mxu1  ;;  %10943 = vmatprep.mubr.msk.f32.mxu0 %vm571_vm0, %v5120_v35  ;;  %11045 = vmatprep.subr.mxu0 %v9240_v40  ;;  %v4370_v18 = vld [vmem:[#allocation3 + $0x48] sm:$0xff]  ;;  %v5125_v28 = vld [vmem:[#allocation2 + $0xb1] sm:$0xff] }
 0x3e6   : > { %v1978_v29 = vadd.f32 %v1977_v44, %v12750_v52  ;;  %v12963_v50 = vadd.f32 %v10533_v6, %v1983_v37  ;;  %v12965_v21 = vpop.f32.mrf.mxu0  ;;  %11046 = vmatpush3.msra.mxu0 %v9240_v40 }
 0x3e7   : > { %v10480_v13 = vpop.f32.mrf.mxu1  ;;  %10815 = vmatmul.mubr.msk.f32.gmra.mxu1 %vm571_vm0, %v3619_v51  ;;  %11047 = vmatprep.subr.mxu0 %v9239_v62 }
 0x3e8   : > { %v1993_v54 = vadd.f32 %v10480_v13, %v12754_v3  ;;  %v12975_v52 = vadd.f32 %v12913_v20, %v1978_v29  ;;  %10881 = vmatprep.mubr.msk.f32.mxu1 %vm571_vm0, %v4368_v32  ;;  %v12978_v6 = vpop.f32.mrf.mxu0  ;;  %10944 = vmatmul.mubr.msk.f32.gmra.mxu0 %vm571_vm0, %v5121_v48  ;;  %v4369_v3 = vld [vmem:[#allocation3 + $0x30] sm:$0xff]  ;;  %v4372_v48 = vld [vmem:[#allocation3 + $0x68] sm:$0xff] }
 0x3e9   : > { %v1987_v61 = vpop.f32.mrf.mxu1  ;;  %10946 = vmatprep.mubr.msk.f32.mxu0 %vm571_vm0, %v5122_v10  ;;  %11048 = vmatpush3.msra.mxu0 %v9239_v62  ;;  %v5124_v20 = vld [vmem:[#allocation2 + $0xa9] sm:$0xff]  ;;  %v5127_v10 = vld [vmem:[#allocation2 + $0xd1] sm:$0xff] }
 0x3ea   : > { %v1988_v27 = vadd.f32 %v1987_v61, %v12765_v38  ;;  %v12984_v59 = vadd.f32 %v12920_v11, %v1993_v54  ;;  %v12986_v26 = vpop.f32.mrf.mxu0  ;;  %11153 = vmatprep.subr.mxu0 %v12971_v22  ;;  %v4373_v54 = vld [vmem:[#allocation3 + $0x70] sm:$0xff] }
 0x3eb   : > { %v10547_v17 = vpop.f32.mrf.mxu1  ;;  %10882 = vmatmul.mubr.msk.f32.vlgmr.msra.gmra.mxu1 %vm571_vm0, %v4369_v3  ;;  %v5128_v61 = vld [vmem:[#allocation2 + $0xe9] sm:$0xff] }
 0x3ec   : > { %v12994_v35 = vadd.f32 %v12927_v55, %v1988_v27  ;;  %v2745_v38 = vadd.f32 %v10547_v17, %v12784_v47  ;;  %10884 = vmatprep.mubr.msk.f32.mxu1 %vm571_vm0, %v4370_v18  ;;  %v12998_v11 = vpop.f32.mrf.mxu0  ;;  %10947 = vmatmul.mubr.msk.f32.gmra.mxu0 %vm571_vm0, %v5123_v41  ;;  %v4371_v55 = vld [vmem:[#allocation3 + $0x50] sm:$0xff]  ;;  %v4374_v41 = vld [vmem:[#allocation3 + $0x88] sm:$0xff]  ;;  %v9203_v27 = vld [vmem:[%s14566_s7 + $0xa0] sm:$0xff] }
 0x3ed   : > { %v2585_v40 = vpop.f32.mrf.mxu1  ;;  %10986 = vmatpush3.msra.mxu1 %v12818_v46  ;;  %10949 = vmatprep.mubr.msk.f32.mxu0 %vm571_vm0, %v5124_v20  ;;  %v5126_v47 = vld [vmem:[#allocation2 + $0xc9] sm:$0xff]  ;;  %v5129_v17 = vld [vmem:[#allocation2 + $0xf1] sm:$0xff] }
 0x3ee   : > { %v2744_v19 = vadd.f32 %v2585_v40, %v12793_v0  ;;  %v13005_v37 = vadd.f32 %v12937_v36, %v2745_v38  ;;  %v13007_v62 = vpop.f32.mrf.mxu0  ;;  %10987 = vmatprep.subr.mxu1 %v9205_v5  ;;  %v9204_v46 = vld [vmem:[%s14566_s7 + $0xa8] sm:$0xff]  ;;  %v4375_v38 = vld [vmem:[#allocation3 + $0x90] sm:$0xff] }
 0x3ef   : > { %v10550_v44 = vpop.f32.mrf.mxu1  ;;  %10885 = vmatmul.mubr.msk.f32.gmra.mxu1 %vm571_vm0, %v4371_v55  ;;  %v5130_v40 = vld [vmem:[#allocation2 + $0x109] sm:$0xff] }
 0x3f0   : > { %v2747_v29 = vadd.f32 %v10550_v44, %v12799_v9  ;;  %v13015_v0 = vadd.f32 %v12945_v58, %v2744_v19  ;;  %10887 = vmatprep.mubr.msk.f32.mxu1 %vm571_vm0, %v4372_v48  ;;  %v10615_v36 = vpop.f32.mrf.mxu0  ;;  %10950 = vmatmul.mubr.msk.f32.gmra.mxu0 %vm571_vm0, %v5125_v28  ;;  %v4376_v28 = vld [vmem:[#allocation3 + $0xa8] sm:$0xff]  ;;  %v13043_v19 = vld [vmem:[%s14566_s7 + $0xd8] sm:$0xff] }
 0x3f1   : > { %v2595_v51 = vpop.f32.mrf.mxu1  ;;  %10952 = vmatprep.mubr.msk.f32.mxu0 %vm571_vm0, %v5126_v47  ;;  %10988 = vmatpush3.msra.mxu1 %v9205_v5  ;;  %v5131_v44 = vld [vmem:[#allocation2 + $0x111] sm:$0xff] }
 0x3f2   : > { %v2746_v13 = vadd.f32 %v2595_v51, %v12806_v24  ;;  %v13022_v32 = vadd.f32 %v12955_v57, %v2747_v29  ;;  %v3047_v9 = vpop.f32.mrf.mxu0  ;;  %10989 = vmatprep.subr.mxu1 %v9204_v46  ;;  %v4377_v29 = vld [vmem:[#allocation3 + $0xb0] sm:$0xff] }
 0x3f3   : > { %v10553_v58 = vpop.f32.mrf.mxu1  ;;  %10888 = vmatmul.mubr.msk.f32.gmra.mxu1 %vm571_vm0, %v4373_v54  ;;  %v5132_v51 = vld [vmem:[#allocation2 + $0x129] sm:$0xff] }
 0x3f4   : > { %v2749_v3 = vadd.f32 %v10553_v58, %v12812_v43  ;;  %v13030_v20 = vadd.f32 %v12965_v21, %v2746_v13  ;;  %10890 = vmatprep.mubr.msk.f32.mxu1 %vm571_vm0, %v4374_v41  ;;  %v10618_v24 = vpop.f32.mrf.mxu0  ;;  %10953 = vmatmul.mubr.msk.f32.gmra.mxu0 %vm571_vm0, %v5127_v10  ;;  %v4378_v10 = vld [vmem:[#allocation3 + $0xc8] sm:$0xff] }
 0x3f5   : > { %v2605_v57 = vpop.f32.mrf.mxu1  ;;  %10955 = vmatprep.mubr.msk.f32.mxu0 %vm571_vm0, %v5128_v61  ;;  %10990 = vmatpush3.msra.mxu1 %v9204_v46  ;;  %v5133_v61 = vld [vmem:[#allocation2 + $0x131] sm:$0xff] }
 0x3f6   : > { %v2748_v18 = vadd.f32 %v2605_v57, %v12822_v25  ;;  %v13037_v5 = vadd.f32 %v12978_v6, %v2749_v3  ;;  %v3057_v43 = vpop.f32.mrf.mxu0  ;;  %10991 = vmatprep.subr.mxu1 %v9203_v27  ;;  %v5134_v57 = vld [vmem:[#allocation2 + $0x149] sm:$0xff] }
 0x3f7   : > { %v10556_v21 = vpop.f32.mrf.mxu1  ;;  %10891 = vmatmul.mubr.msk.f32.gmra.mxu1 %vm571_vm0, %v4375_v38 }
 0x3f8   : > { %v2751_v55 = vadd.f32 %v10556_v21, %v12829_v60  ;;  %v13047_v25 = vadd.f32 %v12986_v26, %v2748_v18  ;;  %10893 = vmatprep.mubr.msk.f32.mxu1 %vm571_vm0, %v4376_v28  ;;  %v10621_v6 = vpop.f32.mrf.mxu0  ;;  %10956 = vmatmul.mubr.msk.f32.gmra.mxu0 %vm571_vm0, %v5129_v17  ;;  %v4381_v28 = vld [vmem:[#allocation3 + $0xf0] sm:$0xff] }
 0x3f9   : > { %v2615_v47 = vpop.f32.mrf.mxu1  ;;  %10958 = vmatprep.mubr.msk.f32.mxu0 %vm571_vm0, %v5130_v40  ;;  %10992 = vmatpush3.msra.mxu1 %v9203_v27  ;;  %v4379_v27 = vld [vmem:[#allocation3 + $0xd0] sm:$0xff] }
 0x3fa   : > { %v2750_v48 = vadd.f32 %v2615_v47, %v12835_v33  ;;  %v13054_v46 = vadd.f32 %v12998_v11, %v2751_v55  ;;  %v3067_v60 = vpop.f32.mrf.mxu0  ;;  %11097 = vmatprep.subr.mxu1 %v13043_v19  ;;  %v5136_v47 = vld [vmem:[#allocation2 + $0x169] sm:$0xff] }
 0x3fb   : > { %v10559_v26 = vpop.f32.mrf.mxu1  ;;  %10894 = vmatmul.mubr.msk.f32.gmra.mxu1 %vm571_vm0, %v4377_v29 }
 0x3fc   : > { %v2753_v13 = vadd.f32 %v10559_v26, %v12841_v49  ;;  %v13060_v54 = vadd.f32 %v13007_v62, %v2750_v48  ;;  %10896 = vmatprep.mubr.msk.f32.mxu1 %vm571_vm0, %v4378_v10  ;;  %v10624_v33 = vpop.f32.mrf.mxu0  ;;  %10959 = vmatmul.mubr.msk.f32.gmra.mxu0 %vm571_vm0, %v5131_v44  ;;  %v4380_v62 = vld [vmem:[#allocation3 + $0xe8] sm:$0xff]  ;;  %v4383_v10 = vld [vmem:[#allocation3 + $0x110] sm:$0xff] }
 0x3fd   : > { %v2625_v11 = vpop.f32.mrf.mxu1  ;;  %10961 = vmatprep.mubr.msk.f32.mxu0 %vm571_vm0, %v5132_v51 }
 0x3fe   : > { %v2752_v58 = vadd.f32 %v2625_v11, %v12845_v30  ;;  %v13066_v41 = vadd.f32 %v10615_v36, %v2753_v13  ;;  %v3077_v3 = vpop.f32.mrf.mxu0  ;;  %v5135_v30 = vld [vmem:[#allocation2 + $0x151] sm:$0xff]  ;;  %v5138_v11 = vld [vmem:[#allocation2 + $0x189] sm:$0xff] }
 0x3ff   : > { %v10562_v49 = vpop.f32.mrf.mxu1  ;;  %10897 = vmatmul.mubr.msk.f32.gmra.mxu1 %vm571_vm0, %v4379_v27 }
 0x400   : > { %v2755_v17 = vadd.f32 %v10562_v49, %v12851_v45  ;;  %v13070_v18 = vadd.f32 %v3047_v9, %v2752_v58  ;;  %10899 = vmatprep.mubr.msk.f32.mxu1 %vm571_vm0, %v4380_v62  ;;  %v10627_v38 = vpop.f32.mrf.mxu0  ;;  %10962 = vmatmul.mubr.msk.f32.gmra.mxu0 %vm571_vm0, %v5133_v61  ;;  %v4382_v45 = vld [vmem:[#allocation3 + $0x108] sm:$0xff]  ;;  %v4385_v62 = vld [vmem:[#allocation3 + $0x130] sm:$0xff] }
 0x401   : > { %v2635_v40 = vpop.f32.mrf.mxu1  ;;  %10964 = vmatprep.mubr.msk.f32.mxu0 %vm571_vm0, %v5134_v57 }
 0x402   : > { %v2754_v36 = vadd.f32 %v2635_v40, %v12855_v2  ;;  %v13076_v21 = vadd.f32 %v10618_v24, %v2755_v17  ;;  %v3087_v55 = vpop.f32.mrf.mxu0  ;;  %v5137_v2 = vld [vmem:[#allocation2 + $0x171] sm:$0xff]  ;;  %v5140_v40 = vld [vmem:[#allocation2 + $0x1a9] sm:$0xff] }
 0x403   : > { %v10565_v44 = vpop.f32.mrf.mxu1  ;;  %10900 = vmatmul.mubr.msk.f32.gmra.mxu1 %vm571_vm0, %v4381_v28 }
 0x404   : > { %v2757_v9 = vadd.f32 %v10565_v44, %v12861_v23  ;;  %v13080_v48 = vadd.f32 %v3057_v43, %v2754_v36  ;;  %10902 = vmatprep.mubr.msk.f32.mxu1 %vm571_vm0, %v4382_v45  ;;  %v10630_v29 = vpop.f32.mrf.mxu0  ;;  %10965 = vmatmul.mubr.msk.f32.gmra.mxu0 %vm571_vm0, %v5135_v30  ;;  %v4384_v23 = vld [vmem:[#allocation3 + $0x128] sm:$0xff]  ;;  %v4387_v45 = vld [vmem:[#allocation3 + $0x150] sm:$0xff] }
 0x405   : > { %v2645_v51 = vpop.f32.mrf.mxu1  ;;  %10967 = vmatprep.mubr.msk.f32.mxu0 %vm571_vm0, %v5136_v47 }
 0x406   : > { %v2756_v24 = vadd.f32 %v2645_v51, %v12865_v39  ;;  %v13086_v26 = vadd.f32 %v10621_v6, %v2757_v9  ;;  %v3097_v13 = vpop.f32.mrf.mxu0  ;;  %v5139_v39 = vld [vmem:[#allocation2 + $0x191] sm:$0xff]  ;;  %v5142_v51 = vld [vmem:[#allocation2 + $0x1c9] sm:$0xff] }
 0x407   : > { %v10568_v61 = vpop.f32.mrf.mxu1  ;;  %10903 = vmatmul.mubr.msk.f32.gmra.mxu1 %vm571_vm0, %v4383_v10 }
 0x408   : > { %v2759_v43 = vadd.f32 %v10568_v61, %v12871_v53  ;;  %v13090_v58 = vadd.f32 %v3067_v60, %v2756_v24  ;;  %10905 = vmatprep.mubr.msk.f32.mxu1 %vm571_vm0, %v4384_v23  ;;  %v10633_v27 = vpop.f32.mrf.mxu0  ;;  %10968 = vmatmul.mubr.msk.f32.gmra.mxu0 %vm571_vm0, %v5137_v2  ;;  %v4386_v53 = vld [vmem:[#allocation3 + $0x148] sm:$0xff]  ;;  %v4389_v23 = vld [vmem:[#allocation3 + $0x170] sm:$0xff] }
 0x409   : > { %v2655_v57 = vpop.f32.mrf.mxu1  ;;  %10970 = vmatprep.mubr.msk.f32.mxu0 %vm571_vm0, %v5138_v11 }
 0x40a   : > { %v2758_v6 = vadd.f32 %v2655_v57, %v12875_v34  ;;  %v13096_v49 = vadd.f32 %v10624_v33, %v2759_v43  ;;  %v3107_v17 = vpop.f32.mrf.mxu0  ;;  %v5141_v34 = vld [vmem:[#allocation2 + $0x1b1] sm:$0xff]  ;;  %v5144_v57 = vld [vmem:[#allocation2 + $0x1e9] sm:$0xff] }
 0x40b   : > { %v10571_v30 = vpop.f32.mrf.mxu1  ;;  %10906 = vmatmul.mubr.msk.f32.gmra.mxu1 %vm571_vm0, %v4385_v62 }
 0x40c   : > { %v2761_v60 = vadd.f32 %v10571_v30, %v12881_v56  ;;  %v13100_v36 = vadd.f32 %v3077_v3, %v2758_v6  ;;  %10908 = vmatprep.mubr.msk.f32.mxu1 %vm571_vm0, %v4386_v53  ;;  %v10636_v28 = vpop.f32.mrf.mxu0  ;;  %10971 = vmatmul.mubr.msk.f32.gmra.mxu0 %vm571_vm0, %v5139_v39  ;;  %v4388_v56 = vld [vmem:[#allocation3 + $0x168] sm:$0xff]  ;;  %v4391_v53 = vld [vmem:[#allocation3 + $0x190] sm:$0xff] }
 0x40d   : > { %v2665_v47 = vpop.f32.mrf.mxu1  ;;  %10973 = vmatprep.mubr.msk.f32.mxu0 %vm571_vm0, %v5140_v40 }
 0x40e   : > { %v2760_v33 = vadd.f32 %v2665_v47, %v12885_v63  ;;  %v13106_v44 = vadd.f32 %v10627_v38, %v2761_v60  ;;  %v3117_v9 = vpop.f32.mrf.mxu0  ;;  %v5143_v63 = vld [vmem:[#allocation2 + $0x1d1] sm:$0xff]  ;;  %v5146_v47 = vld [vmem:[#allocation2 + $0x209] sm:$0xff] }
 0x40f   : > { %v10574_v2 = vpop.f32.mrf.mxu1  ;;  %10909 = vmatmul.mubr.msk.f32.gmra.mxu1 %vm571_vm0, %v4387_v45 }
 0x410   : > { %v2763_v3 = vadd.f32 %v10574_v2, %v12891_v16  ;;  %v13110_v24 = vadd.f32 %v3087_v55, %v2760_v33  ;;  %10911 = vmatprep.mubr.msk.f32.mxu1 %vm571_vm0, %v4388_v56  ;;  %v10639_v10 = vpop.f32.mrf.mxu0  ;;  %10974 = vmatmul.mubr.msk.f32.gmra.mxu0 %vm571_vm0, %v5141_v34  ;;  %v4390_v16 = vld [vmem:[#allocation3 + $0x188] sm:$0xff]  ;;  %v4393_v56 = vld [vmem:[#allocation3 + $0x1b0] sm:$0xff] }
 0x411   : > { %v2675_v11 = vpop.f32.mrf.mxu1  ;;  %10976 = vmatprep.mubr.msk.f32.mxu0 %vm571_vm0, %v5142_v51 }
 0x412   : > { %v2762_v38 = vadd.f32 %v2675_v11, %v12895_v4  ;;  %v13116_v61 = vadd.f32 %v10630_v29, %v2763_v3  ;;  %v3127_v43 = vpop.f32.mrf.mxu0  ;;  %v5145_v4 = vld [vmem:[#allocation2 + $0x1f1] sm:$0xff]  ;;  %v5897_v11 = vld [vmem:[#allocation2 + $0x47] sm:$0xff] }
 0x413   : > { %v10577_v39 = vpop.f32.mrf.mxu1  ;;  %10912 = vmatmul.mubr.msk.f32.gmra.mxu1 %vm571_vm0, %v4389_v23 }
 0x414   : > { %v2765_v55 = vadd.f32 %v10577_v39, %v12901_v12  ;;  %v13120_v6 = vadd.f32 %v3097_v13, %v2762_v38  ;;  %10914 = vmatprep.mubr.msk.f32.mxu1 %vm571_vm0, %v4390_v16  ;;  %v10642_v62 = vpop.f32.mrf.mxu0  ;;  %10977 = vmatmul.mubr.msk.f32.gmra.mxu0 %vm571_vm0, %v5143_v63  ;;  %v4392_v12 = vld [vmem:[#allocation3 + $0x1a8] sm:$0xff]  ;;  %v4395_v16 = vld [vmem:[#allocation3 + $0x1d0] sm:$0xff] }
 0x415   : > { %v2685_v40 = vpop.f32.mrf.mxu1  ;;  %10979 = vmatprep.mubr.msk.f32.mxu0 %vm571_vm0, %v5144_v57 }
 0x416   : > { %v2764_v29 = vadd.f32 %v2685_v40, %v12905_v8  ;;  %v13126_v30 = vadd.f32 %v10633_v27, %v2765_v55  ;;  %v3137_v60 = vpop.f32.mrf.mxu0  ;;  %v5147_v8 = vld [vmem:[#allocation2 + $0x211] sm:$0xff]  ;;  %v4396_v40 = vld [vmem:[#allocation3 + $0x1e8] sm:$0xff] }
 0x417   : > { %v10580_v34 = vpop.f32.mrf.mxu1  ;;  %10915 = vmatmul.mubr.msk.f32.gmra.mxu1 %vm571_vm0, %v4391_v53 }
 0x418   : > { %v2767_v13 = vadd.f32 %v10580_v34, %v12911_v7  ;;  %v13130_v33 = vadd.f32 %v3107_v17, %v2764_v29  ;;  %10917 = vmatprep.mubr.msk.f32.mxu1 %vm571_vm0, %v4392_v12  ;;  %v10645_v45 = vpop.f32.mrf.mxu0  ;;  %10980 = vmatmul.mubr.msk.f32.gmra.mxu0 %vm571_vm0, %v5145_v4  ;;  %v4394_v17 = vld [vmem:[#allocation3 + $0x1c8] sm:$0xff]  ;;  %v9313_v4 = vld [vmem:[%s14565_s6 + $0xf0] sm:$0xff] }
 0x419   : > { %v2695_v51 = vpop.f32.mrf.mxu1  ;;  %10982 = vmatprep.mubr.msk.f32.mxu0 %vm571_vm0, %v5146_v47  ;;  %v5900_v47 = vld [vmem:[#allocation2 + $0x6f] sm:$0xff] }
 0x41a   : > { %v2766_v27 = vadd.f32 %v2695_v51, %v12917_v31  ;;  %v13136_v2 = vadd.f32 %v10636_v28, %v2767_v13  ;;  %v13138_v3 = vpop.f32.mrf.mxu0  ;;  %v5898_v28 = vld [vmem:[#allocation2 + $0x4f] sm:$0xff] }
 0x41b   : > { %v10583_v7 = vpop.f32.mrf.mxu1  ;;  %10918 = vmatmul.mubr.msk.f32.gmra.mxu1 %vm571_vm0, %v4393_v56  ;;  %v4397_v13 = vld [vmem:[#allocation3 + $0x1f0] sm:$0xff]  ;;  %v9312_v51 = vld [vmem:[%s14565_s6 + $0xe8] sm:$0xff] }
 0x41c   : > { %v2769_v63 = vadd.f32 %v10583_v7, %v12925_v14  ;;  %v13142_v38 = vadd.f32 %v3117_v9, %v2766_v27  ;;  %10920 = vmatprep.mubr.msk.f32.mxu1 %vm571_vm0, %v4394_v17  ;;  %v13145_v23 = vpop.f32.mrf.mxu0  ;;  %10983 = vmatmul.mubr.msk.f32.gmra.mxu0 %vm571_vm0, %v5147_v8  ;;  %v5899_v14 = vld [vmem:[#allocation2 + $0x67] sm:$0xff]  ;;  %v5902_v7 = vld [vmem:[#allocation2 + $0x8f] sm:$0xff] }
 0x41d   : > { %v2705_v31 = vpop.f32.mrf.mxu1  ;;  %11049 = vmatprep.mubr.msk.f32.mxu0 %vm571_vm0, %v5897_v11  ;;  %v4398_v27 = vld [vmem:[#allocation3 + $0x208] sm:$0xff] }
 0x41e   : > { %v2768_v57 = vadd.f32 %v2705_v31, %v12934_v15  ;;  %v13150_v39 = vadd.f32 %v10639_v10, %v2769_v63  ;;  %v13152_v55 = vpop.f32.mrf.mxu0  ;;  %v5903_v31 = vld [vmem:[#allocation2 + $0xa7] sm:$0xff] }
 0x41f   : > { %v10586_v9 = vpop.f32.mrf.mxu1  ;;  %10921 = vmatmul.mubr.msk.f32.gmra.mxu1 %vm571_vm0, %v4395_v16  ;;  %v13196_v16 = vld [vmem:[%s14565_s6 + $0x118] sm:$0xff] }
 0x420   : > { %v2771_v29 = vadd.f32 %v10586_v9, %v12943_v42  ;;  %v13159_v53 = vadd.f32 %v3127_v43, %v2768_v57  ;;  %10923 = vmatprep.mubr.msk.f32.mxu1 %vm571_vm0, %v4396_v40  ;;  %v13162_v15 = vpop.f32.mrf.mxu0  ;;  %11050 = vmatmul.mubr.msk.f32.vlgmr.msra.gmra.mxu0 %vm571_vm0, %v5898_v28  ;;  %v5901_v43 = vld [vmem:[#allocation2 + $0x87] sm:$0xff]  ;;  %v5904_v40 = vld [vmem:[#allocation2 + $0xaf] sm:$0xff] }
 0x421   : > { %v2715_v10 = vpop.f32.mrf.mxu1  ;;  %11052 = vmatprep.mubr.msk.f32.mxu0 %vm571_vm0, %v5899_v14  ;;  %11154 = vmatpush3.msra.mxu0 %v12971_v22  ;;  %v5148_v57 = vld [vmem:[#allocation3 + $0x29] sm:$0xff] }
 0x422   : > { %v2770_v34 = vadd.f32 %v2715_v10, %v12952_v1  ;;  %v13168_v12 = vadd.f32 %v10642_v62, %v2771_v29  ;;  %v13170_v42 = vpop.f32.mrf.mxu0  ;;  %11155 = vmatprep.subr.mxu0 %v9313_v4  ;;  %v9311_v62 = vld [vmem:[%s14565_s6 + $0xe0] sm:$0xff] }
 0x423   : > { %v10589_v8 = vpop.f32.mrf.mxu1  ;;  %10924 = vmatmul.mubr.msk.f32.gmra.mxu1 %vm571_vm0, %v4397_v13  ;;  %11156 = vmatpush3.msra.mxu0 %v9313_v4  ;;  %v9277_v13 = vld [vmem:[%s14566_s7 + $0xd0] sm:$0xff] }
 0x424   : > { %v2773_v22 = vadd.f32 %v10589_v8, %v12963_v50  ;;  %v13177_v56 = vadd.f32 %v3137_v60, %v2770_v34  ;;  %10926 = vmatprep.mubr.msk.f32.mxu1 %vm571_vm0, %v4398_v27  ;;  %v13180_v1 = vpop.f32.mrf.mxu0  ;;  %11053 = vmatmul.mubr.msk.f32.gmra.mxu0 %vm571_vm0, %v5900_v47  ;;  %v4399_v60 = vld [vmem:[#allocation3 + $0x210] sm:$0xff] }
 0x425   : > { %v2725_v11 = vpop.f32.mrf.mxu1  ;;  %11055 = vmatprep.mubr.msk.f32.mxu0 %vm571_vm0, %v5901_v43  ;;  %11157 = vmatprep.subr.mxu0 %v9312_v51  ;;  %v5150_v34 = vld [vmem:[#allocation3 + $0x49] sm:$0xff] }
 0x426   : > { %v2772_v17 = vadd.f32 %v2725_v11, %v12975_v52  ;;  %v13188_v50 = vadd.f32 %v10645_v45, %v2773_v22  ;;  %v13190_v63 = vpop.f32.mrf.mxu0  ;;  %11158 = vmatpush3.msra.mxu0 %v9312_v51  ;;  %v5906_v8 = vld [vmem:[#allocation2 + $0xcf] sm:$0xff] }
 0x427   : > { %v10592_v28 = vpop.f32.mrf.mxu1  ;;  %10927 = vmatmul.mubr.msk.f32.gmra.mxu1 %vm571_vm0, %v4399_v60  ;;  %11159 = vmatprep.subr.mxu0 %v9311_v62 }
 0x428   : > { %v2775_v14 = vadd.f32 %v10592_v28, %v12984_v59  ;;  %v13200_v52 = vadd.f32 %v13138_v3, %v2772_v17  ;;  %10993 = vmatprep.mubr.msk.f32.mxu1 %vm571_vm0, %v5148_v57  ;;  %v13203_v45 = vpop.f32.mrf.mxu0  ;;  %11056 = vmatmul.mubr.msk.f32.gmra.mxu0 %vm571_vm0, %v5902_v7  ;;  %v5149_v59 = vld [vmem:[#allocation3 + $0x31] sm:$0xff]  ;;  %v5905_v3 = vld [vmem:[#allocation2 + $0xc7] sm:$0xff] }
 0x429   : > { %v2735_v9 = vpop.f32.mrf.mxu1  ;;  %11058 = vmatprep.mubr.msk.f32.mxu0 %vm571_vm0, %v5903_v31  ;;  %11160 = vmatpush3.msra.mxu0 %v9311_v62  ;;  %v5152_v7 = vld [vmem:[#allocation3 + $0x69] sm:$0xff] }
 0x42a   : > { %v2774_v4 = vadd.f32 %v2735_v9, %v12994_v35  ;;  %v13209_v29 = vadd.f32 %v13145_v23, %v2775_v14  ;;  %v13211_v10 = vpop.f32.mrf.mxu0  ;;  %11265 = vmatprep.subr.mxu0 %v13196_v16  ;;  %v5908_v31 = vld [vmem:[#allocation2 + $0xef] sm:$0xff]  ;;  %v5909_v9 = vld [vmem:[#allocation2 + $0x107] sm:$0xff] }
 0x42b   : > { %v10659_v47 = vpop.f32.mrf.mxu1  ;;  %10994 = vmatmul.mubr.msk.f32.vlgmr.msra.gmra.mxu1 %vm571_vm0, %v5149_v59  ;;  %v5153_v14 = vld [vmem:[#allocation3 + $0x71] sm:$0xff] }
 0x42c   : > { %v13219_v43 = vadd.f32 %v13152_v55, %v2774_v4  ;;  %v3525_v35 = vadd.f32 %v10659_v47, %v13005_v37  ;;  %10996 = vmatprep.mubr.msk.f32.mxu1 %vm571_vm0, %v5150_v34  ;;  %v13223_v23 = vpop.f32.mrf.mxu0  ;;  %11059 = vmatmul.mubr.msk.f32.gmra.mxu0 %vm571_vm0, %v5904_v40  ;;  %v5151_v55 = vld [vmem:[#allocation3 + $0x51] sm:$0xff]  ;;  %v5907_v37 = vld [vmem:[#allocation2 + $0xe7] sm:$0xff] }
 0x42d   : > { %v3365_v51 = vpop.f32.mrf.mxu1  ;;  %11098 = vmatpush3.msra.mxu1 %v13043_v19  ;;  %11061 = vmatprep.mubr.msk.f32.mxu0 %vm571_vm0, %v5905_v3  ;;  %v9276_v19 = vld [vmem:[%s14566_s7 + $0xc8] sm:$0xff]  ;;  %v9275_v4 = vld [vmem:[%s14566_s7 + $0xc0] sm:$0xff] }
 0x42e   : > { %v3524_v27 = vadd.f32 %v3365_v51, %v13015_v0  ;;  %v13230_v22 = vadd.f32 %v13162_v15, %v3525_v35  ;;  %v13232_v62 = vpop.f32.mrf.mxu0  ;;  %11099 = vmatprep.subr.mxu1 %v9277_v13  ;;  %v5154_v40 = vld [vmem:[#allocation3 + $0x89] sm:$0xff]  ;;  %v5155_v35 = vld [vmem:[#allocation3 + $0x91] sm:$0xff] }
 0x42f   : > { %v10662_v11 = vpop.f32.mrf.mxu1  ;;  %10997 = vmatmul.mubr.msk.f32.gmra.mxu1 %vm571_vm0, %v5151_v55  ;;  %v5910_v47 = vld [vmem:[#allocation2 + $0x10f] sm:$0xff]  ;;  %v5911_v51 = vld [vmem:[#allocation2 + $0x127] sm:$0xff] }
 0x430   : > { %v3527_v17 = vadd.f32 %v10662_v11, %v13022_v32  ;;  %v13240_v0 = vadd.f32 %v13170_v42, %v3524_v27  ;;  %10999 = vmatprep.mubr.msk.f32.mxu1 %vm571_vm0, %v5152_v7  ;;  %v10727_v15 = vpop.f32.mrf.mxu0  ;;  %11062 = vmatmul.mubr.msk.f32.gmra.mxu0 %vm571_vm0, %v5906_v8  ;;  %v5156_v8 = vld [vmem:[#allocation3 + $0xa9] sm:$0xff]  ;;  %v13268_v27 = vld [vmem:[%s14566_s7 + $0xf8] sm:$0xff] }
 0x431   : > { %v3375_v60 = vpop.f32.mrf.mxu1  ;;  %11064 = vmatprep.mubr.msk.f32.mxu0 %vm571_vm0, %v5907_v37  ;;  %11100 = vmatpush3.msra.mxu1 %v9277_v13  ;;  %v5912_v11 = vld [vmem:[#allocation2 + $0x12f] sm:$0xff] }
 0x432   : > { %v3526_v28 = vadd.f32 %v3375_v60, %v13030_v20  ;;  %v13247_v57 = vadd.f32 %v13180_v1, %v3527_v17  ;;  %v3827_v32 = vpop.f32.mrf.mxu0  ;;  %11101 = vmatprep.subr.mxu1 %v9276_v19  ;;  %v5157_v17 = vld [vmem:[#allocation3 + $0xb1] sm:$0xff]  ;;  %v5913_v60 = vld [vmem:[#allocation2 + $0x147] sm:$0xff] }
 0x433   : > { %v10665_v42 = vpop.f32.mrf.mxu1  ;;  %11000 = vmatmul.mubr.msk.f32.gmra.mxu1 %vm571_vm0, %v5153_v14 }
 0x434   : > { %v3529_v59 = vadd.f32 %v10665_v42, %v13037_v5  ;;  %v13255_v3 = vadd.f32 %v13190_v63, %v3526_v28  ;;  %11002 = vmatprep.mubr.msk.f32.mxu1 %vm571_vm0, %v5154_v40  ;;  %v10730_v20 = vpop.f32.mrf.mxu0  ;;  %11065 = vmatmul.mubr.msk.f32.gmra.mxu0 %vm571_vm0, %v5908_v31  ;;  %v5158_v31 = vld [vmem:[#allocation3 + $0xc9] sm:$0xff] }
 0x435   : > { %v3385_v1 = vpop.f32.mrf.mxu1  ;;  %11067 = vmatprep.mubr.msk.f32.mxu0 %vm571_vm0, %v5909_v9  ;;  %11102 = vmatpush3.msra.mxu1 %v9276_v19  ;;  %v5914_v9 = vld [vmem:[#allocation2 + $0x14f] sm:$0xff] }
 0x436   : > { %v3528_v34 = vadd.f32 %v3385_v1, %v13047_v25  ;;  %v13262_v13 = vadd.f32 %v13203_v45, %v3529_v59  ;;  %v3837_v5 = vpop.f32.mrf.mxu0  ;;  %11103 = vmatprep.subr.mxu1 %v9275_v4  ;;  %v5915_v1 = vld [vmem:[#allocation2 + $0x167] sm:$0xff] }
 0x437   : > { %v10668_v63 = vpop.f32.mrf.mxu1  ;;  %11003 = vmatmul.mubr.msk.f32.gmra.mxu1 %vm571_vm0, %v5155_v35 }
 0x438   : > { %v3531_v55 = vadd.f32 %v10668_v63, %v13054_v46  ;;  %v13272_v25 = vadd.f32 %v13211_v10, %v3528_v34  ;;  %11005 = vmatprep.mubr.msk.f32.mxu1 %vm571_vm0, %v5156_v8  ;;  %v10733_v45 = vpop.f32.mrf.mxu0  ;;  %11068 = vmatmul.mubr.msk.f32.gmra.mxu0 %vm571_vm0, %v5910_v47  ;;  %v5161_v8 = vld [vmem:[#allocation3 + $0xf1] sm:$0xff] }
 0x439   : > { %v3395_v37 = vpop.f32.mrf.mxu1  ;;  %11070 = vmatprep.mubr.msk.f32.mxu0 %vm571_vm0, %v5911_v51  ;;  %11104 = vmatpush3.msra.mxu1 %v9275_v4  ;;  %v5159_v4 = vld [vmem:[#allocation3 + $0xd1] sm:$0xff] }
 0x43a   : > { %v3530_v7 = vadd.f32 %v3395_v37, %v13060_v54  ;;  %v13279_v19 = vadd.f32 %v13223_v23, %v3531_v55  ;;  %v3847_v46 = vpop.f32.mrf.mxu0  ;;  %11209 = vmatprep.subr.mxu1 %v13268_v27  ;;  %v5917_v37 = vld [vmem:[#allocation2 + $0x187] sm:$0xff] }
 0x43b   : > { %v10671_v10 = vpop.f32.mrf.mxu1  ;;  %11006 = vmatmul.mubr.msk.f32.gmra.mxu1 %vm571_vm0, %v5157_v17 }
 0x43c   : > { %v3533_v28 = vadd.f32 %v10671_v10, %v13066_v41  ;;  %v13285_v14 = vadd.f32 %v13232_v62, %v3530_v7  ;;  %11008 = vmatprep.mubr.msk.f32.mxu1 %vm571_vm0, %v5158_v31  ;;  %v10736_v54 = vpop.f32.mrf.mxu0  ;;  %11071 = vmatmul.mubr.msk.f32.gmra.mxu0 %vm571_vm0, %v5912_v11  ;;  %v5160_v62 = vld [vmem:[#allocation3 + $0xe9] sm:$0xff]  ;;  %v5163_v31 = vld [vmem:[#allocation3 + $0x111] sm:$0xff] }
 0x43d   : > { %v3405_v23 = vpop.f32.mrf.mxu1  ;;  %11073 = vmatprep.mubr.msk.f32.mxu0 %vm571_vm0, %v5913_v60 }
 0x43e   : > { %v3532_v42 = vadd.f32 %v3405_v23, %v13070_v18  ;;  %v13291_v40 = vadd.f32 %v10727_v15, %v3533_v28  ;;  %v3857_v59 = vpop.f32.mrf.mxu0  ;;  %v5916_v18 = vld [vmem:[#allocation2 + $0x16f] sm:$0xff]  ;;  %v5919_v23 = vld [vmem:[#allocation2 + $0x1a7] sm:$0xff] }
 0x43f   : > { %v10674_v41 = vpop.f32.mrf.mxu1  ;;  %11009 = vmatmul.mubr.msk.f32.gmra.mxu1 %vm571_vm0, %v5159_v4 }
 0x440   : > { %v3535_v47 = vadd.f32 %v10674_v41, %v13076_v21  ;;  %v13295_v34 = vadd.f32 %v3827_v32, %v3532_v42  ;;  %11011 = vmatprep.mubr.msk.f32.mxu1 %vm571_vm0, %v5160_v62  ;;  %v10739_v35 = vpop.f32.mrf.mxu0  ;;  %11074 = vmatmul.mubr.msk.f32.gmra.mxu0 %vm571_vm0, %v5914_v9  ;;  %v5162_v21 = vld [vmem:[#allocation3 + $0x109] sm:$0xff]  ;;  %v5165_v62 = vld [vmem:[#allocation3 + $0x131] sm:$0xff] }
 0x441   : > { %v3415_v51 = vpop.f32.mrf.mxu1  ;;  %11076 = vmatprep.mubr.msk.f32.mxu0 %vm571_vm0, %v5915_v1 }
 0x442   : > { %v3534_v15 = vadd.f32 %v3415_v51, %v13080_v48  ;;  %v13301_v63 = vadd.f32 %v10730_v20, %v3535_v47  ;;  %v3867_v55 = vpop.f32.mrf.mxu0  ;;  %v5918_v48 = vld [vmem:[#allocation2 + $0x18f] sm:$0xff]  ;;  %v5921_v51 = vld [vmem:[#allocation2 + $0x1c7] sm:$0xff] }
 0x443   : > { %v10677_v11 = vpop.f32.mrf.mxu1  ;;  %11012 = vmatmul.mubr.msk.f32.gmra.mxu1 %vm571_vm0, %v5161_v8 }
 0x444   : > { %v3537_v32 = vadd.f32 %v10677_v11, %v13086_v26  ;;  %v13305_v7 = vadd.f32 %v3837_v5, %v3534_v15  ;;  %11014 = vmatprep.mubr.msk.f32.mxu1 %vm571_vm0, %v5162_v21  ;;  %v10742_v17 = vpop.f32.mrf.mxu0  ;;  %11077 = vmatmul.mubr.msk.f32.gmra.mxu0 %vm571_vm0, %v5916_v18  ;;  %v5164_v26 = vld [vmem:[#allocation3 + $0x129] sm:$0xff]  ;;  %v5167_v21 = vld [vmem:[#allocation3 + $0x151] sm:$0xff] }
 0x445   : > { %v3425_v60 = vpop.f32.mrf.mxu1  ;;  %11079 = vmatprep.mubr.msk.f32.mxu0 %vm571_vm0, %v5917_v37 }
 0x446   : > { %v3536_v20 = vadd.f32 %v3425_v60, %v13090_v58  ;;  %v13311_v10 = vadd.f32 %v10733_v45, %v3537_v32  ;;  %v3877_v28 = vpop.f32.mrf.mxu0  ;;  %v5920_v58 = vld [vmem:[#allocation2 + $0x1af] sm:$0xff]  ;;  %v5923_v60 = vld [vmem:[#allocation2 + $0x1e7] sm:$0xff] }
 0x447   : > { %v10680_v9 = vpop.f32.mrf.mxu1  ;;  %11015 = vmatmul.mubr.msk.f32.gmra.mxu1 %vm571_vm0, %v5163_v31 }
 0x448   : > { %v3539_v5 = vadd.f32 %v10680_v9, %v13096_v49  ;;  %v13315_v42 = vadd.f32 %v3847_v46, %v3536_v20  ;;  %11017 = vmatprep.mubr.msk.f32.mxu1 %vm571_vm0, %v5164_v26  ;;  %v10745_v4 = vpop.f32.mrf.mxu0  ;;  %11080 = vmatmul.mubr.msk.f32.gmra.mxu0 %vm571_vm0, %v5918_v48  ;;  %v5166_v49 = vld [vmem:[#allocation3 + $0x149] sm:$0xff]  ;;  %v5169_v26 = vld [vmem:[#allocation3 + $0x171] sm:$0xff] }
 0x449   : > { %v3435_v1 = vpop.f32.mrf.mxu1  ;;  %11082 = vmatprep.mubr.msk.f32.mxu0 %vm571_vm0, %v5919_v23 }
 0x44a   : > { %v3538_v45 = vadd.f32 %v3435_v1, %v13100_v36  ;;  %v13321_v41 = vadd.f32 %v10736_v54, %v3539_v5  ;;  %v3887_v47 = vpop.f32.mrf.mxu0  ;;  %v5922_v36 = vld [vmem:[#allocation2 + $0x1cf] sm:$0xff]  ;;  %v5925_v1 = vld [vmem:[#allocation2 + $0x207] sm:$0xff] }
 0x44b   : > { %v10683_v18 = vpop.f32.mrf.mxu1  ;;  %11018 = vmatmul.mubr.msk.f32.gmra.mxu1 %vm571_vm0, %v5165_v62 }
 0x44c   : > { %v3541_v46 = vadd.f32 %v10683_v18, %v13106_v44  ;;  %v13325_v15 = vadd.f32 %v3857_v59, %v3538_v45  ;;  %11020 = vmatprep.mubr.msk.f32.mxu1 %vm571_vm0, %v5166_v49  ;;  %v10748_v8 = vpop.f32.mrf.mxu0  ;;  %11083 = vmatmul.mubr.msk.f32.gmra.mxu0 %vm571_vm0, %v5920_v58  ;;  %v5168_v44 = vld [vmem:[#allocation3 + $0x169] sm:$0xff]  ;;  %v5171_v49 = vld [vmem:[#allocation3 + $0x191] sm:$0xff] }
 0x44d   : > { %v3445_v37 = vpop.f32.mrf.mxu1  ;;  %11085 = vmatprep.mubr.msk.f32.mxu0 %vm571_vm0, %v5921_v51 }
 0x44e   : > { %v3540_v54 = vadd.f32 %v3445_v37, %v13110_v24  ;;  %v13331_v11 = vadd.f32 %v10739_v35, %v3541_v46  ;;  %v3897_v32 = vpop.f32.mrf.mxu0  ;;  %v5924_v24 = vld [vmem:[#allocation2 + $0x1ef] sm:$0xff]  ;;  %v5927_v37 = vld [vmem:[#allocation2 + $0x227] sm:$0xff] }
 0x44f   : > { %v10686_v48 = vpop.f32.mrf.mxu1  ;;  %11021 = vmatmul.mubr.msk.f32.gmra.mxu1 %vm571_vm0, %v5167_v21 }
 0x450   : > { %v3543_v59 = vadd.f32 %v10686_v48, %v13116_v61  ;;  %v13335_v20 = vadd.f32 %v3867_v55, %v3540_v54  ;;  %11023 = vmatprep.mubr.msk.f32.mxu1 %vm571_vm0, %v5168_v44  ;;  %v10751_v31 = vpop.f32.mrf.mxu0  ;;  %11086 = vmatmul.mubr.msk.f32.gmra.mxu0 %vm571_vm0, %v5922_v36  ;;  %v5170_v61 = vld [vmem:[#allocation3 + $0x189] sm:$0xff]  ;;  %v5173_v44 = vld [vmem:[#allocation3 + $0x1b1] sm:$0xff] }
 0x451   : > { %v3455_v23 = vpop.f32.mrf.mxu1  ;;  %11088 = vmatprep.mubr.msk.f32.mxu0 %vm571_vm0, %v5923_v60 }
 0x452   : > { %v3542_v35 = vadd.f32 %v3455_v23, %v13120_v6  ;;  %v13341_v9 = vadd.f32 %v10742_v17, %v3543_v59  ;;  %v3907_v5 = vpop.f32.mrf.mxu0  ;;  %v5926_v6 = vld [vmem:[#allocation2 + $0x20f] sm:$0xff] }
 0x453   : > { %v10689_v58 = vpop.f32.mrf.mxu1  ;;  %11024 = vmatmul.mubr.msk.f32.gmra.mxu1 %vm571_vm0, %v5169_v26  ;;  %v6678_v23 = vld [vmem:[#allocation2 + $0x48] sm:$0xff] }
 0x454   : > { %v3545_v55 = vadd.f32 %v10689_v58, %v13126_v30  ;;  %v13345_v45 = vadd.f32 %v3877_v28, %v3542_v35  ;;  %11026 = vmatprep.mubr.msk.f32.mxu1 %vm571_vm0, %v5170_v61  ;;  %v10754_v62 = vpop.f32.mrf.mxu0  ;;  %11089 = vmatmul.mubr.msk.f32.gmra.mxu0 %vm571_vm0, %v5924_v24  ;;  %v5172_v30 = vld [vmem:[#allocation3 + $0x1a9] sm:$0xff]  ;;  %v5175_v61 = vld [vmem:[#allocation3 + $0x1d1] sm:$0xff] }
 0x455   : > { %v3465_v51 = vpop.f32.mrf.mxu1  ;;  %11091 = vmatprep.mubr.msk.f32.mxu0 %vm571_vm0, %v5925_v1 }
 0x456   : > { %v3544_v17 = vadd.f32 %v3465_v51, %v13130_v33  ;;  %v13351_v18 = vadd.f32 %v10745_v4, %v3545_v55  ;;  %v3917_v46 = vpop.f32.mrf.mxu0  ;;  %v5928_v33 = vld [vmem:[#allocation2 + $0x22f] sm:$0xff] }
 0x457   : > { %v10692_v36 = vpop.f32.mrf.mxu1  ;;  %11027 = vmatmul.mubr.msk.f32.gmra.mxu1 %vm571_vm0, %v5171_v49  ;;  %v5176_v51 = vld [vmem:[#allocation3 + $0x1e9] sm:$0xff] }
 0x458   : > { %v3547_v28 = vadd.f32 %v10692_v36, %v13136_v2  ;;  %v13355_v54 = vadd.f32 %v3887_v47, %v3544_v17  ;;  %11029 = vmatprep.mubr.msk.f32.mxu1 %vm571_vm0, %v5172_v30  ;;  %v10757_v21 = vpop.f32.mrf.mxu0  ;;  %11092 = vmatmul.mubr.msk.f32.gmra.mxu0 %vm571_vm0, %v5926_v6  ;;  %v5174_v47 = vld [vmem:[#allocation3 + $0x1c9] sm:$0xff] }
 0x459   : > { %v3475_v60 = vpop.f32.mrf.mxu1  ;;  %11094 = vmatprep.mubr.msk.f32.mxu0 %vm571_vm0, %v5927_v37  ;;  %v9385_v6 = vld [vmem:[%s14565_s6 + $0x110] sm:$0xff] }
 0x45a   : > { %v3546_v4 = vadd.f32 %v3475_v60, %v13142_v38  ;;  %v13361_v48 = vadd.f32 %v10748_v8, %v3547_v28  ;;  %v13363_v59 = vpop.f32.mrf.mxu0  ;;  %v6679_v8 = vld [vmem:[#allocation2 + $0x50] sm:$0xff]  ;;  %v9384_v60 = vld [vmem:[%s14565_s6 + $0x108] sm:$0xff] }
 0x45b   : > { %v10695_v2 = vpop.f32.mrf.mxu1  ;;  %11030 = vmatmul.mubr.msk.f32.gmra.mxu1 %vm571_vm0, %v5173_v44  ;;  %v6681_v37 = vld [vmem:[#allocation2 + $0x70] sm:$0xff] }
 0x45c   : > { %v3549_v24 = vadd.f32 %v10695_v2, %v13150_v39  ;;  %v13367_v35 = vadd.f32 %v3897_v32, %v3546_v4  ;;  %11032 = vmatprep.mubr.msk.f32.mxu1 %vm571_vm0, %v5174_v47  ;;  %v13370_v26 = vpop.f32.mrf.mxu0  ;;  %11095 = vmatmul.mubr.msk.f32.gmra.mxu0 %vm571_vm0, %v5928_v33  ;;  %v6680_v39 = vld [vmem:[#allocation2 + $0x68] sm:$0xff]  ;;  %v5177_v28 = vld [vmem:[#allocation3 + $0x1f1] sm:$0xff] }
 0x45d   : > { %v3485_v38 = vpop.f32.mrf.mxu1  ;;  %11161 = vmatprep.mubr.msk.f32.mxu0 %vm571_vm0, %v6678_v23  ;;  %v5178_v4 = vld [vmem:[#allocation3 + $0x209] sm:$0xff] }
 0x45e   : > { %v3548_v1 = vadd.f32 %v3485_v38, %v13159_v53  ;;  %v13375_v58 = vadd.f32 %v10751_v31, %v3549_v24  ;;  %v13377_v55 = vpop.f32.mrf.mxu0  ;;  %v6683_v2 = vld [vmem:[#allocation2 + $0x90] sm:$0xff]  ;;  %v6684_v38 = vld [vmem:[#allocation2 + $0xa8] sm:$0xff] }
 0x45f   : > { %v10698_v32 = vpop.f32.mrf.mxu1  ;;  %11033 = vmatmul.mubr.msk.f32.gmra.mxu1 %vm571_vm0, %v5175_v61 }
 0x460   : > { %v3551_v17 = vadd.f32 %v10698_v32, %v13168_v12  ;;  %v13384_v49 = vadd.f32 %v3907_v5, %v3548_v1  ;;  %11035 = vmatprep.mubr.msk.f32.mxu1 %vm571_vm0, %v5176_v51  ;;  %v13387_v53 = vpop.f32.mrf.mxu0  ;;  %11162 = vmatmul.mubr.msk.f32.vlgmr.msra.gmra.mxu0 %vm571_vm0, %v6679_v8  ;;  %v6682_v5 = vld [vmem:[#allocation2 + $0x88] sm:$0xff]  ;;  %v6685_v32 = vld [vmem:[#allocation2 + $0xb0] sm:$0xff] }
 0x461   : > { %v3495_v31 = vpop.f32.mrf.mxu1  ;;  %11164 = vmatprep.mubr.msk.f32.mxu0 %vm571_vm0, %v6680_v39  ;;  %11266 = vmatpush3.msra.mxu0 %v13196_v16  ;;  %v5930_v1 = vld [vmem:[#allocation3 + $0x47] sm:$0xff] }
 0x462   : > { %v3550_v36 = vadd.f32 %v3495_v31, %v13177_v56  ;;  %v13393_v30 = vadd.f32 %v10754_v62, %v3551_v17  ;;  %v13395_v12 = vpop.f32.mrf.mxu0  ;;  %11267 = vmatprep.subr.mxu0 %v9385_v6  ;;  %v9383_v62 = vld [vmem:[%s14565_s6 + $0x100] sm:$0xff] }
 0x463   : > { %v10701_v33 = vpop.f32.mrf.mxu1  ;;  %11036 = vmatmul.mubr.msk.f32.gmra.mxu1 %vm571_vm0, %v5177_v28  ;;  %11268 = vmatpush3.msra.mxu0 %v9385_v6 }
 0x464   : > { %v3553_v16 = vadd.f32 %v10701_v33, %v13188_v50  ;;  %v13402_v44 = vadd.f32 %v3917_v46, %v3550_v36  ;;  %11038 = vmatprep.mubr.msk.f32.mxu1 %vm571_vm0, %v5178_v4  ;;  %v13405_v56 = vpop.f32.mrf.mxu0  ;;  %11165 = vmatmul.mubr.msk.f32.gmra.mxu0 %vm571_vm0, %v6681_v37  ;;  %v5179_v46 = vld [vmem:[#allocation3 + $0x211] sm:$0xff]  ;;  %v5932_v37 = vld [vmem:[#allocation3 + $0x67] sm:$0xff] }
 0x465   : > { %v3505_v23 = vpop.f32.mrf.mxu1  ;;  %11167 = vmatprep.mubr.msk.f32.mxu0 %vm571_vm0, %v6682_v5  ;;  %11269 = vmatprep.subr.mxu0 %v9384_v60  ;;  %v9349_v36 = vld [vmem:[%s14566_s7 + $0xf0] sm:$0xff] }
 0x466   : > { %v3552_v47 = vadd.f32 %v3505_v23, %v13200_v52  ;;  %v13413_v50 = vadd.f32 %v10757_v21, %v3553_v16  ;;  %v13415_v24 = vpop.f32.mrf.mxu0  ;;  %11270 = vmatpush3.msra.mxu0 %v9384_v60  ;;  %v6687_v60 = vld [vmem:[#allocation2 + $0xd0] sm:$0xff]  ;;  %v5934_v23 = vld [vmem:[#allocation3 + $0x87] sm:$0xff] }
 0x467   : > { %v10704_v8 = vpop.f32.mrf.mxu1  ;;  %11039 = vmatmul.mubr.msk.f32.gmra.mxu1 %vm571_vm0, %v5179_v46  ;;  %11271 = vmatprep.subr.mxu0 %v9383_v62  ;;  %v6689_v46 = vld [vmem:[#allocation2 + $0xf0] sm:$0xff] }
 0x468   : > { %v3555_v61 = vadd.f32 %v10704_v8, %v13209_v29  ;;  %v13420_v39 = vadd.f32 %v13363_v59, %v3552_v47  ;;  %11105 = vmatprep.mubr.msk.f32.mxu1 %vm571_vm0, %v5930_v1  ;;  %v13423_v52 = vpop.f32.mrf.mxu0  ;;  %11168 = vmatmul.mubr.msk.f32.gmra.mxu0 %vm571_vm0, %v6683_v2  ;;  %v5931_v29 = vld [vmem:[#allocation3 + $0x4f] sm:$0xff] }
 0x469   : > { %v3515_v21 = vpop.f32.mrf.mxu1  ;;  %11170 = vmatprep.mubr.msk.f32.mxu0 %vm571_vm0, %v6684_v38  ;;  %11272 = vmatpush3.msra.mxu0 %v9383_v62  ;;  %v6686_v59 = vld [vmem:[#allocation2 + $0xc8] sm:$0xff] }
 0x46a   : > { %v3554_v51 = vadd.f32 %v3515_v21, %v13219_v43  ;;  %v13429_v6 = vadd.f32 %v13370_v26, %v3555_v61  ;;  %v13431_v17 = vpop.f32.mrf.mxu0  ;;  %v5935_v1 = vld [vmem:[#allocation3 + $0x8f] sm:$0xff]  ;;  %v5936_v21 = vld [vmem:[#allocation3 + $0xa7] sm:$0xff] }
 0x46b   : > { %v10771_v31 = vpop.f32.mrf.mxu1  ;;  %11106 = vmatmul.mubr.msk.f32.vlgmr.msra.gmra.mxu1 %vm571_vm0, %v5931_v29  ;;  %v6690_v61 = vld [vmem:[#allocation2 + $0x108] sm:$0xff] }
 0x46c   : > { %v13438_v28 = vadd.f32 %v13377_v55, %v3554_v51  ;;  %v4305_v43 = vadd.f32 %v10771_v31, %v13230_v22  ;;  %11108 = vmatprep.mubr.msk.f32.mxu1 %vm571_vm0, %v5932_v37  ;;  %v13442_v26 = vpop.f32.mrf.mxu0  ;;  %11171 = vmatmul.mubr.msk.f32.gmra.mxu0 %vm571_vm0, %v6685_v32  ;;  %v5933_v55 = vld [vmem:[#allocation3 + $0x6f] sm:$0xff]  ;;  %v9347_v32 = vld [vmem:[%s14566_s7 + $0xe0] sm:$0xff] }
 0x46d   : > { %v4145_v5 = vpop.f32.mrf.mxu1  ;;  %11210 = vmatpush3.msra.mxu1 %v13268_v27  ;;  %11173 = vmatprep.mubr.msk.f32.mxu0 %vm571_vm0, %v6686_v59  ;;  %v6688_v22 = vld [vmem:[#allocation2 + $0xe8] sm:$0xff]  ;;  %v6691_v59 = vld [vmem:[#allocation2 + $0x110] sm:$0xff] }
 0x46e   : > { %v4304_v33 = vadd.f32 %v4145_v5, %v13240_v0  ;;  %v13449_v4 = vadd.f32 %v13387_v53, %v4305_v43  ;;  %v13451_v16 = vpop.f32.mrf.mxu0  ;;  %11211 = vmatprep.subr.mxu1 %v9349_v36  ;;  %v9348_v27 = vld [vmem:[%s14566_s7 + $0xe8] sm:$0xff] }
 0x46f   : > { %v10774_v62 = vpop.f32.mrf.mxu1  ;;  %11109 = vmatmul.mubr.msk.f32.gmra.mxu1 %vm571_vm0, %v5933_v55  ;;  %v6692_v43 = vld [vmem:[#allocation2 + $0x128] sm:$0xff] }
 0x470   : > { %v4307_v2 = vadd.f32 %v10774_v62, %v13247_v57  ;;  %v13459_v0 = vadd.f32 %v13395_v12, %v4304_v33  ;;  %11111 = vmatprep.mubr.msk.f32.mxu1 %vm571_vm0, %v5934_v23  ;;  %v10839_v53 = vpop.f32.mrf.mxu0  ;;  %11174 = vmatmul.mubr.msk.f32.gmra.mxu0 %vm571_vm0, %v6687_v60  ;;  %v5938_v5 = vld [vmem:[#allocation3 + $0xc7] sm:$0xff]  ;;  %v13487_v60 = vld [vmem:[%s14566_s7 + $0x118] sm:$0xff] }
 0x471   : > { %v4155_v47 = vpop.f32.mrf.mxu1  ;;  %11176 = vmatprep.mubr.msk.f32.mxu0 %vm571_vm0, %v6688_v22  ;;  %11212 = vmatpush3.msra.mxu1 %v9349_v36  ;;  %v5937_v36 = vld [vmem:[#allocation3 + $0xaf] sm:$0xff] }
 0x472   : > { %v4306_v38 = vadd.f32 %v4155_v47, %v13255_v3  ;;  %v13466_v8 = vadd.f32 %v13405_v56, %v4307_v2  ;;  %v4607_v57 = vpop.f32.mrf.mxu0  ;;  %11213 = vmatprep.subr.mxu1 %v9348_v27  ;;  %v6693_v22 = vld [vmem:[#allocation2 + $0x130] sm:$0xff]  ;;  %v6694_v2 = vld [vmem:[#allocation2 + $0x148] sm:$0xff] }
 0x473   : > { %v10777_v12 = vpop.f32.mrf.mxu1  ;;  %11112 = vmatmul.mubr.msk.f32.gmra.mxu1 %vm571_vm0, %v5935_v1  ;;  %v5940_v47 = vld [vmem:[#allocation3 + $0xe7] sm:$0xff]  ;;  %v6695_v1 = vld [vmem:[#allocation2 + $0x150] sm:$0xff] }
 0x474   : > { %v4309_v51 = vadd.f32 %v10777_v12, %v13262_v13  ;;  %v13474_v29 = vadd.f32 %v13415_v24, %v4306_v38  ;;  %11114 = vmatprep.mubr.msk.f32.mxu1 %vm571_vm0, %v5936_v21  ;;  %v10842_v3 = vpop.f32.mrf.mxu0  ;;  %11177 = vmatmul.mubr.msk.f32.gmra.mxu0 %vm571_vm0, %v6689_v46  ;;  %v5941_v21 = vld [vmem:[#allocation3 + $0xef] sm:$0xff] }
 0x475   : > { %v4165_v56 = vpop.f32.mrf.mxu1  ;;  %11179 = vmatprep.mubr.msk.f32.mxu0 %vm571_vm0, %v6690_v61  ;;  %11214 = vmatpush3.msra.mxu1 %v9348_v27  ;;  %v5939_v27 = vld [vmem:[#allocation3 + $0xcf] sm:$0xff] }
 0x476   : > { %v4308_v31 = vadd.f32 %v4165_v56, %v13272_v25  ;;  %v13481_v37 = vadd.f32 %v13423_v52, %v4309_v51  ;;  %v4617_v13 = vpop.f32.mrf.mxu0  ;;  %11215 = vmatprep.subr.mxu1 %v9347_v32  ;;  %v6696_v51 = vld [vmem:[#allocation2 + $0x168] sm:$0xff] }
 0x477   : > { %v10780_v24 = vpop.f32.mrf.mxu1  ;;  %11115 = vmatmul.mubr.msk.f32.gmra.mxu1 %vm571_vm0, %v5937_v36 }
 0x478   : > { %v4311_v33 = vadd.f32 %v10780_v24, %v13279_v19  ;;  %v13491_v25 = vadd.f32 %v13431_v17, %v4308_v31  ;;  %11117 = vmatprep.mubr.msk.f32.mxu1 %vm571_vm0, %v5938_v5  ;;  %v10845_v52 = vpop.f32.mrf.mxu0  ;;  %11180 = vmatmul.mubr.msk.f32.gmra.mxu0 %vm571_vm0, %v6691_v59  ;;  %v5943_v24 = vld [vmem:[#allocation3 + $0x10f] sm:$0xff] }
 0x479   : > { %v4175_v55 = vpop.f32.mrf.mxu1  ;;  %11182 = vmatprep.mubr.msk.f32.mxu0 %vm571_vm0, %v6692_v43  ;;  %11216 = vmatpush3.msra.mxu1 %v9347_v32 }
 0x47a   : > { %v4310_v62 = vadd.f32 %v4175_v55, %v13285_v14  ;;  %v13498_v23 = vadd.f32 %v13442_v26, %v4311_v33  ;;  %v4627_v19 = vpop.f32.mrf.mxu0  ;;  %11321 = vmatprep.subr.mxu1 %v13487_v60  ;;  %v6698_v33 = vld [vmem:[#allocation2 + $0x188] sm:$0xff] }
 0x47b   : > { %v10783_v17 = vpop.f32.mrf.mxu1  ;;  %11118 = vmatmul.mubr.msk.f32.gmra.mxu1 %vm571_vm0, %v5939_v27 }
 0x47c   : > { %v4313_v46 = vadd.f32 %v10783_v17, %v13291_v40  ;;  %v13504_v38 = vadd.f32 %v13451_v16, %v4310_v62  ;;  %11120 = vmatprep.mubr.msk.f32.mxu1 %vm571_vm0, %v5940_v47  ;;  %v10848_v14 = vpop.f32.mrf.mxu0  ;;  %11183 = vmatmul.mubr.msk.f32.gmra.mxu0 %vm571_vm0, %v6693_v22  ;;  %v5942_v16 = vld [vmem:[#allocation3 + $0x107] sm:$0xff]  ;;  %v5945_v17 = vld [vmem:[#allocation3 + $0x12f] sm:$0xff] }
 0x47d   : > { %v4185_v26 = vpop.f32.mrf.mxu1  ;;  %11185 = vmatprep.mubr.msk.f32.mxu0 %vm571_vm0, %v6694_v2 }
 0x47e   : > { %v4312_v61 = vadd.f32 %v4185_v26, %v13295_v34  ;;  %v13510_v12 = vadd.f32 %v10839_v53, %v4313_v46  ;;  %v4637_v32 = vpop.f32.mrf.mxu0  ;;  %v6697_v34 = vld [vmem:[#allocation2 + $0x170] sm:$0xff]  ;;  %v6700_v46 = vld [vmem:[#allocation2 + $0x1a8] sm:$0xff] }
 0x47f   : > { %v10786_v40 = vpop.f32.mrf.mxu1  ;;  %11121 = vmatmul.mubr.msk.f32.gmra.mxu1 %vm571_vm0, %v5941_v21 }
 0x480   : > { %v4315_v56 = vadd.f32 %v10786_v40, %v13301_v63  ;;  %v13514_v59 = vadd.f32 %v4607_v57, %v4312_v61  ;;  %11123 = vmatprep.mubr.msk.f32.mxu1 %vm571_vm0, %v5942_v16  ;;  %v10851_v31 = vpop.f32.mrf.mxu0  ;;  %11186 = vmatmul.mubr.msk.f32.gmra.mxu0 %vm571_vm0, %v6695_v1  ;;  %v5944_v63 = vld [vmem:[#allocation3 + $0x127] sm:$0xff]  ;;  %v5947_v40 = vld [vmem:[#allocation3 + $0x14f] sm:$0xff] }
 0x481   : > { %v4195_v36 = vpop.f32.mrf.mxu1  ;;  %11188 = vmatprep.mubr.msk.f32.mxu0 %vm571_vm0, %v6696_v51 }
 0x482   : > { %v4314_v53 = vadd.f32 %v4195_v36, %v13305_v7  ;;  %v13520_v43 = vadd.f32 %v10842_v3, %v4315_v56  ;;  %v4647_v5 = vpop.f32.mrf.mxu0  ;;  %v6699_v7 = vld [vmem:[#allocation2 + $0x190] sm:$0xff]  ;;  %v6702_v56 = vld [vmem:[#allocation2 + $0x1c8] sm:$0xff] }
 0x483   : > { %v10789_v55 = vpop.f32.mrf.mxu1  ;;  %11124 = vmatmul.mubr.msk.f32.gmra.mxu1 %vm571_vm0, %v5943_v24 }
 0x484   : > { %v4317_v57 = vadd.f32 %v10789_v55, %v13311_v10  ;;  %v13524_v22 = vadd.f32 %v4617_v13, %v4314_v53  ;;  %11126 = vmatprep.mubr.msk.f32.mxu1 %vm571_vm0, %v5944_v63  ;;  %v10854_v62 = vpop.f32.mrf.mxu0  ;;  %11189 = vmatmul.mubr.msk.f32.gmra.mxu0 %vm571_vm0, %v6697_v34  ;;  %v5946_v10 = vld [vmem:[#allocation3 + $0x147] sm:$0xff]  ;;  %v5949_v55 = vld [vmem:[#allocation3 + $0x16f] sm:$0xff] }
 0x485   : > { %v4205_v27 = vpop.f32.mrf.mxu1  ;;  %11191 = vmatprep.mubr.msk.f32.mxu0 %vm571_vm0, %v6698_v33 }
 0x486   : > { %v4316_v3 = vadd.f32 %v4205_v27, %v13315_v42  ;;  %v13530_v2 = vadd.f32 %v10845_v52, %v4317_v57  ;;  %v4657_v47 = vpop.f32.mrf.mxu0  ;;  %v6701_v42 = vld [vmem:[#allocation2 + $0x1b0] sm:$0xff]  ;;  %v6704_v57 = vld [vmem:[#allocation2 + $0x1e8] sm:$0xff] }
 0x487   : > { %v10792_v26 = vpop.f32.mrf.mxu1  ;;  %11127 = vmatmul.mubr.msk.f32.gmra.mxu1 %vm571_vm0, %v5945_v17 }
 0x488   : > { %v4319_v13 = vadd.f32 %v10792_v26, %v13321_v41  ;;  %v13534_v1 = vadd.f32 %v4627_v19, %v4316_v3  ;;  %11129 = vmatprep.mubr.msk.f32.mxu1 %vm571_vm0, %v5946_v10  ;;  %v10857_v61 = vpop.f32.mrf.mxu0  ;;  %11192 = vmatmul.mubr.msk.f32.gmra.mxu0 %vm571_vm0, %v6699_v7  ;;  %v5948_v41 = vld [vmem:[#allocation3 + $0x167] sm:$0xff]  ;;  %v5951_v26 = vld [vmem:[#allocation3 + $0x18f] sm:$0xff] }
 0x489   : > { %v4215_v21 = vpop.f32.mrf.mxu1  ;;  %11194 = vmatprep.mubr.msk.f32.mxu0 %vm571_vm0, %v6700_v46 }
 0x48a   : > { %v4318_v52 = vadd.f32 %v4215_v21, %v13325_v15  ;;  %v13540_v51 = vadd.f32 %v10848_v14, %v4319_v13  ;;  %v4667_v16 = vpop.f32.mrf.mxu0  ;;  %v6703_v15 = vld [vmem:[#allocation2 + $0x1d0] sm:$0xff]  ;;  %v6706_v13 = vld [vmem:[#allocation2 + $0x208] sm:$0xff] }
 0x48b   : > { %v10795_v36 = vpop.f32.mrf.mxu1  ;;  %11130 = vmatmul.mubr.msk.f32.gmra.mxu1 %vm571_vm0, %v5947_v40 }
 0x48c   : > { %v4321_v19 = vadd.f32 %v10795_v36, %v13331_v11  ;;  %v13544_v34 = vadd.f32 %v4637_v32, %v4318_v52  ;;  %11132 = vmatprep.mubr.msk.f32.mxu1 %vm571_vm0, %v5948_v41  ;;  %v10860_v53 = vpop.f32.mrf.mxu0  ;;  %11195 = vmatmul.mubr.msk.f32.gmra.mxu0 %vm571_vm0, %v6701_v42  ;;  %v5950_v11 = vld [vmem:[#allocation3 + $0x187] sm:$0xff]  ;;  %v5953_v36 = vld [vmem:[#allocation3 + $0x1af] sm:$0xff] }
 0x48d   : > { %v4225_v24 = vpop.f32.mrf.mxu1  ;;  %11197 = vmatprep.mubr.msk.f32.mxu0 %vm571_vm0, %v6702_v56 }
 0x48e   : > { %v4320_v14 = vadd.f32 %v4225_v24, %v13335_v20  ;;  %v13550_v33 = vadd.f32 %v10851_v31, %v4321_v19  ;;  %v4677_v63 = vpop.f32.mrf.mxu0  ;;  %v6705_v20 = vld [vmem:[#allocation2 + $0x1f0] sm:$0xff]  ;;  %v6708_v19 = vld [vmem:[#allocation2 + $0x228] sm:$0xff] }
 0x48f   : > { %v10798_v27 = vpop.f32.mrf.mxu1  ;;  %11133 = vmatmul.mubr.msk.f32.gmra.mxu1 %vm571_vm0, %v5949_v55 }
 0x490   : > { %v4323_v32 = vadd.f32 %v10798_v27, %v13341_v9  ;;  %v13554_v7 = vadd.f32 %v4647_v5, %v4320_v14  ;;  %11135 = vmatprep.mubr.msk.f32.mxu1 %vm571_vm0, %v5950_v11  ;;  %v10863_v3 = vpop.f32.mrf.mxu0  ;;  %11198 = vmatmul.mubr.msk.f32.gmra.mxu0 %vm571_vm0, %v6703_v15  ;;  %v5952_v9 = vld [vmem:[#allocation3 + $0x1a7] sm:$0xff]  ;;  %v5955_v27 = vld [vmem:[#allocation3 + $0x1cf] sm:$0xff] }
 0x491   : > { %v4235_v17 = vpop.f32.mrf.mxu1  ;;  %11200 = vmatprep.mubr.msk.f32.mxu0 %vm571_vm0, %v6704_v57 }
 0x492   : > { %v4322_v31 = vadd.f32 %v4235_v17, %v13345_v45  ;;  %v13560_v46 = vadd.f32 %v10854_v62, %v4323_v32  ;;  %v4687_v10 = vpop.f32.mrf.mxu0  ;;  %v6707_v45 = vld [vmem:[#allocation2 + $0x210] sm:$0xff] }
 0x493   : > { %v10801_v21 = vpop.f32.mrf.mxu1  ;;  %11136 = vmatmul.mubr.msk.f32.gmra.mxu1 %vm571_vm0, %v5951_v26  ;;  %v7458_v32 = vld [vmem:[#allocation2 + $0x49] sm:$0xff] }
 0x494   : > { %v4325_v5 = vadd.f32 %v10801_v21, %v13351_v18  ;;  %v13564_v42 = vadd.f32 %v4657_v47, %v4322_v31  ;;  %11138 = vmatprep.mubr.msk.f32.mxu1 %vm571_vm0, %v5952_v9  ;;  %v10866_v52 = vpop.f32.mrf.mxu0  ;;  %11201 = vmatmul.mubr.msk.f32.gmra.mxu0 %vm571_vm0, %v6705_v20  ;;  %v5954_v18 = vld [vmem:[#allocation3 + $0x1c7] sm:$0xff]  ;;  %v5957_v21 = vld [vmem:[#allocation3 + $0x1ef] sm:$0xff] }
 0x495   : > { %v4245_v40 = vpop.f32.mrf.mxu1  ;;  %11203 = vmatprep.mubr.msk.f32.mxu0 %vm571_vm0, %v6706_v13 }
 0x496   : > { %v4324_v62 = vadd.f32 %v4245_v40, %v13355_v54  ;;  %v13570_v56 = vadd.f32 %v10857_v61, %v4325_v5  ;;  %v4697_v41 = vpop.f32.mrf.mxu0  ;;  %v6709_v54 = vld [vmem:[#allocation2 + $0x230] sm:$0xff] }
 0x497   : > { %v10804_v24 = vpop.f32.mrf.mxu1  ;;  %11139 = vmatmul.mubr.msk.f32.gmra.mxu1 %vm571_vm0, %v5953_v36  ;;  %v7460_v5 = vld [vmem:[#allocation2 + $0x69] sm:$0xff] }
 0x498   : > { %v4327_v47 = vadd.f32 %v10804_v24, %v13361_v48  ;;  %v13574_v15 = vadd.f32 %v4667_v16, %v4324_v62  ;;  %11141 = vmatprep.mubr.msk.f32.mxu1 %vm571_vm0, %v5954_v18  ;;  %v10869_v14 = vpop.f32.mrf.mxu0  ;;  %11204 = vmatmul.mubr.msk.f32.gmra.mxu0 %vm571_vm0, %v6707_v45  ;;  %v5956_v48 = vld [vmem:[#allocation3 + $0x1e7] sm:$0xff]  ;;  %v5959_v18 = vld [vmem:[#allocation3 + $0x20f] sm:$0xff] }
 0x499   : > { %v4255_v55 = vpop.f32.mrf.mxu1  ;;  %11206 = vmatprep.mubr.msk.f32.mxu0 %vm571_vm0, %v6708_v19 }
 0x49a   : > { %v4326_v61 = vadd.f32 %v4255_v55, %v13367_v35  ;;  %v13580_v57 = vadd.f32 %v10860_v53, %v4327_v47  ;;  %v4707_v11 = vpop.f32.mrf.mxu0  ;;  %v7459_v35 = vld [vmem:[#allocation2 + $0x51] sm:$0xff]  ;;  %v7462_v55 = vld [vmem:[#allocation2 + $0x89] sm:$0xff] }
 0x49b   : > { %v10807_v17 = vpop.f32.mrf.mxu1  ;;  %11142 = vmatmul.mubr.msk.f32.gmra.mxu1 %vm571_vm0, %v5955_v27 }
 0x49c   : > { %v4329_v16 = vadd.f32 %v10807_v17, %v13375_v58  ;;  %v13584_v20 = vadd.f32 %v4677_v63, %v4326_v61  ;;  %11144 = vmatprep.mubr.msk.f32.mxu1 %vm571_vm0, %v5956_v48  ;;  %v10872_v31 = vpop.f32.mrf.mxu0  ;;  %11207 = vmatmul.mubr.msk.f32.gmra.mxu0 %vm571_vm0, %v6709_v54  ;;  %v5958_v58 = vld [vmem:[#allocation3 + $0x207] sm:$0xff]  ;;  %v5961_v61 = vld [vmem:[#allocation3 + $0x22f] sm:$0xff] }
 0x49d   : > { %v4265_v26 = vpop.f32.mrf.mxu1  ;;  %11273 = vmatprep.mubr.msk.f32.mxu0 %vm571_vm0, %v7458_v32 }
 0x49e   : > { %v4328_v53 = vadd.f32 %v4265_v26, %v13384_v49  ;;  %v13590_v13 = vadd.f32 %v10863_v3, %v4329_v16  ;;  %v4717_v9 = vpop.f32.mrf.mxu0  ;;  %v5960_v49 = vld [vmem:[#allocation3 + $0x227] sm:$0xff]  ;;  %v7461_v3 = vld [vmem:[#allocation2 + $0x71] sm:$0xff] }
 0x49f   : > { %v10810_v40 = vpop.f32.mrf.mxu1  ;;  %11145 = vmatmul.mubr.msk.f32.gmra.mxu1 %vm571_vm0, %v5957_v21  ;;  %v7464_v16 = vld [vmem:[#allocation2 + $0xa9] sm:$0xff] }
 0x4a0   : > { %v4331_v63 = vadd.f32 %v10810_v40, %v13393_v30  ;;  %v13594_v45 = vadd.f32 %v4687_v10, %v4328_v53  ;;  %11147 = vmatprep.mubr.msk.f32.mxu1 %vm571_vm0, %v5958_v58  ;;  %v10939_v62 = vpop.f32.mrf.mxu0  ;;  %11274 = vmatmul.mubr.msk.f32.vlgmr.msra.gmra.mxu0 %vm571_vm0, %v7459_v35  ;;  %v6711_v40 = vld [vmem:[#allocation3 + $0x50] sm:$0xff] }
 0x4a1   : > { %v4275_v36 = vpop.f32.mrf.mxu1  ;;  %11276 = vmatprep.mubr.msk.f32.mxu0 %vm571_vm0, %v7460_v5 }
 0x4a2   : > { %v4330_v19 = vadd.f32 %v4275_v36, %v13402_v44  ;;  %v13600_v24 = vadd.f32 %v10866_v52, %v4331_v63  ;;  %v5347_v47 = vpop.f32.mrf.mxu0  ;;  %v7463_v44 = vld [vmem:[#allocation2 + $0x91] sm:$0xff]  ;;  %v7466_v63 = vld [vmem:[#allocation2 + $0xc9] sm:$0xff] }
 0x4a3   : > { %v10813_v30 = vpop.f32.mrf.mxu1  ;;  %11148 = vmatmul.mubr.msk.f32.gmra.mxu1 %vm571_vm0, %v5959_v18  ;;  %v9421_v36 = vld [vmem:[%s14566_s7 + $0x110] sm:$0xff] }
 0x4a4   : > { %v4333_v10 = vadd.f32 %v10813_v30, %v13413_v50  ;;  %v13604_v54 = vadd.f32 %v4697_v41, %v4330_v19  ;;  %11150 = vmatprep.mubr.msk.f32.mxu1 %vm571_vm0, %v5960_v49  ;;  %v10942_v27 = vpop.f32.mrf.mxu0  ;;  %11277 = vmatmul.mubr.msk.f32.gmra.mxu0 %vm571_vm0, %v7461_v3  ;;  %v6710_v50 = vld [vmem:[#allocation3 + $0x48] sm:$0xff]  ;;  %v7467_v19 = vld [vmem:[#allocation2 + $0xd1] sm:$0xff] }
 0x4a5   : > { %v4285_v32 = vpop.f32.mrf.mxu1  ;;  %11279 = vmatprep.mubr.msk.f32.mxu0 %vm571_vm0, %v7462_v55 }
 0x4a6   : > { %v4332_v52 = vadd.f32 %v4285_v32, %v13420_v39  ;;  %v13610_v17 = vadd.f32 %v10869_v14, %v4333_v10  ;;  %v5357_v48 = vpop.f32.mrf.mxu0  ;;  %v7465_v39 = vld [vmem:[#allocation2 + $0xb1] sm:$0xff]  ;;  %v7468_v10 = vld [vmem:[#allocation2 + $0xe9] sm:$0xff] }
 0x4a7   : > { %v10816_v26 = vpop.f32.mrf.mxu1  ;;  %11151 = vmatmul.mubr.msk.f32.gmra.mxu1 %vm571_vm0, %v5961_v61  ;;  %v6714_v61 = vld [vmem:[#allocation3 + $0x88] sm:$0xff] }
 0x4a8   : > { %v4335_v41 = vadd.f32 %v10816_v26, %v13429_v6  ;;  %v13614_v35 = vadd.f32 %v4707_v11, %v4332_v52  ;;  %11217 = vmatprep.mubr.msk.f32.mxu1 %vm571_vm0, %v6710_v50  ;;  %v10945_v53 = vpop.f32.mrf.mxu0  ;;  %11280 = vmatmul.mubr.msk.f32.gmra.mxu0 %vm571_vm0, %v7463_v44  ;;  %v6712_v11 = vld [vmem:[#allocation3 + $0x68] sm:$0xff]  ;;  %v7469_v52 = vld [vmem:[#allocation2 + $0xf1] sm:$0xff] }
 0x4a9   : > { %v4295_v21 = vpop.f32.mrf.mxu1  ;;  %11282 = vmatprep.mubr.msk.f32.mxu0 %vm571_vm0, %v7464_v16  ;;  %v9420_v32 = vld [vmem:[%s14566_s7 + $0x108] sm:$0xff]  ;;  %v6715_v50 = vld [vmem:[#allocation3 + $0x90] sm:$0xff] }
 0x4aa   : > { %v4334_v14 = vadd.f32 %v4295_v21, %v13438_v28  ;;  %v13620_v5 = vadd.f32 %v10872_v31, %v4335_v41  ;;  %v13622_v58 = vpop.f32.mrf.mxu0  ;;  %v7470_v21 = vld [vmem:[#allocation2 + $0x109] sm:$0xff] }
 0x4ab   : > { %v10883_v6 = vpop.f32.mrf.mxu1  ;;  %11218 = vmatmul.mubr.msk.f32.vlgmr.msra.gmra.mxu1 %vm571_vm0, %v6711_v40 }
 0x4ac   : > { %v13628_v49 = vadd.f32 %v4717_v9, %v4334_v14  ;;  %v5085_v3 = vadd.f32 %v10883_v6, %v13449_v4  ;;  %11220 = vmatprep.mubr.msk.f32.mxu1 %vm571_vm0, %v6712_v11  ;;  %v13632_v28 = vpop.f32.mrf.mxu0  ;;  %11283 = vmatmul.mubr.msk.f32.gmra.mxu0 %vm571_vm0, %v7465_v39  ;;  %v6713_v9 = vld [vmem:[#allocation3 + $0x70] sm:$0xff]  ;;  %v9419_v39 = vld [vmem:[%s14566_s7 + $0x100] sm:$0xff] }
 0x4ad   : > { %v4925_v31 = vpop.f32.mrf.mxu1  ;;  %11322 = vmatpush3.msra.mxu1 %v13487_v60  ;;  %11285 = vmatprep.mubr.msk.f32.mxu0 %vm571_vm0, %v7466_v63  ;;  %v7471_v63 = vld [vmem:[#allocation2 + $0x111] sm:$0xff] }
 0x4ae   : > { %v5084_v18 = vadd.f32 %v4925_v31, %v13459_v0  ;;  %v13638_v55 = vadd.f32 %v10939_v62, %v5085_v3  ;;  %v5377_v30 = vpop.f32.mrf.mxu0  ;;  %11323 = vmatprep.subr.mxu1 %v9421_v36  ;;  %v7472_v31 = vld [vmem:[#allocation2 + $0x129] sm:$0xff] }
 0x4af   : > { %v10886_v4 = vpop.f32.mrf.mxu1  ;;  %11221 = vmatmul.mubr.msk.f32.gmra.mxu1 %vm571_vm0, %v6713_v9 }
 0x4b0   : > { %v5087_v60 = vadd.f32 %v10886_v4, %v13466_v8  ;;  %v13645_v44 = vadd.f32 %v5347_v47, %v5084_v18  ;;  %11223 = vmatprep.mubr.msk.f32.mxu1 %vm571_vm0, %v6714_v61  ;;  %v10951_v0 = vpop.f32.mrf.mxu0  ;;  %11286 = vmatmul.mubr.msk.f32.gmra.mxu0 %vm571_vm0, %v7467_v19  ;;  %v6716_v47 = vld [vmem:[#allocation3 + $0xa8] sm:$0xff]  ;;  %v6719_v61 = vld [vmem:[#allocation3 + $0xd0] sm:$0xff] }
 0x4b1   : > { %v4935_v62 = vpop.f32.mrf.mxu1  ;;  %11288 = vmatprep.mubr.msk.f32.mxu0 %vm571_vm0, %v7468_v10  ;;  %11324 = vmatpush3.msra.mxu1 %v9421_v36  ;;  %v6717_v36 = vld [vmem:[#allocation3 + $0xb0] sm:$0xff] }
 0x4b2   : > { %v5086_v16 = vadd.f32 %v4935_v62, %v13474_v29  ;;  %v13651_v26 = vadd.f32 %v10942_v27, %v5087_v60  ;;  %v5387_v41 = vpop.f32.mrf.mxu0  ;;  %11325 = vmatprep.subr.mxu1 %v9420_v32  ;;  %v6720_v60 = vld [vmem:[#allocation3 + $0xe8] sm:$0xff] }
 0x4b3   : > { %v10889_v8 = vpop.f32.mrf.mxu1  ;;  %11224 = vmatmul.mubr.msk.f32.gmra.mxu1 %vm571_vm0, %v6715_v50 }
 0x4b4   : > { %v5089_v14 = vadd.f32 %v10889_v8, %v13481_v37  ;;  %v13658_v40 = vadd.f32 %v5357_v48, %v5086_v16  ;;  %11226 = vmatprep.mubr.msk.f32.mxu1 %vm571_vm0, %v6716_v47  ;;  %v10954_v29 = vpop.f32.mrf.mxu0  ;;  %11289 = vmatmul.mubr.msk.f32.gmra.mxu0 %vm571_vm0, %v7469_v52  ;;  %v6718_v48 = vld [vmem:[#allocation3 + $0xc8] sm:$0xff]  ;;  %v6721_v8 = vld [vmem:[#allocation3 + $0xf0] sm:$0xff] }
 0x4b5   : > { %v4945_v27 = vpop.f32.mrf.mxu1  ;;  %11291 = vmatprep.mubr.msk.f32.mxu0 %vm571_vm0, %v7470_v21  ;;  %11326 = vmatpush3.msra.mxu1 %v9420_v32  ;;  %v7474_v32 = vld [vmem:[#allocation2 + $0x149] sm:$0xff] }
 0x4b6   : > { %v5088_v6 = vadd.f32 %v4945_v27, %v13491_v25  ;;  %v13664_v11 = vadd.f32 %v10945_v53, %v5089_v14  ;;  %v5397_v3 = vpop.f32.mrf.mxu0  ;;  %11327 = vmatprep.subr.mxu1 %v9419_v39  ;;  %v7473_v53 = vld [vmem:[#allocation2 + $0x131] sm:$0xff] }
 0x4b7   : > { %v10892_v37 = vpop.f32.mrf.mxu1  ;;  %11227 = vmatmul.mubr.msk.f32.gmra.mxu1 %vm571_vm0, %v6717_v36 }
 0x4b8   : > { %v5091_v19 = vadd.f32 %v10892_v37, %v13498_v23  ;;  %v13669_v18 = vadd.f32 %v13622_v58, %v5088_v6  ;;  %11229 = vmatprep.mubr.msk.f32.mxu1 %vm571_vm0, %v6718_v48  ;;  %v10957_v9 = vpop.f32.mrf.mxu0  ;;  %11292 = vmatmul.mubr.msk.f32.gmra.mxu0 %vm571_vm0, %v7471_v63  ;;  %v7478_v48 = vld [vmem:[#allocation2 + $0x189] sm:$0xff] }
 0x4b9   : > { %v4955_v25 = vpop.f32.mrf.mxu1  ;;  %11294 = vmatprep.mubr.msk.f32.mxu0 %vm571_vm0, %v7472_v31  ;;  %11328 = vmatpush3.msra.mxu1 %v9419_v39  ;;  %v7476_v39 = vld [vmem:[#allocation2 + $0x169] sm:$0xff] }
 0x4ba   : > { %v5090_v10 = vadd.f32 %v4955_v25, %v13504_v38  ;;  %v13676_v4 = vadd.f32 %v13632_v28, %v5091_v19  ;;  %v5407_v23 = vpop.f32.mrf.mxu0  ;;  %v7475_v28 = vld [vmem:[#allocation2 + $0x151] sm:$0xff] }
 0x4bb   : > { %v10895_v58 = vpop.f32.mrf.mxu1  ;;  %11230 = vmatmul.mubr.msk.f32.gmra.mxu1 %vm571_vm0, %v6719_v61  ;;  %v6723_v31 = vld [vmem:[#allocation3 + $0x110] sm:$0xff] }
 0x4bc   : > { %v5093_v62 = vadd.f32 %v10895_v58, %v13510_v12  ;;  %v13680_v52 = vadd.f32 %v5377_v30, %v5090_v10  ;;  %11232 = vmatprep.mubr.msk.f32.mxu1 %vm571_vm0, %v6720_v60  ;;  %v10960_v16 = vpop.f32.mrf.mxu0  ;;  %11295 = vmatmul.mubr.msk.f32.gmra.mxu0 %vm571_vm0, %v7473_v53  ;;  %v6722_v12 = vld [vmem:[#allocation3 + $0x108] sm:$0xff] }
 0x4bd   : > { %v4965_v38 = vpop.f32.mrf.mxu1  ;;  %11297 = vmatprep.mubr.msk.f32.mxu0 %vm571_vm0, %v7474_v32  ;;  %v6725_v32 = vld [vmem:[#allocation3 + $0x130] sm:$0xff] }
 0x4be   : > { %v5092_v50 = vadd.f32 %v4965_v38, %v13514_v59  ;;  %v13686_v21 = vadd.f32 %v10951_v0, %v5093_v62  ;;  %v5417_v47 = vpop.f32.mrf.mxu0  ;;  %v7477_v59 = vld [vmem:[#allocation2 + $0x171] sm:$0xff]  ;;  %v7480_v60 = vld [vmem:[#allocation2 + $0x1a9] sm:$0xff] }
 0x4bf   : > { %v10898_v14 = vpop.f32.mrf.mxu1  ;;  %11233 = vmatmul.mubr.msk.f32.gmra.mxu1 %vm571_vm0, %v6721_v8 }
 0x4c0   : > { %v5095_v30 = vadd.f32 %v10898_v14, %v13520_v43  ;;  %v13690_v27 = vadd.f32 %v5387_v41, %v5092_v50  ;;  %11235 = vmatprep.mubr.msk.f32.mxu1 %vm571_vm0, %v6722_v12  ;;  %v10963_v63 = vpop.f32.mrf.mxu0  ;;  %11298 = vmatmul.mubr.msk.f32.gmra.mxu0 %vm571_vm0, %v7475_v28  ;;  %v6724_v41 = vld [vmem:[#allocation3 + $0x128] sm:$0xff] }
 0x4c1   : > { %v4975_v6 = vpop.f32.mrf.mxu1  ;;  %11300 = vmatprep.mubr.msk.f32.mxu0 %vm571_vm0, %v7476_v39  ;;  %v6727_v39 = vld [vmem:[#allocation3 + $0x150] sm:$0xff] }
 0x4c2   : > { %v5094_v0 = vadd.f32 %v4975_v6, %v13524_v22  ;;  %v13696_v36 = vadd.f32 %v10954_v29, %v5095_v30  ;;  %v13698_v37 = vpop.f32.mrf.mxu0  ;;  %v7479_v29 = vld [vmem:[#allocation2 + $0x191] sm:$0xff]  ;;  %v7482_v12 = vld [vmem:[#allocation2 + $0x1c9] sm:$0xff] }
 0x4c3   : > { %v10901_v43 = vpop.f32.mrf.mxu1  ;;  %11236 = vmatmul.mubr.msk.f32.gmra.mxu1 %vm571_vm0, %v6723_v31 }
 0x4c4   : > { %v5097_v19 = vadd.f32 %v10901_v43, %v13530_v2  ;;  %v13702_v25 = vadd.f32 %v5397_v3, %v5094_v0  ;;  %11238 = vmatprep.mubr.msk.f32.mxu1 %vm571_vm0, %v6724_v41  ;;  %v10966_v53 = vpop.f32.mrf.mxu0  ;;  %11301 = vmatmul.mubr.msk.f32.gmra.mxu0 %vm571_vm0, %v7477_v59  ;;  %v6726_v3 = vld [vmem:[#allocation3 + $0x148] sm:$0xff] }
 0x4c5   : > { %v4985_v22 = vpop.f32.mrf.mxu1  ;;  %11303 = vmatprep.mubr.msk.f32.mxu0 %vm571_vm0, %v7478_v48  ;;  %v6729_v48 = vld [vmem:[#allocation3 + $0x170] sm:$0xff]  ;;  %v6730_v41 = vld [vmem:[#allocation3 + $0x188] sm:$0xff] }
 0x4c6   : > { %v5096_v10 = vadd.f32 %v4985_v22, %v13534_v1  ;;  %v13708_v61 = vadd.f32 %v10957_v9, %v5097_v19  ;;  %v13710_v58 = vpop.f32.mrf.mxu0  ;;  %v7481_v9 = vld [vmem:[#allocation2 + $0x1b1] sm:$0xff] }
 0x4c7   : > { %v10904_v2 = vpop.f32.mrf.mxu1  ;;  %11239 = vmatmul.mubr.msk.f32.gmra.mxu1 %vm571_vm0, %v6725_v32  ;;  %v6731_v32 = vld [vmem:[#allocation3 + $0x190] sm:$0xff] }
 0x4c8   : > { %v5099_v62 = vadd.f32 %v10904_v2, %v13540_v51  ;;  %v13714_v38 = vadd.f32 %v5407_v23, %v5096_v10  ;;  %11241 = vmatprep.mubr.msk.f32.mxu1 %vm571_vm0, %v6726_v3  ;;  %v10969_v28 = vpop.f32.mrf.mxu0  ;;  %11304 = vmatmul.mubr.msk.f32.gmra.mxu0 %vm571_vm0, %v7479_v29  ;;  %v6728_v23 = vld [vmem:[#allocation3 + $0x168] sm:$0xff] }
 0x4c9   : > { %v4995_v1 = vpop.f32.mrf.mxu1  ;;  %11306 = vmatprep.mubr.msk.f32.mxu0 %vm571_vm0, %v7480_v60  ;;  %v7486_v2 = vld [vmem:[#allocation2 + $0x209] sm:$0xff] }
 0x4ca   : > { %v5098_v50 = vadd.f32 %v4995_v1, %v13544_v34  ;;  %v13720_v8 = vadd.f32 %v10960_v16, %v5099_v62  ;;  %v13722_v14 = vpop.f32.mrf.mxu0  ;;  %v7483_v16 = vld [vmem:[#allocation2 + $0x1d1] sm:$0xff] }
 0x4cb   : > { %v10907_v51 = vpop.f32.mrf.mxu1  ;;  %11242 = vmatmul.mubr.msk.f32.gmra.mxu1 %vm571_vm0, %v6727_v39  ;;  %v6733_v39 = vld [vmem:[#allocation3 + $0x1b0] sm:$0xff] }
 0x4cc   : > { %v5101_v30 = vadd.f32 %v10907_v51, %v13550_v33  ;;  %v13726_v6 = vadd.f32 %v5417_v47, %v5098_v50  ;;  %11244 = vmatprep.mubr.msk.f32.mxu1 %vm571_vm0, %v6728_v23  ;;  %v10972_v59 = vpop.f32.mrf.mxu0  ;;  %11307 = vmatmul.mubr.msk.f32.gmra.mxu0 %vm571_vm0, %v7481_v9  ;;  %v7484_v33 = vld [vmem:[#allocation2 + $0x1e9] sm:$0xff] }
 0x4cd   : > { %v5005_v34 = vpop.f32.mrf.mxu1  ;;  %11309 = vmatprep.mubr.msk.f32.mxu0 %vm571_vm0, %v7482_v12  ;;  %v7488_v51 = vld [vmem:[#allocation2 + $0x229] sm:$0xff] }
 0x4ce   : > { %v13732_v0 = vadd.f32 %v5005_v34, %v13554_v7  ;;  %v13734_v31 = vadd.f32 %v10963_v63, %v5101_v30  ;;  %v13736_v43 = vpop.f32.mrf.mxu0  ;;  %v7485_v7 = vld [vmem:[#allocation2 + $0x1f1] sm:$0xff] }
 0x4cf   : > { %v10910_v47 = vpop.f32.mrf.mxu1  ;;  %11245 = vmatmul.mubr.msk.f32.gmra.mxu1 %vm571_vm0, %v6729_v48 }
 0x4d0   : > { %v5103_v19 = vadd.f32 %v10910_v47, %v13560_v46  ;;  %11247 = vmatprep.mubr.msk.f32.mxu1 %vm571_vm0, %v6730_v41  ;;  %v10975_v22 = vpop.f32.mrf.mxu0  ;;  %11310 = vmatmul.mubr.msk.f32.gmra.mxu0 %vm571_vm0, %v7483_v16  ;;  %v6732_v46 = vld [vmem:[#allocation3 + $0x1a8] sm:$0xff] }
 0x4d1   : > { %v5015_v29 = vpop.f32.mrf.mxu1  ;;  %11312 = vmatprep.mubr.msk.f32.mxu0 %vm571_vm0, %v7484_v33  ;;  %v6735_v33 = vld [vmem:[#allocation3 + $0x1d0] sm:$0xff] }
 0x4d2   : > { %v13744_v63 = vadd.f32 %v5015_v29, %v13564_v42  ;;  %v13746_v10 = vadd.f32 %v10966_v53, %v5103_v19  ;;  %v13748_v60 = vpop.f32.mrf.mxu0  ;;  %v7487_v42 = vld [vmem:[#allocation2 + $0x211] sm:$0xff] }
 0x4d3   : > { %v10913_v3 = vpop.f32.mrf.mxu1  ;;  %11248 = vmatmul.mubr.msk.f32.gmra.mxu1 %vm571_vm0, %v6731_v32  ;;  %v6737_v32 = vld [vmem:[#allocation3 + $0x1f0] sm:$0xff] }
 0x4d4   : > { %v5105_v62 = vadd.f32 %v10913_v3, %v13570_v56  ;;  %11250 = vmatprep.mubr.msk.f32.mxu1 %vm571_vm0, %v6732_v46  ;;  %v10978_v1 = vpop.f32.mrf.mxu0  ;;  %11313 = vmatmul.mubr.msk.f32.gmra.mxu0 %vm571_vm0, %v7485_v7  ;;  %v6734_v56 = vld [vmem:[#allocation3 + $0x1c8] sm:$0xff] }
 0x4d5   : > { %v5025_v9 = vpop.f32.mrf.mxu1  ;;  %11315 = vmatprep.mubr.msk.f32.mxu0 %vm571_vm0, %v7486_v2  ;;  %v6738_v46 = vld [vmem:[#allocation3 + $0x208] sm:$0xff] }
 0x4d6   : > { %v13756_v53 = vadd.f32 %v5025_v9, %v13574_v15  ;;  %v13758_v50 = vadd.f32 %v10969_v28, %v5105_v62  ;;  %v13760_v12 = vpop.f32.mrf.mxu0  ;;  %v7489_v15 = vld [vmem:[#allocation2 + $0x231] sm:$0xff] }
 0x4d7   : > { %v10916_v23 = vpop.f32.mrf.mxu1  ;;  %11251 = vmatmul.mubr.msk.f32.gmra.mxu1 %vm571_vm0, %v6733_v39 }
 0x4d8   : > { %v5107_v30 = vadd.f32 %v10916_v23, %v13580_v57  ;;  %11253 = vmatprep.mubr.msk.f32.mxu1 %vm571_vm0, %v6734_v56  ;;  %v10981_v34 = vpop.f32.mrf.mxu0  ;;  %11316 = vmatmul.mubr.msk.f32.gmra.mxu0 %vm571_vm0, %v7487_v42  ;;  %v6736_v57 = vld [vmem:[#allocation3 + $0x1e8] sm:$0xff] }
 0x4d9   : > { %v5035_v16 = vpop.f32.mrf.mxu1  ;;  %11318 = vmatprep.mubr.msk.f32.mxu0 %vm571_vm0, %v7488_v51  ;;  %v6740_v42 = vld [vmem:[#allocation3 + $0x228] sm:$0xff] }
 0x4da   : > { %v13768_v28 = vadd.f32 %v5035_v16, %v13584_v20  ;;  %v13770_v48 = vadd.f32 %v10972_v59, %v5107_v30  ;;  %v13772_v47 = vpop.f32.mrf.mxu0 }
 0x4db   : > { %v10919_v41 = vpop.f32.mrf.mxu1  ;;  %11254 = vmatmul.mubr.msk.f32.gmra.mxu1 %vm571_vm0, %v6735_v33 }
 0x4dc   : > { %v5109_v19 = vadd.f32 %v10919_v41, %v13590_v13  ;;  %11256 = vmatprep.mubr.msk.f32.mxu1 %vm571_vm0, %v6736_v57  ;;  %v10984_v29 = vpop.f32.mrf.mxu0  ;;  %11319 = vmatmul.mubr.msk.f32.gmra.mxu0 %vm571_vm0, %v7489_v15  ;;  %v7490_v41 = vld [vmem:[#allocation3 + $0x49] sm:$0xff] }
 0x4dd   : > { %v5045_v7 = vpop.f32.mrf.mxu1 }
 0x4de   : > { %v13779_v20 = vadd.f32 %v5045_v7, %v13594_v45  ;;  %v13781_v59 = vadd.f32 %v10975_v22, %v5109_v19  ;;  %v13783_v2 = vpop.f32.mrf.mxu0  ;;  %v6739_v22 = vld [vmem:[#allocation3 + $0x210] sm:$0xff] }
 0x4df   : > { %v10922_v3 = vpop.f32.mrf.mxu1  ;;  %11257 = vmatmul.mubr.msk.f32.gmra.mxu1 %vm571_vm0, %v6737_v32 }
 0x4e0   : > { %v5111_v13 = vadd.f32 %v10922_v3, %v13600_v24  ;;  %11259 = vmatprep.mubr.msk.f32.mxu1 %vm571_vm0, %v6738_v46  ;;  %v11051_v62 = vpop.f32.mrf.mxu0  ;;  %v6741_v24 = vld [vmem:[#allocation3 + $0x230] sm:$0xff] }
 0x4e1   : > { %v5055_v9 = vpop.f32.mrf.mxu1  ;;  %v7492_v46 = vld [vmem:[#allocation3 + $0x69] sm:$0xff] }
 0x4e2   : > { %v13789_v39 = vadd.f32 %v5055_v9, %v13604_v54  ;;  %v13791_v45 = vadd.f32 %v10978_v1, %v5111_v13  ;;  %v13793_v51 = vpop.f32.mrf.mxu0 }
 0x4e3   : > { %v10925_v23 = vpop.f32.mrf.mxu1  ;;  %11260 = vmatmul.mubr.msk.f32.gmra.mxu1 %vm571_vm0, %v6739_v22 }
 0x4e4   : > { %v5113_v56 = vadd.f32 %v10925_v23, %v13610_v17  ;;  %11262 = vmatprep.mubr.msk.f32.mxu1 %vm571_vm0, %v6740_v42  ;;  %v11054_v30 = vpop.f32.mrf.mxu0 }
 0x4e5   : > { %v5065_v16 = vpop.f32.mrf.mxu1 }
 0x4e6   : > { %v13799_v15 = vadd.f32 %v5065_v16, %v13614_v35  ;;  %v13801_v54 = vadd.f32 %v10981_v34, %v5113_v56  ;;  %v13803_v1 = vpop.f32.mrf.mxu0  ;;  %v7491_v35 = vld [vmem:[#allocation3 + $0x51] sm:$0xff]  ;;  %v7494_v56 = vld [vmem:[#allocation3 + $0x89] sm:$0xff] }
 0x4e7   : > { %v10928_v33 = vpop.f32.mrf.mxu1  ;;  %11263 = vmatmul.mubr.msk.f32.gmra.mxu1 %vm571_vm0, %v6741_v24 }
 0x4e8   : > { %v5115_v57 = vadd.f32 %v10928_v33, %v13620_v5  ;;  %11329 = vmatprep.mubr.msk.f32.mxu1 %vm571_vm0, %v7490_v41  ;;  %v11057_v17 = vpop.f32.mrf.mxu0 }
 0x4e9   : > { %v5075_v19 = vpop.f32.mrf.mxu1 }
 0x4ea   : > { %v13809_v7 = vadd.f32 %v5075_v19, %v13628_v49  ;;  %v13811_v32 = vadd.f32 %v10984_v29, %v5115_v57  ;;  %v13813_v34 = vpop.f32.mrf.mxu0  ;;  %v7493_v29 = vld [vmem:[#allocation3 + $0x71] sm:$0xff]  ;;  %v7496_v19 = vld [vmem:[#allocation3 + $0xa9] sm:$0xff] }
 0x4eb   : > { %v10995_v3 = vpop.f32.mrf.mxu1  ;;  %11330 = vmatmul.mubr.msk.f32.vlgmr.msra.gmra.mxu1 %vm571_vm0, %v7491_v35 }
 0x4ec   : > { %v5865_v13 = vadd.f32 %v10995_v3, %v13638_v55  ;;  %11332 = vmatprep.mubr.msk.f32.mxu1 %vm571_vm0, %v7492_v46  ;;  %v11060_v5 = vpop.f32.mrf.mxu0 }
 0x4ed   : > { %v5705_v9 = vpop.f32.mrf.mxu1 }
 0x4ee   : > { %v13819_v42 = vadd.f32 %v5705_v9, %v13645_v44  ;;  %v13821_v49 = vadd.f32 %v11051_v62, %v5865_v13  ;;  %v13823_v22 = vpop.f32.mrf.mxu0  ;;  %v7495_v62 = vld [vmem:[#allocation3 + $0x91] sm:$0xff] }
 0x4ef   : > { %v10998_v23 = vpop.f32.mrf.mxu1  ;;  %11333 = vmatmul.mubr.msk.f32.gmra.mxu1 %vm571_vm0, %v7493_v29  ;;  %v7498_v29 = vld [vmem:[#allocation3 + $0xc9] sm:$0xff] }
 0x4f0   : > { %v5867_v24 = vadd.f32 %v10998_v23, %v13651_v26  ;;  %11335 = vmatprep.mubr.msk.f32.mxu1 %vm571_vm0, %v7494_v56  ;;  %v11063_v55 = vpop.f32.mrf.mxu0 }
 0x4f1   : > { %v5715_v16 = vpop.f32.mrf.mxu1 }
 0x4f2   : > { %v13829_v33 = vadd.f32 %v5715_v16, %v13658_v40  ;;  %v13831_v44 = vadd.f32 %v11054_v30, %v5867_v24  ;;  %v13833_v41 = vpop.f32.mrf.mxu0  ;;  %v7497_v30 = vld [vmem:[#allocation3 + $0xb1] sm:$0xff] }
 0x4f3   : > { %v11001_v57 = vpop.f32.mrf.mxu1  ;;  %11336 = vmatmul.mubr.msk.f32.gmra.mxu1 %vm571_vm0, %v7495_v62 }
 0x4f4   : > { %v5869_v35 = vadd.f32 %v11001_v57, %v13664_v11  ;;  %11338 = vmatprep.mubr.msk.f32.mxu1 %vm571_vm0, %v7496_v19  ;;  %v11066_v26 = vpop.f32.mrf.mxu0  ;;  %v7500_v57 = vld [vmem:[#allocation3 + $0xe9] sm:$0xff] }
 0x4f5   : > { %v5725_v3 = vpop.f32.mrf.mxu1 }
 0x4f6   : > { %v13839_v46 = vadd.f32 %v5725_v3, %v13669_v18  ;;  %v13841_v40 = vadd.f32 %v11057_v17, %v5869_v35  ;;  %v13843_v13 = vpop.f32.mrf.mxu0  ;;  %v7499_v17 = vld [vmem:[#allocation3 + $0xd1] sm:$0xff] }
 0x4f7   : > { %v11004_v9 = vpop.f32.mrf.mxu1  ;;  %11339 = vmatmul.mubr.msk.f32.gmra.mxu1 %vm571_vm0, %v7497_v30 }
 0x4f8   : > { %v5871_v23 = vadd.f32 %v11004_v9, %v13676_v4  ;;  %11341 = vmatprep.mubr.msk.f32.mxu1 %vm571_vm0, %v7498_v29  ;;  %v11069_v11 = vpop.f32.mrf.mxu0  ;;  %v7502_v29 = vld [vmem:[#allocation3 + $0x109] sm:$0xff] }
 0x4f9   : > { %v5735_v56 = vpop.f32.mrf.mxu1 }
 0x4fa   : > { %v13849_v24 = vadd.f32 %v5735_v56, %v13680_v52  ;;  %v13851_v18 = vadd.f32 %v11060_v5, %v5871_v23  ;;  %v13853_v16 = vpop.f32.mrf.mxu0  ;;  %v7501_v5 = vld [vmem:[#allocation3 + $0xf1] sm:$0xff] }
 0x4fb   : > { %v11007_v62 = vpop.f32.mrf.mxu1  ;;  %11342 = vmatmul.mubr.msk.f32.gmra.mxu1 %vm571_vm0, %v7499_v17 }
 0x4fc   : > { %v5873_v19 = vadd.f32 %v11007_v62, %v13686_v21  ;;  %11344 = vmatprep.mubr.msk.f32.mxu1 %vm571_vm0, %v7500_v57  ;;  %v11072_v4 = vpop.f32.mrf.mxu0 }
 0x4fd   : > { %v5745_v35 = vpop.f32.mrf.mxu1 }
 0x4fe   : > { %v13859_v3 = vadd.f32 %v5745_v35, %v13690_v27  ;;  %v13861_v52 = vadd.f32 %v11063_v55, %v5873_v19  ;;  %v13863_v30 = vpop.f32.mrf.mxu0  ;;  %v7503_v55 = vld [vmem:[#allocation3 + $0x111] sm:$0xff]  ;;  %v7504_v19 = vld [vmem:[#allocation3 + $0x129] sm:$0xff] }
 0x4ff   : > { %14573 = vst [vmem:[#allocation4_spill] sm:$0xff] %v13863_v30  ;;  %v11010_v9 = vpop.f32.mrf.mxu1  ;;  %11345 = vmatmul.mubr.msk.f32.gmra.mxu1 %vm571_vm0, %v7501_v5 }
 0x500   : > { %v5875_v23 = vadd.f32 %v11010_v9, %v13696_v36  ;;  %11347 = vmatprep.mubr.msk.f32.mxu1 %vm571_vm0, %v7502_v29  ;;  %v11075_v21 = vpop.f32.mrf.mxu0 }
 0x501   : > { %v5755_v56 = vpop.f32.mrf.mxu1 }
 0x502   : > { %v13869_v17 = vadd.f32 %v5755_v56, %v13702_v25  ;;  %v13871_v27 = vadd.f32 %v11066_v26, %v5875_v23  ;;  %v6209_v62 = vpop.f32.mrf.mxu0  ;;  %v7505_v25 = vld [vmem:[#allocation3 + $0x131] sm:$0xff]  ;;  %v8348_v23 = vld [vmem:[%s14569_s10] sm:$0xff] }
 0x503   : > { %v11013_v57 = vpop.f32.mrf.mxu1  ;;  %11348 = vmatmul.mubr.msk.f32.gmra.mxu1 %vm571_vm0, %v7503_v55  ;;  %v7506_v55 = vld [vmem:[#allocation3 + $0x149] sm:$0xff]  ;;  %11377 = vmatprep.subr.mxu0 %v8348_v23 }
 0x504   : > { %v5877_v35 = vadd.f32 %v11013_v57, %v13708_v61  ;;  %11350 = vmatprep.mubr.msk.f32.mxu1 %vm571_vm0, %v7504_v19  ;;  %v11078_v36 = vpop.f32.mrf.mxu0  ;;  %11378 = vmatpush3.msra.mxu0 %v8348_v23 }
 0x505   : > { %v5765_v5 = vpop.f32.mrf.mxu1 }
 0x506   : > { %v13877_v9 = vadd.f32 %v5765_v5, %v13714_v38  ;;  %v13879_v29 = vadd.f32 %v11069_v11, %v5877_v35  ;;  %v6219_v26 = vpop.f32.mrf.mxu0  ;;  %v7507_v35 = vld [vmem:[#allocation3 + $0x151] sm:$0xff] }
 0x507   : > { %v11016_v56 = vpop.f32.mrf.mxu1  ;;  %11351 = vmatmul.mubr.msk.f32.gmra.mxu1 %vm571_vm0, %v7505_v25  ;;  %v7508_v25 = vld [vmem:[#allocation3 + $0x169] sm:$0xff] }
 0x508   : > { %14574 = vst [vmem:[#allocation5_spill] sm:$0xff] %v13879_v29  ;;  %v5879_v61 = vadd.f32 %v11016_v56, %v13720_v8  ;;  %11353 = vmatprep.mubr.msk.f32.mxu1 %vm571_vm0, %v7506_v55  ;;  %v11081_v57 = vpop.f32.mrf.mxu0  ;;  %v5522_v29 = vadd.f32 %v13698_v37, %v13732_v0 }
 0x509   : > { %v5775_v38 = vpop.f32.mrf.mxu1 }
 0x50a   : > { %v13888_v11 = vadd.f32 %v5775_v38, %v13726_v6  ;;  %v13890_v19 = vadd.f32 %v11072_v4, %v5879_v61  ;;  %v6229_v5 = vpop.f32.mrf.mxu0  ;;  %v7509_v4 = vld [vmem:[#allocation3 + $0x171] sm:$0xff] }
 0x50b   : > { %v11019_v30 = vpop.f32.mrf.mxu1  ;;  %11354 = vmatmul.mubr.msk.f32.gmra.mxu1 %vm571_vm0, %v7507_v35  ;;  %v5524_v35 = vadd.f32 %v13710_v58, %v13744_v63  ;;  %v5526_v58 = vadd.f32 %v13722_v14, %v13756_v53  ;;  %v5528_v14 = vadd.f32 %v13736_v43, %v13768_v28  ;;  %v5530_v43 = vadd.f32 %v13748_v60, %v13779_v20 }
 0x50c   : > { %14575 = vst [vmem:[#allocation6_spill] sm:$0xff] %v13890_v19  ;;  %v5881_v8 = vadd.f32 %v11019_v30, %v13734_v31  ;;  %11356 = vmatprep.mubr.msk.f32.mxu1 %vm571_vm0, %v7508_v25  ;;  %v11084_v23 = vpop.f32.mrf.mxu0  ;;  %v7510_v19 = vld [vmem:[#allocation3 + $0x189] sm:$0xff]  ;;  %v7511_v25 = vld [vmem:[#allocation3 + $0x191] sm:$0xff]  ;;  %v5532_v60 = vadd.f32 %v13760_v12, %v13789_v39  ;;  %v5534_v12 = vadd.f32 %v13772_v47, %v13799_v15 }
 0x50d   : > { %v5785_v56 = vpop.f32.mrf.mxu1  ;;  %v5536_v47 = vadd.f32 %v13783_v2, %v13809_v7 }
 0x50e   : > { %v5880_v55 = vadd.f32 %v5785_v56, %v5522_v29  ;;  %v13897_v6 = vadd.f32 %v11075_v21, %v5881_v8  ;;  %v6239_v61 = vpop.f32.mrf.mxu0 }
 0x50f   : > { %v11022_v38 = vpop.f32.mrf.mxu1  ;;  %11357 = vmatmul.mubr.msk.f32.gmra.mxu1 %vm571_vm0, %v7509_v4  ;;  %v7512_v4 = vld [vmem:[#allocation3 + $0x1a9] sm:$0xff] }
 0x510   : > { %v5883_v37 = vadd.f32 %v11022_v38, %v13746_v10  ;;  %v13903_v0 = vadd.f32 %v6209_v62, %v5880_v55  ;;  %11359 = vmatprep.mubr.msk.f32.mxu1 %vm571_vm0, %v7510_v19  ;;  %v11087_v31 = vpop.f32.mrf.mxu0  ;;  %v7513_v38 = vld [vmem:[#allocation3 + $0x1b1] sm:$0xff] }
 0x511   : > { %v5795_v30 = vpop.f32.mrf.mxu1 }
 0x512   : > { %v5882_v29 = vadd.f32 %v5795_v30, %v5524_v35  ;;  %v13906_v21 = vadd.f32 %v11078_v36, %v5883_v37  ;;  %v6249_v8 = vpop.f32.mrf.mxu0  ;;  %v7514_v30 = vld [vmem:[#allocation3 + $0x1c9] sm:$0xff] }
 0x513   : > { %v11025_v56 = vpop.f32.mrf.mxu1  ;;  %11360 = vmatmul.mubr.msk.f32.gmra.mxu1 %vm571_vm0, %v7511_v25 }
 0x514   : > { %v5885_v63 = vadd.f32 %v11025_v56, %v13758_v50  ;;  %v13912_v10 = vadd.f32 %v6219_v26, %v5882_v29  ;;  %11362 = vmatprep.mubr.msk.f32.mxu1 %vm571_vm0, %v7512_v4  ;;  %v11090_v62 = vpop.f32.mrf.mxu0  ;;  %v7515_v56 = vld [vmem:[#allocation3 + $0x1d1] sm:$0xff] }
 0x515   : > { %v5805_v19 = vpop.f32.mrf.mxu1 }
 0x516   : > { %v5884_v55 = vadd.f32 %v5805_v19, %v5526_v58  ;;  %v13915_v36 = vadd.f32 %v11081_v57, %v5885_v63  ;;  %v6259_v35 = vpop.f32.mrf.mxu0  ;;  %v7516_v63 = vld [vmem:[#allocation3 + $0x1e9] sm:$0xff] }
 0x517   : > { %v11028_v37 = vpop.f32.mrf.mxu1  ;;  %11363 = vmatmul.mubr.msk.f32.gmra.mxu1 %vm571_vm0, %v7513_v38  ;;  %v7517_v38 = vld [vmem:[#allocation3 + $0x1f1] sm:$0xff] }
 0x518   : > { %v5887_v53 = vadd.f32 %v11028_v37, %v13770_v48  ;;  %v13921_v50 = vadd.f32 %v6229_v5, %v5884_v55  ;;  %11365 = vmatprep.mubr.msk.f32.mxu1 %vm571_vm0, %v7514_v30  ;;  %v11093_v26 = vpop.f32.mrf.mxu0 }
 0x519   : > { %v5815_v29 = vpop.f32.mrf.mxu1 }
 0x51a   : > { %v5886_v25 = vadd.f32 %v5815_v29, %v5528_v14  ;;  %v13924_v57 = vadd.f32 %v11084_v23, %v5887_v53  ;;  %v6269_v4 = vpop.f32.mrf.mxu0  ;;  %v7518_v14 = vld [vmem:[#allocation3 + $0x209] sm:$0xff] }
 0x51b   : > { %v11031_v58 = vpop.f32.mrf.mxu1  ;;  %11366 = vmatmul.mubr.msk.f32.gmra.mxu1 %vm571_vm0, %v7515_v56  ;;  %v7519_v56 = vld [vmem:[#allocation3 + $0x211] sm:$0xff] }
 0x51c   : > { %v5889_v28 = vadd.f32 %v11031_v58, %v13781_v59  ;;  %v13930_v48 = vadd.f32 %v6239_v61, %v5886_v25  ;;  %11368 = vmatprep.mubr.msk.f32.mxu1 %vm571_vm0, %v7516_v63  ;;  %v11096_v5 = vpop.f32.mrf.mxu0 }
 0x51d   : > { %v5825_v19 = vpop.f32.mrf.mxu1 }
 0x51e   : > { %v5888_v55 = vadd.f32 %v5825_v19, %v5530_v43  ;;  %v13933_v23 = vadd.f32 %v11087_v31, %v5889_v28  ;;  %v6279_v37 = vpop.f32.mrf.mxu0  ;;  %v7520_v31 = vld [vmem:[#allocation3 + $0x229] sm:$0xff] }
 0x51f   : > { %v11034_v30 = vpop.f32.mrf.mxu1  ;;  %11369 = vmatmul.mubr.msk.f32.gmra.mxu1 %vm571_vm0, %v7517_v38 }
 0x520   : > { %v5891_v20 = vadd.f32 %v11034_v30, %v13791_v45  ;;  %v13939_v59 = vadd.f32 %v6249_v8, %v5888_v55  ;;  %11371 = vmatprep.mubr.msk.f32.mxu1 %vm571_vm0, %v7518_v14  ;;  %v13942_v61 = vpop.f32.mrf.mxu0  ;;  %v7521_v8 = vld [vmem:[#allocation3 + $0x231] sm:$0xff] }
 0x521   : > { %v5835_v53 = vpop.f32.mrf.mxu1 }
 0x522   : > { %v5890_v29 = vadd.f32 %v5835_v53, %v5532_v60  ;;  %v13944_v25 = vadd.f32 %v11090_v62, %v5891_v20  ;;  %v13946_v58 = vpop.f32.mrf.mxu0  ;;  %v6288_v53 = vadd.f32 %v13793_v51, %v13819_v42 }
 0x523   : > { %v11037_v63 = vpop.f32.mrf.mxu1  ;;  %11372 = vmatmul.mubr.msk.f32.gmra.mxu1 %vm571_vm0, %v7519_v56  ;;  %v6290_v56 = vadd.f32 %v13803_v1, %v13829_v33 }
 0x524   : > { %v5893_v39 = vadd.f32 %v11037_v63, %v13801_v54  ;;  %v13952_v45 = vadd.f32 %v6259_v35, %v5890_v29  ;;  %11374 = vmatprep.mubr.msk.f32.mxu1 %vm571_vm0, %v7520_v31  ;;  %v13955_v43 = vpop.f32.mrf.mxu0 }
 0x525   : > { %v5845_v62 = vpop.f32.mrf.mxu1 }
 0x526   : > { %v5892_v28 = vadd.f32 %v5845_v62, %v5534_v12  ;;  %v13957_v19 = vadd.f32 %v11093_v26, %v5893_v39  ;;  %v13959_v55 = vpop.f32.mrf.mxu0  ;;  %v6292_v39 = vadd.f32 %v13813_v34, %v13839_v46 }
 0x527   : > { %v11040_v38 = vpop.f32.mrf.mxu1  ;;  %11375 = vmatmul.mubr.msk.f32.gmra.mxu1 %vm571_vm0, %v7521_v8 }
 0x528   : > { %v5895_v15 = vadd.f32 %v11040_v38, %v13811_v32  ;;  %v13965_v54 = vadd.f32 %v6269_v4, %v5892_v28  ;;  %v13967_v35 = vpop.f32.mrf.mxu0  ;;  %v6294_v38 = vadd.f32 %v13823_v22, %v13849_v24 }
 0x529   : > { %v5855_v30 = vpop.f32.mrf.mxu1 }
 0x52a   : > { %v5894_v14 = vadd.f32 %v5855_v30, %v5536_v47  ;;  %v13969_v60 = vadd.f32 %v11096_v5, %v5895_v15  ;;  %v13971_v26 = vpop.f32.mrf.mxu0 }
 0x52b   : > { %v11107_v20 = vpop.f32.mrf.mxu1 }
 0x52c   : > { %v13975_v31 = vadd.f32 %v6279_v37, %v5894_v14  ;;  %v13978_v2 = vadd.f32 %v11107_v20, %v13821_v49  ;;  %v13980_v7 = vpop.f32.mrf.mxu0  ;;  %v6296_v14 = vadd.f32 %v13833_v41, %v13859_v3 }
 0x52d   : > { %v6487_v32 = vpop.f32.mrf.mxu1 }
 0x52e   : > { %v13982_v4 = vadd.f32 %v6487_v32, %v6288_v53  ;;  %v13984_v29 = vpop.f32.mrf.mxu0 }
 0x52f   : > { %v11110_v5 = vpop.f32.mrf.mxu1 }
 0x530   : > { %v13989_v63 = vadd.f32 %v11110_v5, %v13831_v44  ;;  %v13991_v51 = vpop.f32.mrf.mxu0  ;;  %v6298_v5 = vadd.f32 %v13843_v13, %v13869_v17 }
 0x531   : > { %v6497_v42 = vpop.f32.mrf.mxu1 }
 0x532   : > { %v13993_v37 = vadd.f32 %v6497_v42, %v6290_v56  ;;  %v13995_v49 = vpop.f32.mrf.mxu0 }
 0x533   : > { %v11113_v12 = vpop.f32.mrf.mxu1 }
 0x534   : > { %v14000_v8 = vadd.f32 %v11113_v12, %v13841_v40  ;;  %v14002_v62 = vpop.f32.mrf.mxu0 }
 0x535   : > { %v6507_v1 = vpop.f32.mrf.mxu1 }
 0x536   : > { %v14004_v33 = vadd.f32 %v6507_v1, %v6292_v39  ;;  %v14006_v44 = vpop.f32.mrf.mxu0  ;;  %v6300_v39 = vadd.f32 %v13853_v16, %v13877_v9  ;;  %v14580_v1 = vld [vmem:[#allocation5_spill] sm:$0xff] }
 0x537   : > { %v11116_v28 = vpop.f32.mrf.mxu1 }
 0x538   : > { %v14011_v47 = vadd.f32 %v11116_v28, %v13851_v18  ;;  %v14013_v15 = vpop.f32.mrf.mxu0 }
 0x539   : > { %v6517_v34 = vpop.f32.mrf.mxu1 }
 0x53a   : > { %v14015_v46 = vadd.f32 %v6517_v34, %v6294_v38  ;;  %v14017_v40 = vpop.f32.mrf.mxu0 }
 0x53b   : > { %v11119_v30 = vpop.f32.mrf.mxu1 }
 0x53c   : > { %v14022_v20 = vadd.f32 %v11119_v30, %v13861_v52  ;;  %v14024_v53 = vpop.f32.mrf.mxu0  ;;  %v14583_v30 = vld [vmem:[#allocation4_spill] sm:$0xff] }
 0x53d   : > { %14576 = vst [vmem:[#allocation7_spill] sm:$0xff] %v14024_v53  ;;  %v6527_v22 = vpop.f32.mrf.mxu1 }
 0x53e   : > { %v14026_v24 = vadd.f32 %v6527_v22, %v6296_v14  ;;  %v14028_v18 = vpop.f32.mrf.mxu0  ;;  %v6302_v14 = vadd.f32 %v14583_v30, %v13888_v11  ;;  %v14584_v22 = vld [vmem:[#allocation6_spill] sm:$0xff] }
 0x53f   : > { %14577 = vst [vmem:[#allocation8_spill] sm:$0xff] %v14028_v18  ;;  %v11122_v32 = vpop.f32.mrf.mxu1 }
 0x540   : > { %v14033_v56 = vadd.f32 %v11122_v32, %v13871_v27  ;;  %v14035_v42 = vpop.f32.mrf.mxu0 }
 0x541   : > { %14578 = vst [vmem:[#allocation9_spill] sm:$0xff] %v14035_v42  ;;  %v6537_v41 = vpop.f32.mrf.mxu1 }
 0x542   : > { %v14037_v3 = vadd.f32 %v6537_v41, %v6298_v5  ;;  %v14039_v52 = vpop.f32.mrf.mxu0 }
 0x543   : > { %14579 = vst [vmem:[#allocation10_spill] sm:$0xff] %v14039_v52  ;;  %v11125_v12 = vpop.f32.mrf.mxu1 }
 0x544   : > { %v14044_v28 = vadd.f32 %v11125_v12, %v14580_v1  ;;  %v14046_v38 = vpop.f32.mrf.mxu0 }
 0x545   : > { %14581 = vst [vmem:[#allocation5_spill] sm:$0xff] %v14046_v38  ;;  %v6547_v13 = vpop.f32.mrf.mxu1 }
 0x546   : > { %v14048_v17 = vadd.f32 %v6547_v13, %v6300_v39  ;;  %v14050_v27 = vpop.f32.mrf.mxu0 }
 0x547   : > { %14582 = vst [vmem:[#allocation11_spill] sm:$0xff] %v14050_v27  ;;  %v11128_v34 = vpop.f32.mrf.mxu1 }
 0x548   : > { %v14055_v32 = vadd.f32 %v11128_v34, %v14584_v22  ;;  %v14057_v5 = vpop.f32.mrf.mxu0 }
 0x549   : > { %14585 = vst [vmem:[#allocation4_spill] sm:$0xff] %v14057_v5  ;;  %v6557_v16 = vpop.f32.mrf.mxu1 }
 0x54a   : > { %v14059_v9 = vadd.f32 %v6557_v16, %v6302_v14  ;;  %v14061_v41 = vpop.f32.mrf.mxu0 }
 0x54b   : > { %14587 = vst [vmem:[#allocation12_spill] sm:$0xff] %v14061_v41  ;;  %v11131_v12 = vpop.f32.mrf.mxu1 }
 0x54c   : > { %14586 = vst [vmem:[#allocation6_spill] sm:$0xff] %v14059_v9  ;;  %v14064_v39 = vadd.f32 %v11131_v12, %v13897_v6  ;;  %v14066_v1 = vpop.f32.mrf.mxu0 }
 0x54d   : > { %14589 = vst [vmem:[#allocation14_spill] sm:$0xff] %v14066_v1  ;;  %v6567_v13 = vpop.f32.mrf.mxu1 }
 0x54e   : > { %14588 = vst [vmem:[#allocation13_spill] sm:$0xff] %v14064_v39  ;;  %v14069_v27 = vadd.f32 %v6567_v13, %v13903_v0  ;;  %v14071_v11 = vpop.f32.mrf.mxu0 }
 0x54f   : > { %14591 = vst [vmem:[#allocation16_spill] sm:$0xff] %v14071_v11  ;;  %v11134_v34 = vpop.f32.mrf.mxu1 }
 0x550   : > { %14590 = vst [vmem:[#allocation15_spill] sm:$0xff] %v14069_v27  ;;  %v14074_v30 = vadd.f32 %v11134_v34, %v13906_v21  ;;  %v14076_v14 = vpop.f32.mrf.mxu0 }
 0x551   : > { %14593 = vst [vmem:[#allocation18_spill] sm:$0xff] %v14076_v14  ;;  %v6577_v22 = vpop.f32.mrf.mxu1 }
 0x552   : > { %14592 = vst [vmem:[#allocation17_spill] sm:$0xff] %v14074_v30  ;;  %v14079_v16 = vadd.f32 %v6577_v22, %v13912_v10  ;;  %v14081_v6 = vpop.f32.mrf.mxu0 }
 0x553   : > { %14595 = vst [vmem:[#allocation20_spill] sm:$0xff] %v14081_v6  ;;  %v11137_v12 = vpop.f32.mrf.mxu1 }
 0x554   : > { %14594 = vst [vmem:[#allocation19_spill] sm:$0xff] %v14079_v16  ;;  %v14084_v1 = vadd.f32 %v11137_v12, %v13915_v36  ;;  %v14086_v0 = vpop.f32.mrf.mxu0 }
 0x555   : > { %14597 = vst [vmem:[#allocation22_spill] sm:$0xff] %v14086_v0  ;;  %v6587_v13 = vpop.f32.mrf.mxu1 }
 0x556   : > { %14596 = vst [vmem:[#allocation21_spill] sm:$0xff] %v14084_v1  ;;  %v14089_v11 = vadd.f32 %v6587_v13, %v13921_v50  ;;  %v14091_v21 = vpop.f32.mrf.mxu0 }
 0x557   : > { %14599 = vst [vmem:[#allocation24_spill] sm:$0xff] %v14091_v21  ;;  %v11140_v34 = vpop.f32.mrf.mxu1 }
 0x558   : > { %14598 = vst [vmem:[#allocation23_spill] sm:$0xff] %v14089_v11  ;;  %v14094_v14 = vadd.f32 %v11140_v34, %v13924_v57  ;;  %v14096_v22 = vpop.f32.mrf.mxu0 }
 0x559   : > { %v6597_v10 = vpop.f32.mrf.mxu1  ;;  %14601 = vst [vmem:[#allocation26_spill] sm:$0xff] %v14096_v22 }
 0x55a   : > { %14600 = vst [vmem:[#allocation25_spill] sm:$0xff] %v14094_v14  ;;  %v14099_v6 = vadd.f32 %v6597_v10, %v13930_v48  ;;  %v14104_v41 = vpop.f32.mrf.mxu0 }
 0x55b   : > { %v11143_v36 = vpop.f32.mrf.mxu1  ;;  %14604 = vst [vmem:[#allocation29_spill] sm:$0xff] %v14104_v41 }
 0x55c   : > { %14602 = vst [vmem:[#allocation27_spill] sm:$0xff] %v14099_v6  ;;  %v14102_v12 = vadd.f32 %v11143_v36, %v13933_v23  ;;  %v14112_v21 = vpop.f32.mrf.mxu0 }
 0x55d   : > { %v6607_v0 = vpop.f32.mrf.mxu1  ;;  %14607 = vst [vmem:[#allocation32_spill] sm:$0xff] %v14112_v21 }
 0x55e   : > { %14603 = vst [vmem:[#allocation28_spill] sm:$0xff] %v14102_v12  ;;  %v14107_v50 = vadd.f32 %v6607_v0, %v13939_v59  ;;  %v14120_v22 = vpop.f32.mrf.mxu0 }
 0x55f   : > { %v11146_v13 = vpop.f32.mrf.mxu1  ;;  %14610 = vst [vmem:[#allocation35_spill] sm:$0xff] %v14120_v22 }
 0x560   : > { %14605 = vst [vmem:[#allocation30_spill] sm:$0xff] %v14107_v50  ;;  %v14110_v57 = vadd.f32 %v11146_v13, %v13944_v25  ;;  %v11275_v41 = vpop.f32.mrf.mxu0 }
 0x561   : > { %v6617_v34 = vpop.f32.mrf.mxu1 }
 0x562   : > { %14606 = vst [vmem:[#allocation31_spill] sm:$0xff] %v14110_v57  ;;  %v14115_v48 = vadd.f32 %v6617_v34, %v13952_v45 }
 0x563   : > { %v11149_v10 = vpop.f32.mrf.mxu1 }
 0x564   : > { %14608 = vst [vmem:[#allocation33_spill] sm:$0xff] %v14115_v48  ;;  %v14118_v23 = vadd.f32 %v11149_v10, %v13957_v19  ;;  %v7689_v48 = vpop.f32.mrf.mxu0 }
 0x565   : > { %v6627_v36 = vpop.f32.mrf.mxu1 }
 0x566   : > { %14609 = vst [vmem:[#allocation34_spill] sm:$0xff] %v14118_v23  ;;  %v14123_v59 = vadd.f32 %v6627_v36, %v13965_v54  ;;  %v11278_v23 = vpop.f32.mrf.mxu0 }
 0x567   : > { %v11152_v0 = vpop.f32.mrf.mxu1 }
 0x568   : > { %14611 = vst [vmem:[#allocation36_spill] sm:$0xff] %v14123_v59  ;;  %v14126_v25 = vadd.f32 %v11152_v0, %v13969_v60  ;;  %v14131_v22 = vpop.f32.mrf.mxu0 }
 0x569   : > { %v6637_v13 = vpop.f32.mrf.mxu1 }
 0x56a   : > { %14612 = vst [vmem:[#allocation37_spill] sm:$0xff] %v14126_v25  ;;  %v14129_v21 = vadd.f32 %v6637_v13, %v13975_v31  ;;  %v14135_v59 = vpop.f32.mrf.mxu0 }
 0x56b   : > { %v11219_v45 = vpop.f32.mrf.mxu1 }
 0x56c   : > { %14613 = vst [vmem:[#allocation38_spill] sm:$0xff] %v14129_v21  ;;  %v14141_v31 = vpop.f32.mrf.mxu0 }
 0x56d   : > { %v7267_v34 = vpop.f32.mrf.mxu1 }
 0x56e   : > { %v14147_v25 = vpop.f32.mrf.mxu0 }
 0x56f   : > { %v11222_v19 = vpop.f32.mrf.mxu1 }
 0x570   : > { %v14153_v6 = vpop.f32.mrf.mxu0 }
 0x571   : > { %v7277_v10 = vpop.f32.mrf.mxu1 }
 0x572   : > { %v14159_v5 = vpop.f32.mrf.mxu0 }
 0x573   : > { %v11225_v57 = vpop.f32.mrf.mxu1 }
 0x574   : > { %v14165_v38 = vpop.f32.mrf.mxu0 }
 0x575   : > { %v7287_v54 = vpop.f32.mrf.mxu1 }
 0x576   : > { %v14171_v27 = vpop.f32.mrf.mxu0 }
 0x577   : > { %v14133_v36 = vpop.f32.mrf.mxu1 }
 0x578   : > { %v14177_v18 = vpop.f32.mrf.mxu0 }
 0x579   : > { %v14137_v60 = vpop.f32.mrf.mxu1  ;;  %14622 = vst [vmem:[#allocation47_spill] sm:$0xff] %v14177_v18 }
 0x57b   : > { %v14139_v0 = vpop.f32.mrf.mxu1 }
 0x57d   : > { %v14143_v13 = vpop.f32.mrf.mxu1 }
 0x57f   : > { %v14145_v21 = vpop.f32.mrf.mxu1 }
 0x581   : > { %v14149_v50 = vpop.f32.mrf.mxu1 }
 0x583   : > { %v14151_v12 = vpop.f32.mrf.mxu1 }
 0x585   : > { %v14155_v14 = vpop.f32.mrf.mxu1 }
 0x586   : > { %14614 = vst [vmem:[#allocation39_spill] sm:$0xff] %v14155_v14 }
 0x587   : > { %v14157_v11 = vpop.f32.mrf.mxu1 }
 0x588   : > { %14615 = vst [vmem:[#allocation40_spill] sm:$0xff] %v14157_v11 }
 0x589   : > { %v14161_v1 = vpop.f32.mrf.mxu1 }
 0x58a   : > { %14616 = vst [vmem:[#allocation41_spill] sm:$0xff] %v14161_v1  ;;  %v14183_v1 = vpop.f32.mrf.mxu0 }
 0x58b   : > { %v14163_v16 = vpop.f32.mrf.mxu1 }
 0x58c   : > { %14617 = vst [vmem:[#allocation42_spill] sm:$0xff] %v14163_v16 }
 0x58d   : > { %v14167_v30 = vpop.f32.mrf.mxu1 }
 0x58e   : > { %14618 = vst [vmem:[#allocation43_spill] sm:$0xff] %v14167_v30  ;;  %v14189_v30 = vpop.f32.mrf.mxu0 }
 0x58f   : > { %v14169_v52 = vpop.f32.mrf.mxu1  ;;  %14627 = vst [vmem:[#allocation52_spill] sm:$0xff] %v14189_v30 }
 0x590   : > { %14619 = vst [vmem:[#allocation44_spill] sm:$0xff] %v14169_v52 }
 0x591   : > { %v14173_v42 = vpop.f32.mrf.mxu1 }
 0x592   : > { %14620 = vst [vmem:[#allocation45_spill] sm:$0xff] %v14173_v42  ;;  %v14195_v42 = vpop.f32.mrf.mxu0 }
 0x593   : > { %v14175_v39 = vpop.f32.mrf.mxu1  ;;  %14630 = vst [vmem:[#allocation55_spill] sm:$0xff] %v14195_v42 }
 0x594   : > { %14621 = vst [vmem:[#allocation46_spill] sm:$0xff] %v14175_v39 }
 0x595   : > { %v14179_v11 = vpop.f32.mrf.mxu1 }
 0x596   : > { %14623 = vst [vmem:[#allocation48_spill] sm:$0xff] %v14179_v11  ;;  %v14203_v11 = vpop.f32.mrf.mxu0 }
 0x597   : > { %v14181_v9 = vpop.f32.mrf.mxu1  ;;  %14633 = vst [vmem:[#allocation58_spill] sm:$0xff] %v14203_v11 }
 0x598   : > { %14624 = vst [vmem:[#allocation49_spill] sm:$0xff] %v14181_v9  ;;  %v7069_v9 = vadd.f32 %v13942_v61, %v13978_v2  ;;  %v7070_v61 = vadd.f32 %v13959_v55, %v13993_v37 }
 0x599   : > { %v14185_v16 = vpop.f32.mrf.mxu1 }
 0x59a   : > { %14625 = vst [vmem:[#allocation50_spill] sm:$0xff] %v14185_v16  ;;  %v7427_v30 = vadd.f32 %v11219_v45, %v7069_v9 }
 0x59b   : > { %v14187_v14 = vpop.f32.mrf.mxu1 }
 0x59c   : > { %14626 = vst [vmem:[#allocation51_spill] sm:$0xff] %v14187_v14  ;;  %v7068_v14 = vadd.f32 %v13946_v58, %v13982_v4  ;;  %v7849_v2 = vadd.f32 %v11275_v41, %v7427_v30  ;;  %v14224_v4 = vld [vmem:[%s14567_s8] ss:$0 sm:$0xff]  ;;  %v7075_v30 = vadd.f32 %v13980_v7, %v14011_v47 }
 0x59d   : > { %v14191_v52 = vpop.f32.mrf.mxu1 }
 0x59e   : > { %14628 = vst [vmem:[#allocation53_spill] sm:$0xff] %v14191_v52  ;;  %v7426_v42 = vadd.f32 %v7267_v34, %v7068_v14  ;;  %v7072_v14 = vadd.f32 %v13971_v26, %v14004_v33 }
 0x59f   : > { %v14193_v53 = vpop.f32.mrf.mxu1 }
 0x5a0   : > { %14629 = vst [vmem:[#allocation54_spill] sm:$0xff] %v14193_v53  ;;  %v7071_v53 = vadd.f32 %v13955_v43, %v13989_v63  ;;  %v7848_v43 = vadd.f32 %v7689_v48, %v7426_v42  ;;  %v7428_v63 = vadd.f32 %v7277_v10, %v7070_v61  ;;  %v7430_v41 = vadd.f32 %v7287_v54, %v7072_v14 }
 0x5a1   : > { %v14197_v39 = vpop.f32.mrf.mxu1  ;;  %v7433_v10 = vadd.f32 %v14133_v36, %v7075_v30  ;;  %v7076_v36 = vadd.f32 %v13995_v49, %v14026_v24  ;;  %v7079_v49 = vadd.f32 %v14002_v62, %v14033_v56 }
 0x5a2   : > { %14631 = vst [vmem:[#allocation56_spill] sm:$0xff] %v14197_v39  ;;  %v14213_v39 = vpop.f32.mrf.mxu0  ;;  %v7429_v11 = vadd.f32 %v11222_v19, %v7071_v53  ;;  %v7850_v26 = vadd.f32 %v14131_v22, %v7428_v63  ;;  %v7077_v22 = vadd.f32 %v13991_v51, %v14022_v20  ;;  %v7852_v61 = vadd.f32 %v14141_v31, %v7430_v41 }
 0x5a3   : > { %v14199_v18 = vpop.f32.mrf.mxu1  ;;  %v7855_v31 = vadd.f32 %v14147_v25, %v7433_v10  ;;  %v7434_v24 = vadd.f32 %v14143_v13, %v7076_v36  ;;  %v7437_v13 = vadd.f32 %v14145_v21, %v7079_v49  ;;  %v14639_v36 = vld [vmem:[#allocation8_spill] sm:$0xff] }
 0x5a4   : > { %14632 = vst [vmem:[#allocation57_spill] sm:$0xff] %v14199_v18  ;;  %v14228_v34 = vpop.f32.mrf.mxu0  ;;  %v7851_v37 = vadd.f32 %v11278_v23, %v7429_v11  ;;  %v7074_v11 = vadd.f32 %v13984_v29, %v14015_v46 }
 0x5a5   : > { %v14205_v16 = vpop.f32.mrf.mxu1 }
 0x5a6   : > { %14634 = vst [vmem:[#allocation59_spill] sm:$0xff] %v14205_v16  ;;  %v7073_v16 = vadd.f32 %v13967_v35, %v14000_v8  ;;  %v14234_v35 = vld [vmem:[%s14568_s9] ss:$0 sm:$0xff]  ;;  %v14243_v48 = vpop.f32.mrf.mxu0  ;;  %v7432_v46 = vadd.f32 %v14137_v60, %v7074_v11 }
 0x5a7   : > { %v14209_v52 = vpop.f32.mrf.mxu1 }
 0x5a8   : > { %v7431_v45 = vadd.f32 %v11225_v57, %v7073_v16  ;;  %v14257_v63 = vpop.f32.mrf.mxu0 }
 0x5a9   : > { %v14215_v18 = vpop.f32.mrf.mxu1 }
 0x5aa   : > { %v7853_v57 = vadd.f32 %v14135_v59, %v7431_v45 }
 0x5ab   : > { %v11331_v58 = vpop.f32.mrf.mxu1 }
 0x5ac   : > { %v8207_v9 = vadd.f32 %v11331_v58, %v7849_v2 }
 0x5ad   : > { %v8047_v55 = vpop.f32.mrf.mxu1 }
 0x5ae   : > { %v8246_v53 = vmul.f32 %v14224_v4, %v8207_v9  ;;  %v8206_v8 = vadd.f32 %v8047_v55, %v7848_v43  ;;  %v7435_v43 = vadd.f32 %v14139_v0, %v7077_v22  ;;  %v7854_v55 = vadd.f32 %v14153_v6, %v7432_v46  ;;  %v14635_v22 = vld [vmem:[#allocation7_spill] sm:$0xff] }
 0x5af   : > { %v11334_v42 = vpop.f32.mrf.mxu1 }
 0x5b0   : > { %v8245_v33 = vmul.f32 %v14224_v4, %v8206_v8  ;;  %v8209_v16 = vadd.f32 %v11334_v42, %v7851_v37  ;;  %v8285_v23 = vadd.f32 %v14234_v35, %v8246_v53  ;;  %v7078_v8 = vadd.f32 %v14006_v44, %v14037_v3  ;;  %v14273_v42 = vpop.f32.mrf.mxu0 }
 0x5b1   : > { %v8057_v19 = vpop.f32.mrf.mxu1  ;;  %v7857_v41 = vadd.f32 %v14159_v5, %v7435_v43  ;;  %v7081_v44 = vadd.f32 %v14013_v15, %v14044_v28  ;;  %v7856_v3 = vadd.f32 %v14165_v38, %v7434_v24  ;;  %v7859_v38 = vadd.f32 %v14171_v27, %v7437_v13  ;;  %v14645_v13 = vld [vmem:[#allocation15_spill] sm:$0xff] }
 0x5b2   : > { %v8284_v54 = vadd.f32 %v14234_v35, %v8245_v33  ;;  %v8248_v7 = vmul.f32 %v14224_v4, %v8209_v16  ;;  %v8208_v47 = vadd.f32 %v8057_v19, %v7850_v26  ;;  %v8317_v9 = vmax.f32 %v8285_v23, 0.0  ;;  %v14289_v10 = vpop.f32.mrf.mxu0 }
 0x5b3   : > { %v11337_v29 = vpop.f32.mrf.mxu1  ;;  %v7436_v16 = vadd.f32 %v14149_v50, %v7078_v8  ;;  %v7080_v23 = vadd.f32 %v14017_v40, %v14048_v17  ;;  %v7439_v19 = vadd.f32 %v14151_v12, %v7081_v44  ;;  %v7083_v40 = vadd.f32 %v14635_v22, %v14055_v32  ;;  %v14636_v17 = vld [vmem:[#allocation39_spill] sm:$0xff]  ;;  %v14644_v8 = vld [vmem:[#allocation41_spill] sm:$0xff]  ;;  %v14652_v22 = vld [vmem:[#allocation58_spill] sm:$0xff] }
 0x5b4   : > { %v8316_v59 = vmax.f32 %v8284_v54, 0.0  ;;  %v8247_v2 = vmul.f32 %v14224_v4, %v8208_v47  ;;  %v8211_v58 = vadd.f32 %v11337_v29, %v7853_v57  ;;  %v8287_v51 = vadd.f32 %v14234_v35, %v8248_v7  ;;  %v14637_v29 = vld [vmem:[#allocation47_spill] sm:$0xff] }
 0x5b5   : > { %v8067_v20 = vpop.f32.mrf.mxu1  ;;  %v7438_v12 = vadd.f32 %v14636_v17, %v7080_v23  ;;  %v7858_v46 = vadd.f32 %v14637_v29, %v7436_v16  ;;  %v14653_v29 = vld [vmem:[#allocation19_spill] sm:$0xff] }
 0x5b6   : > { %v8286_v14 = vadd.f32 %v14234_v35, %v8247_v2  ;;  %v8250_v60 = vmul.f32 %v14224_v4, %v8211_v58  ;;  %v8210_v45 = vadd.f32 %v8067_v20, %v7852_v61  ;;  %11379 = vmatprep.mubr.msk.f32.mxu0 %vm8356_vm4, %v8316_v59  ;;  %v8319_v30 = vmax.f32 %v8287_v51, 0.0  ;;  %v14638_v58 = vld [vmem:[#allocation6_spill] sm:$0xff]  ;;  %v14305_v51 = vpop.f32.mrf.mxu0 }
 0x5b7   : > { %v11340_v0 = vpop.f32.mrf.mxu1  ;;  %11380 = vmatmul.mubr.msk.f32.vlgmr.msra.gmra.mxu0 %vm8356_vm4, %v8317_v9  ;;  %v7082_v43 = vadd.f32 %v14639_v36, %v14638_v58  ;;  %v7861_v9 = vadd.f32 %v14183_v1, %v7439_v19 }
 0x5b8   : > { %v8318_v37 = vmax.f32 %v8286_v14, 0.0  ;;  %v8249_v25 = vmul.f32 %v14224_v4, %v8210_v45  ;;  %v8213_v53 = vadd.f32 %v11340_v0, %v7855_v31  ;;  %v8289_v62 = vadd.f32 %v14234_v35, %v8250_v60  ;;  %v14640_v14 = vld [vmem:[#allocation40_spill] sm:$0xff]  ;;  %v14641_v0 = vld [vmem:[#allocation13_spill] sm:$0xff] }
 0x5b9   : > { %v8077_v56 = vpop.f32.mrf.mxu1  ;;  %v7441_v60 = vadd.f32 %v14640_v14, %v7083_v40 }
 0x5ba   : > { %v8288_v26 = vadd.f32 %v14234_v35, %v8249_v25  ;;  %v8252_v6 = vmul.f32 %v14224_v4, %v8213_v53  ;;  %v8212_v33 = vadd.f32 %v8077_v56, %v7854_v55  ;;  %11382 = vmatprep.mubr.msk.f32.mxu0 %vm8356_vm4, %v8318_v37  ;;  %v8321_v54 = vmax.f32 %v8289_v62, 0.0  ;;  %v14642_v55 = vld [vmem:[#allocation9_spill] sm:$0xff]  ;;  %v14643_v25 = vld [vmem:[#allocation52_spill] sm:$0xff] }
 0x5bb   : > { %v11343_v5 = vpop.f32.mrf.mxu1  ;;  %11383 = vmatmul.mubr.msk.f32.gmra.mxu0 %vm8356_vm4, %v8319_v30  ;;  %v7085_v37 = vadd.f32 %v14642_v55, %v14641_v0  ;;  %v7860_v1 = vadd.f32 %v14643_v25, %v7438_v12  ;;  %v14658_v0 = vld [vmem:[#allocation45_spill] sm:$0xff] }
 0x5bc   : > { %v8320_v11 = vmax.f32 %v8288_v26, 0.0  ;;  %v8251_v21 = vmul.f32 %v14224_v4, %v8212_v33  ;;  %v8215_v57 = vadd.f32 %v11343_v5, %v7857_v41  ;;  %v8291_v15 = vadd.f32 %v14234_v35, %v8252_v6  ;;  %v14646_v26 = vld [vmem:[#allocation10_spill] sm:$0xff] }
 0x5bd   : > { %v8087_v28 = vpop.f32.mrf.mxu1  ;;  %v7440_v41 = vadd.f32 %v14644_v8, %v7082_v43  ;;  %v7084_v6 = vadd.f32 %v14646_v26, %v14645_v13  ;;  %v14647_v33 = vld [vmem:[#allocation42_spill] sm:$0xff]  ;;  %v14660_v8 = vld [vmem:[#allocation12_spill] sm:$0xff] }
 0x5be   : > { %v8290_v7 = vadd.f32 %v14234_v35, %v8251_v21  ;;  %v8254_v50 = vmul.f32 %v14224_v4, %v8215_v57  ;;  %v8214_v47 = vadd.f32 %v8087_v28, %v7856_v3  ;;  %11385 = vmatprep.mubr.msk.f32.mxu0 %vm8356_vm4, %v8320_v11  ;;  %v8323_v20 = vmax.f32 %v8291_v15, 0.0  ;;  %v14321_v3 = vpop.f32.mrf.mxu0  ;;  %v14648_v21 = vld [vmem:[#allocation55_spill] sm:$0xff]  ;;  %v14649_v15 = vld [vmem:[#allocation17_spill] sm:$0xff] }
 0x5bf   : > { %v11346_v61 = vpop.f32.mrf.mxu1  ;;  %11386 = vmatmul.mubr.msk.f32.gmra.mxu0 %vm8356_vm4, %v8321_v54  ;;  %v7443_v44 = vadd.f32 %v14647_v33, %v7085_v37  ;;  %v7863_v57 = vadd.f32 %v14648_v21, %v7441_v60  ;;  %v14650_v28 = vld [vmem:[#allocation5_spill] sm:$0xff]  ;;  %v7862_v40 = vadd.f32 %v14652_v22, %v7440_v41 }
 0x5c0   : > { %v8322_v59 = vmax.f32 %v8290_v7, 0.0  ;;  %v8253_v27 = vmul.f32 %v14224_v4, %v8214_v47  ;;  %v8217_v2 = vadd.f32 %v11346_v61, %v7859_v38  ;;  %v8293_v32 = vadd.f32 %v14234_v35, %v8254_v50  ;;  %v14651_v7 = vld [vmem:[#allocation43_spill] sm:$0xff]  ;;  %v14656_v60 = vld [vmem:[#allocation21_spill] sm:$0xff] }
 0x5c1   : > { %v8097_v31 = vpop.f32.mrf.mxu1  ;;  %v7087_v38 = vadd.f32 %v14650_v28, %v14649_v15  ;;  %v7442_v50 = vadd.f32 %v14651_v7, %v7084_v6  ;;  %v14666_v7 = vld [vmem:[#allocation16_spill] sm:$0xff] }
 0x5c2   : > { %v8292_v45 = vadd.f32 %v14234_v35, %v8253_v27  ;;  %v8256_v49 = vmul.f32 %v14224_v4, %v8217_v2  ;;  %v8216_v24 = vadd.f32 %v8097_v31, %v7858_v46  ;;  %11388 = vmatprep.mubr.msk.f32.mxu0 %vm8356_vm4, %v8322_v59  ;;  %v8325_v5 = vmax.f32 %v8293_v32, 0.0  ;;  %v14654_v46 = vld [vmem:[#allocation11_spill] sm:$0xff]  ;;  %v14337_v2 = vpop.f32.mrf.mxu0 }
 0x5c3   : > { %v11349_v53 = vpop.f32.mrf.mxu1  ;;  %11389 = vmatmul.mubr.msk.f32.gmra.mxu0 %vm8356_vm4, %v8323_v20  ;;  %v7086_v59 = vadd.f32 %v14654_v46, %v14653_v29  ;;  %v7865_v27 = vadd.f32 %v14213_v39, %v7443_v44  ;;  %v7864_v39 = vadd.f32 %v14228_v34, %v7442_v50 }
 0x5c4   : > { %v8324_v30 = vmax.f32 %v8292_v45, 0.0  ;;  %v8255_v62 = vmul.f32 %v14224_v4, %v8216_v24  ;;  %v8219_v56 = vadd.f32 %v11349_v53, %v7861_v9  ;;  %v8295_v16 = vadd.f32 %v14234_v35, %v8256_v49  ;;  %v14655_v9 = vld [vmem:[#allocation44_spill] sm:$0xff]  ;;  %v14659_v53 = vld [vmem:[#allocation23_spill] sm:$0xff] }
 0x5c5   : > { %v8107_v11 = vpop.f32.mrf.mxu1  ;;  %v7445_v20 = vadd.f32 %v14655_v9, %v7087_v38  ;;  %v14657_v45 = vld [vmem:[#allocation4_spill] sm:$0xff]  ;;  %v7444_v55 = vadd.f32 %v14658_v0, %v7086_v59  ;;  %v7088_v41 = vadd.f32 %v14660_v8, %v14659_v53  ;;  %v14665_v38 = vld [vmem:[#allocation27_spill] sm:$0xff]  ;;  %v14670_v9 = vld [vmem:[#allocation50_spill] sm:$0xff] }
 0x5c6   : > { %v8294_v23 = vadd.f32 %v14234_v35, %v8255_v62  ;;  %v8258_v19 = vmul.f32 %v14224_v4, %v8219_v56  ;;  %v8218_v54 = vadd.f32 %v8107_v11, %v7860_v1  ;;  %11391 = vmatprep.mubr.msk.f32.mxu0 %vm8356_vm4, %v8324_v30  ;;  %v8327_v58 = vmax.f32 %v8295_v16, 0.0  ;;  %v14661_v30 = vld [vmem:[#allocation46_spill] sm:$0xff]  ;;  %v14353_v56 = vpop.f32.mrf.mxu0  ;;  %v14662_v16 = vld [vmem:[#allocation25_spill] sm:$0xff] }
 0x5c7   : > { %v11352_v47 = vpop.f32.mrf.mxu1  ;;  %11392 = vmatmul.mubr.msk.f32.gmra.mxu0 %vm8356_vm4, %v8325_v5  ;;  %v7089_v49 = vadd.f32 %v14657_v45, %v14656_v60  ;;  %v7867_v6 = vadd.f32 %v14243_v48, %v7445_v20  ;;  %v14663_v11 = vld [vmem:[#allocation14_spill] sm:$0xff]  ;;  %v7090_v50 = vadd.f32 %v14666_v7, %v14665_v38  ;;  %v14672_v45 = vld [vmem:[#allocation20_spill] sm:$0xff] }
 0x5c8   : > { %v8326_v17 = vmax.f32 %v8294_v23, 0.0  ;;  %v8257_v12 = vmul.f32 %v14224_v4, %v8218_v54  ;;  %v8221_v61 = vadd.f32 %v11352_v47, %v7863_v57  ;;  %v8297_v36 = vadd.f32 %v14234_v35, %v8258_v19  ;;  %v14664_v57 = vld [vmem:[#allocation48_spill] sm:$0xff]  ;;  %v11314_v22 = vpop.f32.mrf.mxu0  ;;  %v14671_v60 = vld [vmem:[#allocation30_spill] sm:$0xff] }
 0x5c9   : > { %v8117_v43 = vpop.f32.mrf.mxu1  ;;  %v7447_v62 = vadd.f32 %v14661_v30, %v7089_v49  ;;  %v7091_v21 = vadd.f32 %v14663_v11, %v14662_v16  ;;  %v7446_v23 = vadd.f32 %v14664_v57, %v7088_v41  ;;  %v7866_v54 = vadd.f32 %v14257_v63, %v7444_v55  ;;  %v14674_v41 = vld [vmem:[#allocation31_spill] sm:$0xff]  ;;  %v14675_v30 = vld [vmem:[#allocation22_spill] sm:$0xff]  ;;  %v14678_v16 = vld [vmem:[#allocation24_spill] sm:$0xff] }
 0x5ca   : > { %v8296_v32 = vadd.f32 %v14234_v35, %v8257_v12  ;;  %v8260_v31 = vmul.f32 %v14224_v4, %v8221_v61  ;;  %v8220_v14 = vadd.f32 %v8117_v43, %v7862_v40  ;;  %11394 = vmatprep.mubr.msk.f32.mxu0 %vm8356_vm4, %v8326_v17  ;;  %v8329_v13 = vmax.f32 %v8297_v36, 0.0  ;;  %v14667_v61 = vld [vmem:[#allocation49_spill] sm:$0xff]  ;;  %v7819_v0 = vpop.f32.mrf.mxu0  ;;  %v14680_v7 = vld [vmem:[#allocation34_spill] sm:$0xff] }
 0x5cb   : > { %v11355_v24 = vpop.f32.mrf.mxu1  ;;  %11395 = vmatmul.mubr.msk.f32.gmra.mxu0 %vm8356_vm4, %v8327_v58  ;;  %v7869_v47 = vadd.f32 %v14273_v42, %v7447_v62  ;;  %v7449_v29 = vadd.f32 %v14667_v61, %v7091_v21  ;;  %v14669_v58 = vld [vmem:[#allocation18_spill] sm:$0xff]  ;;  %v7868_v43 = vadd.f32 %v14289_v10, %v7446_v23  ;;  %v7448_v20 = vadd.f32 %v14670_v9, %v7090_v50 }
 0x5cc   : > { %v8328_v37 = vmax.f32 %v8296_v32, 0.0  ;;  %v8259_v25 = vmul.f32 %v14224_v4, %v8220_v14  ;;  %v8223_v1 = vadd.f32 %v11355_v24, %v7865_v27  ;;  %v8299_v26 = vadd.f32 %v14234_v35, %v8260_v31  ;;  %v14668_v27 = vld [vmem:[#allocation28_spill] sm:$0xff]  ;;  %v11317_v57 = vpop.f32.mrf.mxu0  ;;  %v14681_v50 = vld [vmem:[#allocation26_spill] sm:$0xff] }
 0x5cd   : > { %v8127_v34 = vpop.f32.mrf.mxu1  ;;  %v7093_v36 = vadd.f32 %v14669_v58, %v14668_v27  ;;  %v7092_v49 = vadd.f32 %v14672_v45, %v14671_v60  ;;  %v7871_v10 = vadd.f32 %v14305_v51, %v7449_v29  ;;  %v7095_v62 = vadd.f32 %v14675_v30, %v14674_v41  ;;  %v14685_v58 = vld [vmem:[#allocation57_spill] sm:$0xff]  ;;  %v14687_v45 = vld [vmem:[#allocation32_spill] sm:$0xff] }
 0x5ce   : > { %v8298_v33 = vadd.f32 %v14234_v35, %v8259_v25  ;;  %v8262_v44 = vmul.f32 %v14224_v4, %v8223_v1  ;;  %v8222_v5 = vadd.f32 %v8127_v34, %v7864_v39  ;;  %11397 = vmatprep.mubr.msk.f32.mxu0 %vm8356_vm4, %v8328_v37  ;;  %v8331_v40 = vmax.f32 %v8299_v26, 0.0  ;;  %v14673_v39 = vld [vmem:[#allocation51_spill] sm:$0xff]  ;;  %v14686_v60 = vld [vmem:[#allocation37_spill] sm:$0xff] }
 0x5cf   : > { %v11358_v19 = vpop.f32.mrf.mxu1  ;;  %11398 = vmatmul.mubr.msk.f32.gmra.mxu0 %vm8356_vm4, %v8329_v13  ;;  %v7451_v24 = vadd.f32 %v14673_v39, %v7093_v36  ;;  %v14676_v13 = vld [vmem:[#allocation53_spill] sm:$0xff]  ;;  %v14688_v39 = vld [vmem:[#allocation59_spill] sm:$0xff] }
 0x5d0   : > { %v8330_v15 = vmax.f32 %v8298_v33, 0.0  ;;  %v8261_v48 = vmul.f32 %v14224_v4, %v8222_v5  ;;  %v8225_v28 = vadd.f32 %v11358_v19, %v7867_v6  ;;  %v8301_v17 = vadd.f32 %v14234_v35, %v8262_v44  ;;  %v14677_v5 = vld [vmem:[#allocation33_spill] sm:$0xff] }
 0x5d1   : > { %v8137_v12 = vpop.f32.mrf.mxu1  ;;  %v7450_v26 = vadd.f32 %v14676_v13, %v7092_v49  ;;  %v7870_v6 = vadd.f32 %v14321_v3, %v7448_v20  ;;  %v7094_v11 = vadd.f32 %v14678_v16, %v14677_v5  ;;  %v7873_v21 = vadd.f32 %v14337_v2, %v7451_v24 }
 0x5d2   : > { %v8300_v46 = vadd.f32 %v14234_v35, %v8261_v48  ;;  %v8264_v63 = vmul.f32 %v14224_v4, %v8225_v28  ;;  %v8224_v59 = vadd.f32 %v8137_v12, %v7866_v54  ;;  %11400 = vmatprep.mubr.msk.f32.mxu0 %vm8356_vm4, %v8330_v15  ;;  %v8333_v55 = vmax.f32 %v8301_v17, 0.0  ;;  %v14679_v15 = vld [vmem:[#allocation54_spill] sm:$0xff]  ;;  %v14682_v17 = vld [vmem:[#allocation56_spill] sm:$0xff] }
 0x5d3   : > { %v11361_v42 = vpop.f32.mrf.mxu1  ;;  %11401 = vmatmul.mubr.msk.f32.gmra.mxu0 %vm8356_vm4, %v8331_v40  ;;  %v7453_v48 = vadd.f32 %v14679_v15, %v7095_v62  ;;  %v7872_v40 = vadd.f32 %v14353_v56, %v7450_v26  ;;  %v7452_v12 = vadd.f32 %v14682_v17, %v7094_v11  ;;  %v7099_v49 = vadd.f32 %v14687_v45, %v14686_v60 }
 0x5d4   : > { %v8332_v32 = vmax.f32 %v8300_v46, 0.0  ;;  %v8263_v31 = vmul.f32 %v14224_v4, %v8224_v59  ;;  %v8227_v14 = vadd.f32 %v11361_v42, %v7869_v47  ;;  %v8303_v37 = vadd.f32 %v14234_v35, %v8264_v63  ;;  %v14683_v63 = vld [vmem:[#allocation36_spill] sm:$0xff]  ;;  %v14684_v59 = vld [vmem:[#allocation29_spill] sm:$0xff] }
 0x5d5   : > { %v8147_v25 = vpop.f32.mrf.mxu1  ;;  %v7097_v47 = vadd.f32 %v14681_v50, %v14680_v7  ;;  %v7096_v27 = vadd.f32 %v14684_v59, %v14683_v63  ;;  %v7875_v56 = vadd.f32 %v11314_v22, %v7453_v48 }
 0x5d6   : > { %v8302_v1 = vadd.f32 %v14234_v35, %v8263_v31  ;;  %v8266_v53 = vmul.f32 %v14224_v4, %v8227_v14  ;;  %v8226_v8 = vadd.f32 %v8147_v25, %v7868_v43  ;;  %11403 = vmatprep.mubr.msk.f32.mxu0 %vm8356_vm4, %v8332_v32  ;;  %v8335_v23 = vmax.f32 %v8303_v37, 0.0  ;;  %v7829_v43 = vpop.f32.mrf.mxu0 }
 0x5d7   : > { %v11364_v34 = vpop.f32.mrf.mxu1  ;;  %11404 = vmatmul.mubr.msk.f32.gmra.mxu0 %vm8356_vm4, %v8333_v55  ;;  %v7455_v36 = vadd.f32 %v14685_v58, %v7097_v47  ;;  %v7454_v24 = vadd.f32 %v14688_v39, %v7096_v27  ;;  %v7874_v37 = vadd.f32 %v7819_v0, %v7452_v12 }
 0x5d8   : > { %v8334_v33 = vmax.f32 %v8302_v1, 0.0  ;;  %v8265_v51 = vmul.f32 %v14224_v4, %v8226_v8  ;;  %v8229_v44 = vadd.f32 %v11364_v34, %v7871_v10  ;;  %v8305_v19 = vadd.f32 %v14234_v35, %v8266_v53  ;;  %v14689_v1 = vld [vmem:[#allocation38_spill] sm:$0xff]  ;;  %v14690_v53 = vld [vmem:[#allocation35_spill] sm:$0xff]  ;;  %v11320_v30 = vpop.f32.mrf.mxu0 }
 0x5d9   : > { %v8157_v54 = vpop.f32.mrf.mxu1  ;;  %v7098_v8 = vadd.f32 %v14690_v53, %v14689_v1  ;;  %v7877_v41 = vadd.f32 %v11317_v57, %v7455_v36  ;;  %v7457_v34 = vadd.f32 %v14209_v52, %v7099_v49 }
 0x5da   : > { %v8304_v28 = vadd.f32 %v14234_v35, %v8265_v51  ;;  %v8268_v3 = vmul.f32 %v14224_v4, %v8229_v44  ;;  %v8228_v38 = vadd.f32 %v8157_v54, %v7870_v6  ;;  %11406 = vmatprep.mubr.msk.f32.mxu0 %vm8356_vm4, %v8334_v33  ;;  %v8337_v42 = vmax.f32 %v8305_v19, 0.0  ;;  %v7839_v57 = vpop.f32.mrf.mxu0 }
 0x5db   : > { %v11367_v2 = vpop.f32.mrf.mxu1  ;;  %11407 = vmatmul.mubr.msk.f32.gmra.mxu0 %vm8356_vm4, %v8335_v23  ;;  %v7876_v51 = vadd.f32 %v7829_v43, %v7454_v24  ;;  %v7456_v5 = vadd.f32 %v14215_v18, %v7098_v8  ;;  %v7879_v54 = vadd.f32 %v11320_v30, %v7457_v34  ;;  %v14451_v43 = vld [vmem:[%s14570_s11] ss:$0 sm:$0xff] }
 0x5dc   : > { %v8336_v61 = vmax.f32 %v8304_v28, 0.0  ;;  %v8267_v29 = vmul.f32 %v14224_v4, %v8228_v38  ;;  %v8231_v46 = vadd.f32 %v11367_v2, %v7873_v21  ;;  %v8307_v9 = vadd.f32 %v14234_v35, %v8268_v3 }
 0x5dd   : > { %v8167_v20 = vpop.f32.mrf.mxu1  ;;  %v7878_v18 = vadd.f32 %v7839_v57, %v7456_v5 }
 0x5de   : > { %v8306_v32 = vadd.f32 %v14234_v35, %v8267_v29  ;;  %v8270_v31 = vmul.f32 %v14224_v4, %v8231_v46  ;;  %v8230_v14 = vadd.f32 %v8167_v20, %v7872_v40  ;;  %11409 = vmatprep.mubr.msk.f32.mxu0 %vm8356_vm4, %v8336_v61  ;;  %v8339_v62 = vmax.f32 %v8307_v9, 0.0 }
 0x5df   : > { %v11370_v55 = vpop.f32.mrf.mxu1  ;;  %11410 = vmatmul.mubr.msk.f32.gmra.mxu0 %vm8356_vm4, %v8337_v42 }
 0x5e0   : > { %v8338_v25 = vmax.f32 %v8306_v32, 0.0  ;;  %v8269_v10 = vmul.f32 %v14224_v4, %v8230_v14  ;;  %v8233_v22 = vadd.f32 %v11370_v55, %v7875_v56  ;;  %v8309_v13 = vadd.f32 %v14234_v35, %v8270_v31 }
 0x5e1   : > { %v8177_v26 = vpop.f32.mrf.mxu1 }
 0x5e2   : > { %v8308_v6 = vadd.f32 %v14234_v35, %v8269_v10  ;;  %v8272_v33 = vmul.f32 %v14224_v4, %v8233_v22  ;;  %v8232_v0 = vadd.f32 %v8177_v26, %v7874_v37  ;;  %11412 = vmatprep.mubr.msk.f32.mxu0 %vm8356_vm4, %v8338_v25  ;;  %v8341_v23 = vmax.f32 %v8309_v13, 0.0 }
 0x5e3   : > { %v11373_v44 = vpop.f32.mrf.mxu1  ;;  %11413 = vmatmul.mubr.msk.f32.gmra.mxu0 %vm8356_vm4, %v8339_v62 }
 0x5e4   : > { %v8340_v16 = vmax.f32 %v8308_v6, 0.0  ;;  %v8271_v11 = vmul.f32 %v14224_v4, %v8232_v0  ;;  %v8235_v21 = vadd.f32 %v11373_v44, %v7877_v41  ;;  %v8311_v52 = vadd.f32 %v14234_v35, %v8272_v33 }
 0x5e5   : > { %v8187_v19 = vpop.f32.mrf.mxu1 }
 0x5e6   : > { %v8310_v15 = vadd.f32 %v14234_v35, %v8271_v11  ;;  %v8274_v48 = vmul.f32 %v14224_v4, %v8235_v21  ;;  %v8234_v28 = vadd.f32 %v8187_v19, %v7876_v51  ;;  %11415 = vmatprep.mubr.msk.f32.mxu0 %vm8356_vm4, %v8340_v16  ;;  %v8343_v47 = vmax.f32 %v8311_v52, 0.0 }
 0x5e7   : > { %v11376_v3 = vpop.f32.mrf.mxu1  ;;  %11416 = vmatmul.mubr.msk.f32.gmra.mxu0 %vm8356_vm4, %v8341_v23 }
 0x5e8   : > { %v8342_v38 = vmax.f32 %v8310_v15, 0.0  ;;  %v8273_v7 = vmul.f32 %v14224_v4, %v8234_v28  ;;  %v8237_v50 = vadd.f32 %v11376_v3, %v7879_v54  ;;  %v8313_v40 = vadd.f32 %v14234_v35, %v8274_v48 }
 0x5e9   : > { %v8197_v2 = vpop.f32.mrf.mxu1 }
 0x5ea   : > { %v8312_v17 = vadd.f32 %v14234_v35, %v8273_v7  ;;  %v8276_v12 = vmul.f32 %v14224_v4, %v8237_v50  ;;  %v8236_v61 = vadd.f32 %v8197_v2, %v7878_v18  ;;  %11418 = vmatprep.mubr.msk.f32.mxu0 %vm8356_vm4, %v8342_v38  ;;  %v8345_v63 = vmax.f32 %v8313_v40, 0.0 }
 0x5eb   : > { %11419 = vmatmul.mubr.msk.f32.gmra.mxu0 %vm8356_vm4, %v8343_v47 }
 0x5ec   : > { %v8344_v29 = vmax.f32 %v8312_v17, 0.0  ;;  %v8275_v46 = vmul.f32 %v14224_v4, %v8236_v61  ;;  %v8315_v59 = vadd.f32 %v14234_v35, %v8276_v12 }
 0x5ee   : > { %v8314_v27 = vadd.f32 %v14234_v35, %v8275_v46  ;;  %11421 = vmatprep.mubr.msk.f32.mxu0 %vm8356_vm4, %v8344_v29  ;;  %v8347_v36 = vmax.f32 %v8315_v59, 0.0 }
 0x5ef   : > { %11422 = vmatmul.mubr.msk.f32.gmra.mxu0 %vm8356_vm4, %v8345_v63 }
 0x5f0   : > { %v8346_v58 = vmax.f32 %v8314_v27, 0.0 }
 0x5f2   : > { %11424 = vmatprep.mubr.msk.f32.mxu0 %vm8356_vm4, %v8346_v58 }
 0x5f3   : > { %11425 = vmatmul.mubr.msk.f32.gmra.mxu0 %vm8356_vm4, %v8347_v36 }
 0x677   : > { %v11381_v4 = vpop.f32.mrf.mxu0 }
 0x678   : > { %v8525_v35 = vadd.f32 %v11381_v4, %v14451_v43 }
 0x679   : > { %v8519_v42 = vpop.f32.mrf.mxu0 }
 0x67a   : > { %8679 = vst.msk [vmem:[%s14458_s28 + $0x8] sm:$0xff] %vm8356_vm4, %v8525_v35  ;;  %v8520_v9 = vadd.f32 %v14451_v43, %v8519_v42 }
 0x67b   : > { %v11384_v20 = vpop.f32.mrf.mxu0 }
 0x67c   : > { %8678 = vst.msk [vmem:[%s14458_s28] sm:$0xff] %vm8356_vm4, %v8520_v9  ;;  %v8535_v56 = vadd.f32 %v11384_v20, %v14451_v43 }
 0x67d   : > { %v8529_v32 = vpop.f32.mrf.mxu0 }
 0x67e   : > { %8681 = vst.msk [vmem:[%s14458_s28 + $0x18] sm:$0xff] %vm8356_vm4, %v8535_v56  ;;  %v8530_v31 = vadd.f32 %v14451_v43, %v8529_v32 }
 0x67f   : > { %v11387_v14 = vpop.f32.mrf.mxu0 }
 0x680   : > { %8680 = vst.msk [vmem:[%s14458_s28 + $0x10] sm:$0xff] %vm8356_vm4, %v8530_v31  ;;  %v8545_v60 = vadd.f32 %v11387_v14, %v14451_v43 }
 0x681   : > { %v8539_v45 = vpop.f32.mrf.mxu0 }
 0x682   : > { %8683 = vst.msk [vmem:[%s14458_s28 + $0x28] sm:$0xff] %vm8356_vm4, %v8545_v60  ;;  %v8540_v49 = vadd.f32 %v14451_v43, %v8539_v45 }
 0x683   : > { %v11390_v39 = vpop.f32.mrf.mxu0 }
 0x684   : > { %8682 = vst.msk [vmem:[%s14458_s28 + $0x20] sm:$0xff] %vm8356_vm4, %v8540_v49  ;;  %v8555_v24 = vadd.f32 %v11390_v39, %v14451_v43 }
 0x685   : > { %v8549_v55 = vpop.f32.mrf.mxu0 }
 0x686   : > { %8685 = vst.msk [vmem:[%s14458_s28 + $0x38] sm:$0xff] %vm8356_vm4, %v8555_v24  ;;  %v8550_v37 = vadd.f32 %v14451_v43, %v8549_v55 }
 0x687   : > { %v11393_v25 = vpop.f32.mrf.mxu0 }
 0x688   : > { %8684 = vst.msk [vmem:[%s14458_s28 + $0x30] sm:$0xff] %vm8356_vm4, %v8550_v37  ;;  %v8565_v10 = vadd.f32 %v11393_v25, %v14451_v43 }
 0x689   : > { %v8559_v22 = vpop.f32.mrf.mxu0 }
 0x68a   : > { %8687 = vst.msk [vmem:[%s14458_s28 + $0x48] sm:$0xff] %vm8356_vm4, %v8565_v10  ;;  %v8560_v1 = vadd.f32 %v14451_v43, %v8559_v22 }
 0x68b   : > { %v11396_v53 = vpop.f32.mrf.mxu0 }
 0x68c   : > { %8686 = vst.msk [vmem:[%s14458_s28 + $0x40] sm:$0xff] %vm8356_vm4, %v8560_v1  ;;  %v8575_v8 = vadd.f32 %v11396_v53, %v14451_v43 }
 0x68d   : > { %v8569_v41 = vpop.f32.mrf.mxu0 }
 0x68e   : > { %8689 = vst.msk [vmem:[%s14458_s28 + $0x58] sm:$0xff] %vm8356_vm4, %v8575_v8  ;;  %v8570_v30 = vadd.f32 %v14451_v43, %v8569_v41 }
 0x68f   : > { %v11399_v62 = vpop.f32.mrf.mxu0 }
 0x690   : > { %8688 = vst.msk [vmem:[%s14458_s28 + $0x50] sm:$0xff] %vm8356_vm4, %v8570_v30  ;;  %v8585_v13 = vadd.f32 %v11399_v62, %v14451_v43 }
 0x691   : > { %v8579_v26 = vpop.f32.mrf.mxu0 }
 0x692   : > { %8691 = vst.msk [vmem:[%s14458_s28 + $0x68] sm:$0xff] %vm8356_vm4, %v8585_v13  ;;  %v8580_v34 = vadd.f32 %v14451_v43, %v8579_v26 }
 0x693   : > { %v11402_v6 = vpop.f32.mrf.mxu0 }
 0x694   : > { %8690 = vst.msk [vmem:[%s14458_s28 + $0x60] sm:$0xff] %vm8356_vm4, %v8580_v34  ;;  %v8595_v33 = vadd.f32 %v11402_v6, %v14451_v43 }
 0x695   : > { %v8589_v0 = vpop.f32.mrf.mxu0 }
 0x696   : > { %8693 = vst.msk [vmem:[%s14458_s28 + $0x78] sm:$0xff] %vm8356_vm4, %v8595_v33  ;;  %v8590_v51 = vadd.f32 %v14451_v43, %v8589_v0 }
 0x697   : > { %v11405_v44 = vpop.f32.mrf.mxu0 }
 0x698   : > { %8692 = vst.msk [vmem:[%s14458_s28 + $0x70] sm:$0xff] %vm8356_vm4, %v8590_v51  ;;  %v8605_v5 = vadd.f32 %v11405_v44, %v14451_v43 }
 0x699   : > { %v8599_v16 = vpop.f32.mrf.mxu0 }
 0x69a   : > { %8695 = vst.msk [vmem:[%s14458_s28 + $0x88] sm:$0xff] %vm8356_vm4, %v8605_v5  ;;  %v8600_v11 = vadd.f32 %v14451_v43, %v8599_v16 }
 0x69b   : > { %v11408_v21 = vpop.f32.mrf.mxu0 }
 0x69c   : > { %8694 = vst.msk [vmem:[%s14458_s28 + $0x80] sm:$0xff] %vm8356_vm4, %v8600_v11  ;;  %v8615_v57 = vadd.f32 %v11408_v21, %v14451_v43 }
 0x69d   : > { %v8609_v23 = vpop.f32.mrf.mxu0 }
 0x69e   : > { %8697 = vst.msk [vmem:[%s14458_s28 + $0x98] sm:$0xff] %vm8356_vm4, %v8615_v57  ;;  %v8610_v52 = vadd.f32 %v14451_v43, %v8609_v23 }
 0x69f   : > { %v11411_v19 = vpop.f32.mrf.mxu0 }
 0x6a0   : > { %8696 = vst.msk [vmem:[%s14458_s28 + $0x90] sm:$0xff] %vm8356_vm4, %v8610_v52  ;;  %v8625_v54 = vadd.f32 %v11411_v19, %v14451_v43 }
 0x6a1   : > { %v8619_v15 = vpop.f32.mrf.mxu0 }
 0x6a2   : > { %8699 = vst.msk [vmem:[%s14458_s28 + $0xa8] sm:$0xff] %vm8356_vm4, %v8625_v54  ;;  %v8620_v48 = vadd.f32 %v14451_v43, %v8619_v15 }
 0x6a3   : > { %v11414_v28 = vpop.f32.mrf.mxu0 }
 0x6a4   : > { %8698 = vst.msk [vmem:[%s14458_s28 + $0xa0] sm:$0xff] %vm8356_vm4, %v8620_v48  ;;  %v8635_v3 = vadd.f32 %v11414_v28, %v14451_v43 }
 0x6a5   : > { %v8629_v18 = vpop.f32.mrf.mxu0 }
 0x6a6   : > { %8701 = vst.msk [vmem:[%s14458_s28 + $0xb8] sm:$0xff] %vm8356_vm4, %v8635_v3  ;;  %v8630_v38 = vadd.f32 %v14451_v43, %v8629_v18 }
 0x6a7   : > { %v11417_v7 = vpop.f32.mrf.mxu0 }
 0x6a8   : > { %8700 = vst.msk [vmem:[%s14458_s28 + $0xb0] sm:$0xff] %vm8356_vm4, %v8630_v38  ;;  %v8645_v50 = vadd.f32 %v11417_v7, %v14451_v43 }
 0x6a9   : > { %v8639_v47 = vpop.f32.mrf.mxu0 }
 0x6aa   : > { %8703 = vst.msk [vmem:[%s14458_s28 + $0xc8] sm:$0xff] %vm8356_vm4, %v8645_v50  ;;  %v8640_v40 = vadd.f32 %v14451_v43, %v8639_v47 }
 0x6ab   : > { %v11420_v2 = vpop.f32.mrf.mxu0 }
 0x6ac   : > { %8702 = vst.msk [vmem:[%s14458_s28 + $0xc0] sm:$0xff] %vm8356_vm4, %v8640_v40  ;;  %v8655_v17 = vadd.f32 %v11420_v2, %v14451_v43 }
 0x6ad   : > { %v8649_v12 = vpop.f32.mrf.mxu0 }
 0x6ae   : > { %8705 = vst.msk [vmem:[%s14458_s28 + $0xd8] sm:$0xff] %vm8356_vm4, %v8655_v17  ;;  %v8650_v61 = vadd.f32 %v14451_v43, %v8649_v12 }
 0x6af   : > { %v11423_v29 = vpop.f32.mrf.mxu0 }
 0x6b0   : > { %8704 = vst.msk [vmem:[%s14458_s28 + $0xd0] sm:$0xff] %vm8356_vm4, %v8650_v61  ;;  %v8665_v46 = vadd.f32 %v11423_v29, %v14451_v43 }
 0x6b1   : > { %v8659_v63 = vpop.f32.mrf.mxu0 }
 0x6b2   : > { %8707 = vst.msk [vmem:[%s14458_s28 + $0xe8] sm:$0xff] %vm8356_vm4, %v8665_v46  ;;  %v8660_v59 = vadd.f32 %v14451_v43, %v8659_v63 }
 0x6b3   : > { %v11426_v27 = vpop.f32.mrf.mxu0 }
 0x6b4   : > { %8706 = vst.msk [vmem:[%s14458_s28 + $0xe0] sm:$0xff] %vm8356_vm4, %v8660_v59  ;;  %v8675_v58 = vadd.f32 %v11426_v27, %v14451_v43 }
 0x6b5   : > { %v8669_v36 = vpop.f32.mrf.mxu0 }
 0x6b6   : > { %8709 = vst.msk [vmem:[%s14458_s28 + $0xf8] sm:$0xff] %vm8356_vm4, %v8675_v58  ;;  %v8670_v4 = vadd.f32 %v14451_v43, %v8669_v36 }
 0x6b8   : > { %8708 = vst.msk [vmem:[%s14458_s28 + $0xf0] sm:$0xff] %vm8356_vm4, %v8670_v4 }
 0x6b9 PF: > { %s22_s21 = sadd.s32 1, %s11451_s21  }
 0x6ba   : > { %p19_p4 = scmp.ge.s32.totalorder %s22_s21, 4  }
 0x6bc   :  { %21 = sbr.rel (!%p19_p4) target bundleno = 1 (0x1), region = 118 }

</bundles_post_ra>
